<compile_context>
chip_gen: v7x
topology: tpu7x:2x2x1
jax: 0.10.0
libtpu: 0.0.40
codegen_flags: <defaults>
</compile_context>

<pallas_src>
import functools

import jax
import jax.numpy as jnp
from jax.experimental import pallas as pl
from jax.experimental.pallas import tpu as pltpu


def _round_up(x, m):
    return ((x + m - 1) // m) * m


# ----------------------------------------------------------------------------
# Pallas kernel 1: row-tiled matmul + bias + optional ReLU (bf16 in, f32 acc)
# ----------------------------------------------------------------------------
def _matmul_bias_act_kernel(x_ref, w_ref, b_ref, o_ref, *, relu):
    y = jnp.dot(x_ref[...], w_ref[...], preferred_element_type=jnp.float32)
    y = y + b_ref[...]
    if relu:
        y = jnp.maximum(y, 0.0)
    o_ref[...] = y.astype(o_ref.dtype)


def matmul_bias_act(x, w, b, *, relu=False, out_dtype=jnp.float32,
                    tile_m_large=512, small_m=256):
    """y = act(x @ w + b).  x: [M,K], w: [K,N], b: [N].  bf16 operands, f32 acc."""
    M, K = x.shape
    Kw, N = w.shape
    assert K == Kw

    # bf16 operands: MXU-native on v6e/v7x, halves HBM->VMEM DMA bytes.
    x_bf = x.astype(jnp.bfloat16)
    w_bf = w.astype(jnp.bfloat16)
    b2 = b.reshape(1, N).astype(jnp.float32)

    if M <= small_m:
        # Tiny / medium M: single grid step, rows only padded to the 8-sublane
        # minimum (no wasteful pad-to-128).
        tile_m = _round_up(M, 8)
        n_tiles = 1
    else:
        # Large M (conv1-3): big row tiles to amortize per-grid-step overhead,
        # grid stays >= 2 steps so v7x can shard across its two TensorCores.
        tile_m = tile_m_large
        n_tiles = _round_up(M, tile_m) // tile_m

    m_pad = n_tiles * tile_m
    if m_pad != M:
        x_bf = jnp.pad(x_bf, ((0, m_pad - M), (0, 0)))

    out = pl.pallas_call(
        functools.partial(_matmul_bias_act_kernel, relu=relu),
        out_shape=jax.ShapeDtypeStruct((m_pad, N), out_dtype),
        grid=(n_tiles,),
        in_specs=[
            pl.BlockSpec((tile_m, K), lambda i: (i, 0)),
            pl.BlockSpec((K, N), lambda i: (0, 0)),   # weight stays resident
            pl.BlockSpec((1, N), lambda i: (0, 0)),
        ],
        out_specs=pl.BlockSpec((tile_m, N), lambda i: (i, 0)),
        compiler_params=pltpu.CompilerParams(
            dimension_semantics=("parallel",),
            vmem_limit_bytes=32 * 1024 * 1024,   # lift v5e's 16 MiB default
        ),
    )(x_bf, w_bf, b2)
    return out[:M] if m_pad != M else out


# ----------------------------------------------------------------------------
# Pallas kernel 2: fused tail = conv6 (1x1 spatial) + value head + actor head
# All intermediates (feat, h) stay in VMEM; softmax and value output in f32.
# ----------------------------------------------------------------------------
def _tail_kernel(p6_ref, w6_ref, b6_ref, wh1_ref, bh1_ref,
                 wh2a_ref, bh2a_ref, wh2v_ref, bh2v_ref,
                 probs_ref, v_ref):
    # conv6: feat = relu(p6 @ w6 + b6)  -> [B, 256]   (bf16 operands, f32 acc)
    feat = jnp.dot(p6_ref[...], w6_ref[...], preferred_element_type=jnp.float32)
    feat = jnp.maximum(feat + b6_ref[...], 0.0)

    # Fused head layer 1: h = relu(feat @ [wv1 || wa1] + [bv1 || ba1]) -> [B, 200]
    h = jnp.dot(feat, wh1_ref[...], preferred_element_type=jnp.float32)
    h = jnp.maximum(h + bh1_ref[...], 0.0)

    # Head layer 2: zero-padded weights so both heads consume the full h
    # (avoids any in-kernel lane slicing).
    logits = jnp.dot(h, wh2a_ref[...], preferred_element_type=jnp.float32) + bh2a_ref[...]
    value = jnp.dot(h, wh2v_ref[...], preferred_element_type=jnp.float32) + bh2v_ref[...]

    # Softmax in f32.
    logits = logits - jnp.max(logits, axis=-1, keepdims=True)
    e = jnp.exp(logits)
    probs_ref[...] = (e / jnp.sum(e, axis=-1, keepdims=True)).astype(probs_ref.dtype)
    v_ref[...] = value.astype(v_ref.dtype)


def tail_forward(p6, w6_mat, b6, wh1, bh1, wh2a, bh2a, wh2v, bh2v, action_dim):
    B = p6.shape[0]
    return pl.pallas_call(
        _tail_kernel,
        out_shape=(jax.ShapeDtypeStruct((B, action_dim), jnp.float32),
                   jax.ShapeDtypeStruct((B, 1), jnp.float32)),
        compiler_params=pltpu.CompilerParams(
            vmem_limit_bytes=32 * 1024 * 1024),
    )(p6.astype(jnp.bfloat16), w6_mat.astype(jnp.bfloat16), b6.reshape(1, -1),
      wh1, bh1.reshape(1, -1),
      wh2a, bh2a.reshape(1, -1),
      wh2v, bh2v.reshape(1, -1))


# ----------------------------------------------------------------------------
# Conv2d (NHWC, valid padding) = im2col glue + Pallas matmul kernel
# ----------------------------------------------------------------------------
def conv2d_relu_nhwc(x, weight, bias, stride):
    """x: [B,H,W,C]; weight: [Cout,Cin,KH,KW] (PyTorch layout) -> [B,OH,OW,Cout]."""
    B, H, W, C = x.shape
    Cout, Cin, KH, KW = weight.shape
    assert Cin == C
    OH = (H - KH) // stride + 1
    OW = (W - KW) // stride + 1

    # im2col in NHWC (glue, plain JAX): strided shifted views, channel-last,
    # kernel-position ordering (kh, kw, cin).
    cols = []
    for i in range(KH):
        for j in range(KW):
            cols.append(x[:, i:i + stride * OH:stride, j:j + stride * OW:stride, :])
    patches = jnp.stack(cols, axis=3)                      # [B, OH, OW, KH*KW, C]
    patches = patches.reshape(B * OH * OW, KH * KW * C)

    # Weight matrix with matching (kh, kw, cin) ordering: [KH,KW,Cin,Cout].
    w_mat = weight.transpose(2, 3, 1, 0).reshape(KH * KW * Cin, Cout)

    # bf16 activations out: halves bytes of the next layer's patch gather.
    y = matmul_bias_act(patches, w_mat, bias, relu=True, out_dtype=jnp.bfloat16)
    return y.reshape(B, OH, OW, Cout)


# ----------------------------------------------------------------------------
# Parameter construction (deterministic, mirrors the PyTorch module shapes)
# ----------------------------------------------------------------------------
CONV_CFG = [
    # (Cin, Cout, K, stride)
    (4, 8, 4, 2),
    (8, 16, 3, 2),
    (16, 32, 3, 2),
    (32, 64, 3, 2),
    (64, 128, 3, 1),
    (128, 256, 3, 1),
]


def init_params(key, action_dim, img_stack=4):
    params = {"conv": [], "v": [], "actor": []}
    cfg = [(img_stack,) + CONV_CFG[0][1:]] + CONV_CFG[1:]

    for (cin, cout, k, _s) in cfg:
        key, wk = jax.random.split(key)
        fan_in = cin * k * k
        fan_out = cout * k * k
        gain = jnp.sqrt(2.0)                                # calculate_gain('relu')
        bound = gain * jnp.sqrt(6.0 / (fan_in + fan_out))   # xavier_uniform_
        w = jax.random.uniform(wk, (cout, cin, k, k), jnp.float32, -bound, bound)
        b = jnp.full((cout,), 0.1, jnp.float32)             # constant_(bias, 0.1)
        params["conv"].append((w, b))

    def linear(key, fin, fout):
        key, wk, bk = jax.random.split(key, 3)
        bound = 1.0 / jnp.sqrt(fin)                         # PyTorch Linear default
        w = jax.random.uniform(wk, (fin, fout), jnp.float32, -bound, bound)
        b = jax.random.uniform(bk, (fout,), jnp.float32, -bound, bound)
        return key, (w, b)

    key, l = linear(key, 256, 100); params["v"].append(l)
    key, l = linear(key, 100, 1); params["v"].append(l)
    key, l = linear(key, 256, 100); params["actor"].append(l)
    key, l = linear(key, 100, action_dim); params["actor"].append(l)
    return params


# ----------------------------------------------------------------------------
# Forward pass (matches Net.forward): returns (probs, v)
# ----------------------------------------------------------------------------
def net_forward(params, x):
    # Single layout transpose: NCHW (PyTorch input convention) -> NHWC.
    x = jnp.transpose(x, (0, 2, 3, 1))
    B = x.shape[0]

    strides = [c[3] for c in CONV_CFG]
    for (w, b), s in zip(params["conv"][:5], strides[:5]):
        x = conv2d_relu_nhwc(x, w, b, s)

    # conv6 produces a 1x1 spatial output, so its im2col is just a flatten of
    # the NHWC [B, 3, 3, 128] activation -> [B, 1152] with (h, w, c) ordering.
    p6 = x.reshape(B, -1)

    w6, b6 = params["conv"][5]
    Cout6, Cin6, K6, _ = w6.shape
    w6_mat = w6.transpose(2, 3, 1, 0).reshape(K6 * K6 * Cin6, Cout6)   # [1152, 256]

    (wv1, bv1), (wv2, bv2) = params["v"]
    (wa1, ba1), (wa2, ba2) = params["actor"]
    Hh = wv1.shape[1]          # 100
    A = wa2.shape[1]           # action_dim

    # Fused head weights: layer 1 concatenated, layer 2 zero-padded so each
    # head reads only its own half of h.
    wh1 = jnp.concatenate([wv1, wa1], axis=1)                               # [256, 200]
    bh1 = jnp.concatenate([bv1, ba1], axis=0)                               # [200]
    wh2a = jnp.concatenate([jnp.zeros((Hh, A), jnp.float32), wa2], axis=0)  # [200, A]
    wh2v = jnp.concatenate([wv2, jnp.zeros((Hh, 1), jnp.float32)], axis=0)  # [200, 1]

    probs, v = tail_forward(p6, w6_mat, b6, wh1, bh1, wh2a, ba2, wh2v, bv2, A)
    return probs, v


if __name__ == "__main__":
    key = jax.random.PRNGKey(0)
    action_dim = 3
    img_stack = 4
    batch = 2

    pkey, xkey = jax.random.split(key)
    params = init_params(pkey, action_dim, img_stack)
    # 96x96 is the smallest image for which the CNN reduces to 1x1 spatially,
    # as required by x.view(-1, 256) in the reference forward.
    x = jax.random.normal(xkey, (batch, img_stack, 96, 96), jnp.float32)

    probs, v = jax.jit(net_forward)(params, x)
    probs = jax.block_until_ready(probs)
    v = jax.block_until_ready(v)

    assert probs.shape == (batch, action_dim)
    assert v.shape == (batch, 1)
    assert jnp.allclose(jnp.sum(probs, axis=-1), 1.0, atol=1e-5)
    assert jnp.all(jnp.isfinite(v))
    print("KERNEL_OK")
</pallas_src>

<mosaic_0001>
module attributes {stable_mosaic.version = 11 : i64} {
  func.func @_matmul_bias_act_kernel(%arg0: i32, %arg1: memref<512x64xbf16, #tpu.memory_space<vmem>>, %arg2: memref<64x8xbf16, #tpu.memory_space<vmem>>, %arg3: memref<1x8xf32, #tpu.memory_space<vmem>>, %arg4: memref<512x8xbf16, #tpu.memory_space<vmem>>) attributes {dimension_semantics = [#tpu.dimension_semantics<parallel>], iteration_bounds = array<i64: 9>, scalar_prefetch = 0 : i64, scratch_operands = 0 : i64, tpu.core_type = #tpu.core_type<tc>, window_params = [{transform_indices = @transform_0, window_bounds = array<i64: 512, 64>}, {pipeline_mode = #tpu.pipeline_mode<synchronous>, transform_indices = @transform_1, window_bounds = array<i64: 64, 8>}, {pipeline_mode = #tpu.pipeline_mode<synchronous>, transform_indices = @transform_2, window_bounds = array<i64: 1, 8>}, {transform_indices = @transform_3, window_bounds = array<i64: 512, 8>}]} {
    %c0 = arith.constant 0 : index
    %c0_0 = arith.constant 0 : index
    %0 = vector.load %arg1[%c0, %c0_0] : memref<512x64xbf16, #tpu.memory_space<vmem>>, vector<512x64xbf16>
    %c0_1 = arith.constant 0 : index
    %c0_2 = arith.constant 0 : index
    %1 = vector.load %arg2[%c0_1, %c0_2] : memref<64x8xbf16, #tpu.memory_space<vmem>>, vector<64x8xbf16>
    %cst = arith.constant dense<0.000000e+00> : vector<512x8xf32>
    %2 = tpu.matmul %0, %1, %cst {dimension_numbers = #tpu.dot_dimension_numbers<[1], [0], [0], [1], [0, 0, 1, 1], [], []>} : vector<512x64xbf16>, vector<64x8xbf16>, vector<512x8xf32> -> vector<512x8xf32>
    %c0_3 = arith.constant 0 : index
    %c0_4 = arith.constant 0 : index
    %3 = vector.load %arg3[%c0_3, %c0_4] : memref<1x8xf32, #tpu.memory_space<vmem>>, vector<1x8xf32>
    %4 = vector.broadcast %3 : vector<1x8xf32> to vector<512x8xf32>
    %5 = arith.addf %2, %4 : vector<512x8xf32>
    %cst_5 = arith.constant 0.000000e+00 : f32
    %6 = vector.broadcast %cst_5 : f32 to vector<512x8xf32>
    %7 = arith.maximumf %5, %6 : vector<512x8xf32>
    %8 = arith.truncf %7 : vector<512x8xf32> to vector<512x8xbf16>
    %c0_6 = arith.constant 0 : index
    %c0_7 = arith.constant 0 : index
    %9 = vector.load %arg4[%c0_6, %c0_7] : memref<512x8xbf16, #tpu.memory_space<vmem>>, vector<512x8xbf16>
    tpu.vector_store %arg4[%c0_6, %c0_7], %8 {strides = array<i32>} : memref<512x8xbf16, #tpu.memory_space<vmem>>, vector<512x8xbf16>,
    return
  }
  func.func @transform_0(%arg0: i32) -> (i32, i32) {
    %c0_i32 = arith.constant 0 : i32
    %c0_i32_0 = arith.constant 0 : i32
    return %arg0, %c0_i32 : i32, i32
  }
  func.func @transform_1(%arg0: i32) -> (i32, i32) {
    %c0_i32 = arith.constant 0 : i32
    %c0_i32_0 = arith.constant 0 : i32
    %c0_i32_1 = arith.constant 0 : i32
    return %c0_i32, %c0_i32_0 : i32, i32
  }
  func.func @transform_2(%arg0: i32) -> (i32, i32) {
    %c0_i32 = arith.constant 0 : i32
    %c0_i32_0 = arith.constant 0 : i32
    %c0_i32_1 = arith.constant 0 : i32
    return %c0_i32, %c0_i32_0 : i32, i32
  }
  func.func @transform_3(%arg0: i32) -> (i32, i32) {
    %c0_i32 = arith.constant 0 : i32
    %c0_i32_0 = arith.constant 0 : i32
    return %arg0, %c0_i32 : i32, i32
  }
}

module attributes {stable_mosaic.version = 11 : i64} {
  func.func @_matmul_bias_act_kernel(%arg0: i32, %arg1: memref<512x72xbf16, #tpu.memory_space<vmem>>, %arg2: memref<72x16xbf16, #tpu.memory_space<vmem>>, %arg3: memref<1x16xf32, #tpu.memory_space<vmem>>, %arg4: memref<512x16xbf16, #tpu.memory_space<vmem>>) attributes {dimension_semantics = [#tpu.dimension_semantics<parallel>], iteration_bounds = array<i64: 3>, scalar_prefetch = 0 : i64, scratch_operands = 0 : i64, tpu.core_type = #tpu.core_type<tc>, window_params = [{transform_indices = @transform_0, window_bounds = array<i64: 512, 72>}, {pipeline_mode = #tpu.pipeline_mode<synchronous>, transform_indices = @transform_1, window_bounds = array<i64: 72, 16>}, {pipeline_mode = #tpu.pipeline_mode<synchronous>, transform_indices = @transform_2, window_bounds = array<i64: 1, 16>}, {transform_indices = @transform_3, window_bounds = array<i64: 512, 16>}]} {
    %c0 = arith.constant 0 : index
    %c0_0 = arith.constant 0 : index
    %0 = vector.load %arg1[%c0, %c0_0] : memref<512x72xbf16, #tpu.memory_space<vmem>>, vector<512x72xbf16>
    %c0_1 = arith.constant 0 : index
    %c0_2 = arith.constant 0 : index
    %1 = vector.load %arg2[%c0_1, %c0_2] : memref<72x16xbf16, #tpu.memory_space<vmem>>, vector<72x16xbf16>
    %cst = arith.constant dense<0.000000e+00> : vector<512x16xf32>
    %2 = tpu.matmul %0, %1, %cst {dimension_numbers = #tpu.dot_dimension_numbers<[1], [0], [0], [1], [0, 0, 1, 1], [], []>} : vector<512x72xbf16>, vector<72x16xbf16>, vector<512x16xf32> -> vector<512x16xf32>
    %c0_3 = arith.constant 0 : index
    %c0_4 = arith.constant 0 : index
    %3 = vector.load %arg3[%c0_3, %c0_4] : memref<1x16xf32, #tpu.memory_space<vmem>>, vector<1x16xf32>
    %4 = vector.broadcast %3 : vector<1x16xf32> to vector<512x16xf32>
    %5 = arith.addf %2, %4 : vector<512x16xf32>
    %cst_5 = arith.constant 0.000000e+00 : f32
    %6 = vector.broadcast %cst_5 : f32 to vector<512x16xf32>
    %7 = arith.maximumf %5, %6 : vector<512x16xf32>
    %8 = arith.truncf %7 : vector<512x16xf32> to vector<512x16xbf16>
    %c0_6 = arith.constant 0 : index
    %c0_7 = arith.constant 0 : index
    %9 = vector.load %arg4[%c0_6, %c0_7] : memref<512x16xbf16, #tpu.memory_space<vmem>>, vector<512x16xbf16>
    tpu.vector_store %arg4[%c0_6, %c0_7], %8 {strides = array<i32>} : memref<512x16xbf16, #tpu.memory_space<vmem>>, vector<512x16xbf16>,
    return
  }
  func.func @transform_0(%arg0: i32) -> (i32, i32) {
    %c0_i32 = arith.constant 0 : i32
    %c0_i32_0 = arith.constant 0 : i32
    return %arg0, %c0_i32 : i32, i32
  }
  func.func @transform_1(%arg0: i32) -> (i32, i32) {
    %c0_i32 = arith.constant 0 : i32
    %c0_i32_0 = arith.constant 0 : i32
    %c0_i32_1 = arith.constant 0 : i32
    return %c0_i32, %c0_i32_0 : i32, i32
  }
  func.func @transform_2(%arg0: i32) -> (i32, i32) {
    %c0_i32 = arith.constant 0 : i32
    %c0_i32_0 = arith.constant 0 : i32
    %c0_i32_1 = arith.constant 0 : i32
    return %c0_i32, %c0_i32_0 : i32, i32
  }
  func.func @transform_3(%arg0: i32) -> (i32, i32) {
    %c0_i32 = arith.constant 0 : i32
    %c0_i32_0 = arith.constant 0 : i32
    return %arg0, %c0_i32 : i32, i32
  }
}

module attributes {stable_mosaic.version = 11 : i64} {
  func.func @_matmul_bias_act_kernel(%arg0: i32, %arg1: memref<248x144xbf16, #tpu.memory_space<vmem>>, %arg2: memref<144x32xbf16, #tpu.memory_space<vmem>>, %arg3: memref<1x32xf32, #tpu.memory_space<vmem>>, %arg4: memref<248x32xbf16, #tpu.memory_space<vmem>>) attributes {dimension_semantics = [#tpu.dimension_semantics<parallel>], iteration_bounds = array<i64: 1>, scalar_prefetch = 0 : i64, scratch_operands = 0 : i64, tpu.core_type = #tpu.core_type<tc>, window_params = [{transform_indices = @transform_0, window_bounds = array<i64: 248, 144>}, {pipeline_mode = #tpu.pipeline_mode<synchronous>, transform_indices = @transform_1, window_bounds = array<i64: 144, 32>}, {pipeline_mode = #tpu.pipeline_mode<synchronous>, transform_indices = @transform_2, window_bounds = array<i64: 1, 32>}, {transform_indices = @transform_3, window_bounds = array<i64: 248, 32>}]} {
    %c0 = arith.constant 0 : index
    %c0_0 = arith.constant 0 : index
    %0 = vector.load %arg1[%c0, %c0_0] : memref<248x144xbf16, #tpu.memory_space<vmem>>, vector<248x144xbf16>
    %c0_1 = arith.constant 0 : index
    %c0_2 = arith.constant 0 : index
    %1 = vector.load %arg2[%c0_1, %c0_2] : memref<144x32xbf16, #tpu.memory_space<vmem>>, vector<144x32xbf16>
    %cst = arith.constant dense<0.000000e+00> : vector<248x32xf32>
    %2 = tpu.matmul %0, %1, %cst {dimension_numbers = #tpu.dot_dimension_numbers<[1], [0], [0], [1], [0, 0, 1, 1], [], []>} : vector<248x144xbf16>, vector<144x32xbf16>, vector<248x32xf32> -> vector<248x32xf32>
    %c0_3 = arith.constant 0 : index
    %c0_4 = arith.constant 0 : index
    %3 = vector.load %arg3[%c0_3, %c0_4] : memref<1x32xf32, #tpu.memory_space<vmem>>, vector<1x32xf32>
    %4 = vector.broadcast %3 : vector<1x32xf32> to vector<248x32xf32>
    %5 = arith.addf %2, %4 : vector<248x32xf32>
    %cst_5 = arith.constant 0.000000e+00 : f32
    %6 = vector.broadcast %cst_5 : f32 to vector<248x32xf32>
    %7 = arith.maximumf %5, %6 : vector<248x32xf32>
    %8 = arith.truncf %7 : vector<248x32xf32> to vector<248x32xbf16>
    %c0_6 = arith.constant 0 : index
    %c0_7 = arith.constant 0 : index
    %9 = vector.load %arg4[%c0_6, %c0_7] : memref<248x32xbf16, #tpu.memory_space<vmem>>, vector<248x32xbf16>
    tpu.vector_store %arg4[%c0_6, %c0_7], %8 {strides = array<i32>} : memref<248x32xbf16, #tpu.memory_space<vmem>>, vector<248x32xbf16>,
    return
  }
  func.func @transform_0(%arg0: i32) -> (i32, i32) {
    %c0_i32 = arith.constant 0 : i32
    %c0_i32_0 = arith.constant 0 : i32
    return %arg0, %c0_i32 : i32, i32
  }
  func.func @transform_1(%arg0: i32) -> (i32, i32) {
    %c0_i32 = arith.constant 0 : i32
    %c0_i32_0 = arith.constant 0 : i32
    %c0_i32_1 = arith.constant 0 : i32
    return %c0_i32, %c0_i32_0 : i32, i32
  }
  func.func @transform_2(%arg0: i32) -> (i32, i32) {
    %c0_i32 = arith.constant 0 : i32
    %c0_i32_0 = arith.constant 0 : i32
    %c0_i32_1 = arith.constant 0 : i32
    return %c0_i32, %c0_i32_0 : i32, i32
  }
  func.func @transform_3(%arg0: i32) -> (i32, i32) {
    %c0_i32 = arith.constant 0 : i32
    %c0_i32_0 = arith.constant 0 : i32
    return %arg0, %c0_i32 : i32, i32
  }
}

module attributes {stable_mosaic.version = 11 : i64} {
  func.func @_matmul_bias_act_kernel(%arg0: i32, %arg1: memref<56x288xbf16, #tpu.memory_space<vmem>>, %arg2: memref<288x64xbf16, #tpu.memory_space<vmem>>, %arg3: memref<1x64xf32, #tpu.memory_space<vmem>>, %arg4: memref<56x64xbf16, #tpu.memory_space<vmem>>) attributes {dimension_semantics = [#tpu.dimension_semantics<parallel>], iteration_bounds = array<i64: 1>, scalar_prefetch = 0 : i64, scratch_operands = 0 : i64, tpu.core_type = #tpu.core_type<tc>, window_params = [{transform_indices = @transform_0, window_bounds = array<i64: 56, 288>}, {pipeline_mode = #tpu.pipeline_mode<synchronous>, transform_indices = @transform_1, window_bounds = array<i64: 288, 64>}, {pipeline_mode = #tpu.pipeline_mode<synchronous>, transform_indices = @transform_2, window_bounds = array<i64: 1, 64>}, {transform_indices = @transform_3, window_bounds = array<i64: 56, 64>}]} {
    %c0 = arith.constant 0 : index
    %c0_0 = arith.constant 0 : index
    %0 = vector.load %arg1[%c0, %c0_0] : memref<56x288xbf16, #tpu.memory_space<vmem>>, vector<56x288xbf16>
    %c0_1 = arith.constant 0 : index
    %c0_2 = arith.constant 0 : index
    %1 = vector.load %arg2[%c0_1, %c0_2] : memref<288x64xbf16, #tpu.memory_space<vmem>>, vector<288x64xbf16>
    %cst = arith.constant dense<0.000000e+00> : vector<56x64xf32>
    %2 = tpu.matmul %0, %1, %cst {dimension_numbers = #tpu.dot_dimension_numbers<[1], [0], [0], [1], [0, 0, 1, 1], [], []>} : vector<56x288xbf16>, vector<288x64xbf16>, vector<56x64xf32> -> vector<56x64xf32>
    %c0_3 = arith.constant 0 : index
    %c0_4 = arith.constant 0 : index
    %3 = vector.load %arg3[%c0_3, %c0_4] : memref<1x64xf32, #tpu.memory_space<vmem>>, vector<1x64xf32>
    %4 = vector.broadcast %3 : vector<1x64xf32> to vector<56x64xf32>
    %5 = arith.addf %2, %4 : vector<56x64xf32>
    %cst_5 = arith.constant 0.000000e+00 : f32
    %6 = vector.broadcast %cst_5 : f32 to vector<56x64xf32>
    %7 = arith.maximumf %5, %6 : vector<56x64xf32>
    %8 = arith.truncf %7 : vector<56x64xf32> to vector<56x64xbf16>
    %c0_6 = arith.constant 0 : index
    %c0_7 = arith.constant 0 : index
    %9 = vector.load %arg4[%c0_6, %c0_7] : memref<56x64xbf16, #tpu.memory_space<vmem>>, vector<56x64xbf16>
    tpu.vector_store %arg4[%c0_6, %c0_7], %8 {strides = array<i32>} : memref<56x64xbf16, #tpu.memory_space<vmem>>, vector<56x64xbf16>,
    return
  }
  func.func @transform_0(%arg0: i32) -> (i32, i32) {
    %c0_i32 = arith.constant 0 : i32
    %c0_i32_0 = arith.constant 0 : i32
    return %arg0, %c0_i32 : i32, i32
  }
  func.func @transform_1(%arg0: i32) -> (i32, i32) {
    %c0_i32 = arith.constant 0 : i32
    %c0_i32_0 = arith.constant 0 : i32
    %c0_i32_1 = arith.constant 0 : i32
    return %c0_i32, %c0_i32_0 : i32, i32
  }
  func.func @transform_2(%arg0: i32) -> (i32, i32) {
    %c0_i32 = arith.constant 0 : i32
    %c0_i32_0 = arith.constant 0 : i32
    %c0_i32_1 = arith.constant 0 : i32
    return %c0_i32, %c0_i32_0 : i32, i32
  }
  func.func @transform_3(%arg0: i32) -> (i32, i32) {
    %c0_i32 = arith.constant 0 : i32
    %c0_i32_0 = arith.constant 0 : i32
    return %arg0, %c0_i32 : i32, i32
  }
}

module attributes {stable_mosaic.version = 11 : i64} {
  func.func @_matmul_bias_act_kernel(%arg0: i32, %arg1: memref<24x576xbf16, #tpu.memory_space<vmem>>, %arg2: memref<576x128xbf16, #tpu.memory_space<vmem>>, %arg3: memref<1x128xf32, #tpu.memory_space<vmem>>, %arg4: memref<24x128xbf16, #tpu.memory_space<vmem>>) attributes {dimension_semantics = [#tpu.dimension_semantics<parallel>], iteration_bounds = array<i64: 1>, scalar_prefetch = 0 : i64, scratch_operands = 0 : i64, tpu.core_type = #tpu.core_type<tc>, window_params = [{transform_indices = @transform_0, window_bounds = array<i64: 24, 576>}, {pipeline_mode = #tpu.pipeline_mode<synchronous>, transform_indices = @transform_1, window_bounds = array<i64: 576, 128>}, {pipeline_mode = #tpu.pipeline_mode<synchronous>, transform_indices = @transform_2, window_bounds = array<i64: 1, 128>}, {transform_indices = @transform_3, window_bounds = array<i64: 24, 128>}]} {
    %c0 = arith.constant 0 : index
    %c0_0 = arith.constant 0 : index
    %0 = vector.load %arg1[%c0, %c0_0] : memref<24x576xbf16, #tpu.memory_space<vmem>>, vector<24x576xbf16>
    %c0_1 = arith.constant 0 : index
    %c0_2 = arith.constant 0 : index
    %1 = vector.load %arg2[%c0_1, %c0_2] : memref<576x128xbf16, #tpu.memory_space<vmem>>, vector<576x128xbf16>
    %cst = arith.constant dense<0.000000e+00> : vector<24x128xf32>
    %2 = tpu.matmul %0, %1, %cst {dimension_numbers = #tpu.dot_dimension_numbers<[1], [0], [0], [1], [0, 0, 1, 1], [], []>} : vector<24x576xbf16>, vector<576x128xbf16>, vector<24x128xf32> -> vector<24x128xf32>
    %c0_3 = arith.constant 0 : index
    %c0_4 = arith.constant 0 : index
    %3 = vector.load %arg3[%c0_3, %c0_4] : memref<1x128xf32, #tpu.memory_space<vmem>>, vector<1x128xf32>
    %4 = vector.broadcast %3 : vector<1x128xf32> to vector<24x128xf32>
    %5 = arith.addf %2, %4 : vector<24x128xf32>
    %cst_5 = arith.constant 0.000000e+00 : f32
    %6 = vector.broadcast %cst_5 : f32 to vector<24x128xf32>
    %7 = arith.maximumf %5, %6 : vector<24x128xf32>
    %8 = arith.truncf %7 : vector<24x128xf32> to vector<24x128xbf16>
    %c0_6 = arith.constant 0 : index
    %c0_7 = arith.constant 0 : index
    %9 = vector.load %arg4[%c0_6, %c0_7] : memref<24x128xbf16, #tpu.memory_space<vmem>>, vector<24x128xbf16>
    tpu.vector_store %arg4[%c0_6, %c0_7], %8 {strides = array<i32>} : memref<24x128xbf16, #tpu.memory_space<vmem>>, vector<24x128xbf16>,
    return
  }
  func.func @transform_0(%arg0: i32) -> (i32, i32) {
    %c0_i32 = arith.constant 0 : i32
    %c0_i32_0 = arith.constant 0 : i32
    return %arg0, %c0_i32 : i32, i32
  }
  func.func @transform_1(%arg0: i32) -> (i32, i32) {
    %c0_i32 = arith.constant 0 : i32
    %c0_i32_0 = arith.constant 0 : i32
    %c0_i32_1 = arith.constant 0 : i32
    return %c0_i32, %c0_i32_0 : i32, i32
  }
  func.func @transform_2(%arg0: i32) -> (i32, i32) {
    %c0_i32 = arith.constant 0 : i32
    %c0_i32_0 = arith.constant 0 : i32
    %c0_i32_1 = arith.constant 0 : i32
    return %c0_i32, %c0_i32_0 : i32, i32
  }
  func.func @transform_3(%arg0: i32) -> (i32, i32) {
    %c0_i32 = arith.constant 0 : i32
    %c0_i32_0 = arith.constant 0 : i32
    return %arg0, %c0_i32 : i32, i32
  }
}

module attributes {stable_mosaic.version = 11 : i64} {
  func.func @_tail_kernel(%arg0: memref<2x1152xbf16, #tpu.memory_space<vmem>>, %arg1: memref<1152x256xbf16, #tpu.memory_space<vmem>>, %arg2: memref<1x256xf32, #tpu.memory_space<vmem>>, %arg3: memref<256x200xf32, #tpu.memory_space<vmem>>, %arg4: memref<1x200xf32, #tpu.memory_space<vmem>>, %arg5: memref<200x3xf32, #tpu.memory_space<vmem>>, %arg6: memref<1x3xf32, #tpu.memory_space<vmem>>, %arg7: memref<200x1xf32, #tpu.memory_space<vmem>>, %arg8: memref<1x1xf32, #tpu.memory_space<vmem>>, %arg9: memref<2x3xf32, #tpu.memory_space<vmem>>, %arg10: memref<2x1xf32, #tpu.memory_space<vmem>>) attributes {dimension_semantics = [], scalar_prefetch = 0 : i64, scratch_operands = 0 : i64, tpu.core_type = #tpu.core_type<tc>} {
    %c0 = arith.constant 0 : index
    %c0_0 = arith.constant 0 : index
    %0 = vector.load %arg0[%c0, %c0_0] : memref<2x1152xbf16, #tpu.memory_space<vmem>>, vector<2x1152xbf16>
    %c0_1 = arith.constant 0 : index
    %c0_2 = arith.constant 0 : index
    %1 = vector.load %arg1[%c0_1, %c0_2] : memref<1152x256xbf16, #tpu.memory_space<vmem>>, vector<1152x256xbf16>
    %cst = arith.constant dense<0.000000e+00> : vector<2x256xf32>
    %2 = tpu.matmul %0, %1, %cst {dimension_numbers = #tpu.dot_dimension_numbers<[1], [0], [0], [1], [0, 0, 1, 1], [], []>} : vector<2x1152xbf16>, vector<1152x256xbf16>, vector<2x256xf32> -> vector<2x256xf32>
    %c0_3 = arith.constant 0 : index
    %c0_4 = arith.constant 0 : index
    %3 = vector.load %arg2[%c0_3, %c0_4] : memref<1x256xf32, #tpu.memory_space<vmem>>, vector<1x256xf32>
    %4 = vector.broadcast %3 : vector<1x256xf32> to vector<2x256xf32>
    %5 = arith.addf %2, %4 : vector<2x256xf32>
    %cst_5 = arith.constant 0.000000e+00 : f32
    %6 = vector.broadcast %cst_5 : f32 to vector<2x256xf32>
    %7 = arith.maximumf %5, %6 : vector<2x256xf32>
    %c0_6 = arith.constant 0 : index
    %c0_7 = arith.constant 0 : index
    %8 = vector.load %arg3[%c0_6, %c0_7] : memref<256x200xf32, #tpu.memory_space<vmem>>, vector<256x200xf32>
    %cst_8 = arith.constant dense<0.000000e+00> : vector<2x200xf32>
    %9 = tpu.matmul %7, %8, %cst_8 {dimension_numbers = #tpu.dot_dimension_numbers<[1], [0], [0], [1], [0, 0, 1, 1], [], []>} : vector<2x256xf32>, vector<256x200xf32>, vector<2x200xf32> -> vector<2x200xf32>
    %c0_9 = arith.constant 0 : index
    %c0_10 = arith.constant 0 : index
    %10 = vector.load %arg4[%c0_9, %c0_10] : memref<1x200xf32, #tpu.memory_space<vmem>>, vector<1x200xf32>
    %11 = vector.broadcast %10 : vector<1x200xf32> to vector<2x200xf32>
    %12 = arith.addf %9, %11 : vector<2x200xf32>
    %cst_11 = arith.constant 0.000000e+00 : f32
    %13 = vector.broadcast %cst_11 : f32 to vector<2x200xf32>
    %14 = arith.maximumf %12, %13 : vector<2x200xf32>
    %c0_12 = arith.constant 0 : index
    %c0_13 = arith.constant 0 : index
    %15 = vector.load %arg5[%c0_12, %c0_13] : memref<200x3xf32, #tpu.memory_space<vmem>>, vector<200x3xf32>
    %cst_14 = arith.constant dense<0.000000e+00> : vector<2x3xf32>
    %16 = tpu.matmul %14, %15, %cst_14 {dimension_numbers = #tpu.dot_dimension_numbers<[1], [0], [0], [1], [0, 0, 1, 1], [], []>} : vector<2x200xf32>, vector<200x3xf32>, vector<2x3xf32> -> vector<2x3xf32>
    %c0_15 = arith.constant 0 : index
    %c0_16 = arith.constant 0 : index
    %17 = vector.load %arg6[%c0_15, %c0_16] : memref<1x3xf32, #tpu.memory_space<vmem>>, vector<1x3xf32>
    %18 = vector.broadcast %17 : vector<1x3xf32> to vector<2x3xf32>
    %19 = arith.addf %16, %18 : vector<2x3xf32>
    %c0_17 = arith.constant 0 : index
    %c0_18 = arith.constant 0 : index
    %20 = vector.load %arg7[%c0_17, %c0_18] : memref<200x1xf32, #tpu.memory_space<vmem>>, vector<200x1xf32>
    %cst_19 = arith.constant dense<0.000000e+00> : vector<2x1xf32>
    %21 = tpu.matmul %14, %20, %cst_19 {dimension_numbers = #tpu.dot_dimension_numbers<[1], [0], [0], [1], [0, 0, 1, 1], [], []>} : vector<2x200xf32>, vector<200x1xf32>, vector<2x1xf32> -> vector<2x1xf32>
    %c0_20 = arith.constant 0 : index
    %c0_21 = arith.constant 0 : index
    %22 = vector.load %arg8[%c0_20, %c0_21] : memref<1x1xf32, #tpu.memory_space<vmem>>, vector<1x1xf32>
    %23 = vector.broadcast %22 : vector<1x1xf32> to vector<2x1xf32>
    %24 = arith.addf %21, %23 : vector<2x1xf32>
    %cst_22 = arith.constant dense<0xFF800000> : vector<2xf32>
    %25 = vector.multi_reduction <maximumf>, %19, %cst_22 [1] : vector<2x3xf32> to vector<2xf32>
    %26 = vector.shape_cast %25 : vector<2xf32> to vector<2x1xf32>
    %27 = vector.broadcast %26 : vector<2x1xf32> to vector<2x3xf32>
    %28 = arith.subf %19, %27 : vector<2x3xf32>
    %29 = math.exp %28 : vector<2x3xf32>
    %cst_23 = arith.constant dense<0.000000e+00> : vector<2xf32>
    %30 = vector.multi_reduction <add>, %29, %cst_23 [1] : vector<2x3xf32> to vector<2xf32>
    %31 = vector.shape_cast %30 : vector<2xf32> to vector<2x1xf32>
    %32 = vector.broadcast %31 : vector<2x1xf32> to vector<2x3xf32>
    %33 = arith.divf %29, %32 : vector<2x3xf32>
    %c0_24 = arith.constant 0 : index
    %c0_25 = arith.constant 0 : index
    %34 = vector.load %arg9[%c0_24, %c0_25] : memref<2x3xf32, #tpu.memory_space<vmem>>, vector<2x3xf32>
    tpu.vector_store %arg9[%c0_24, %c0_25], %33 {strides = array<i32>} : memref<2x3xf32, #tpu.memory_space<vmem>>, vector<2x3xf32>,
    %c0_26 = arith.constant 0 : index
    %c0_27 = arith.constant 0 : index
    %35 = vector.load %arg10[%c0_26, %c0_27] : memref<2x1xf32, #tpu.memory_space<vmem>>, vector<2x1xf32>
    tpu.vector_store %arg10[%c0_26, %c0_27], %24 {strides = array<i32>} : memref<2x1xf32, #tpu.memory_space<vmem>>, vector<2x1xf32>,
    return
  }
}

</mosaic_0001>

<bundles_post_ra>
// kernel: net_forward.6
= control target key start
LH: loop header
LB: loop body
LE: loop exit
PB: predicated region body
PF: predicated region fallthrough
CT: control target
= control target key end

     0   :  { %s1661_s12 = smov 0   ;;  %s1962_s0 = inlined_call_operand.vmem [shape: bf16[4608,64], index: 0, kind: input, shape index: {}]   ;;  %s1963_s1 = inlined_call_operand.vmem [shape: bf16[64,8], index: 1, kind: input, shape index: {}]   ;;  %s1964_s2 = inlined_call_operand.vmem [shape: f32[1,8], index: 2, kind: input, shape index: {}]   ;;  %s1965_s3 = inlined_call_operand.vmem [shape: bf16[4608,8], index: 3, kind: output, shape index: {}]  }
   0x1 LB: > { %s1265_s13 = sadd.s32 4294967295, %s1639_s12   ;;  %p1269_p0 = scmp.ge.s32.totalorder %s1639_s12, 1  ;;  %s1639_s12 = sphi %s1661_s12, %s13_s12  }
   0x2   : > { %p138_p1 = scmp.lt.s32.totalorder %s1639_s12, 10 }
   0x4   : > { %p139_p2 = pnand %p1269_p0, %p138_p1 }
   0x5   : > { %v1597_v0 = vld [vmem:[%s1963_s1] sm:$0xff] (!%p139_p2)   ;;  %s1270_s16 = sshll.u32 (!%p139_p2), %s1265_s13, 6  ;;  %v1598_v1 = vld [vmem:[%s1963_s1 + $0x8] sm:$0xff] (!%p139_p2)   ;;  %v1599_v2 = vld [vmem:[%s1963_s1 + $0x10] sm:$0xff] (!%p139_p2)   ;;  %vm438_vm0 = vcmask (!%p139_p2), 523264   ;;  %vm1144_vm1 = vcmask (!%p139_p2), 60416  }
   0x6   : > { %142 = sbr.rel (%p139_p2) target bundleno = 300 (0x12c), region = 32  ;;  %p163_p3 = scmp.lt.s32.totalorder (!%p139_p2), %s1270_s16, 575  ;;  %1509 = vmatprep.subr.bf16.mxu0 (!%p139_p2), %v1597_v0  ;;  %1581 = vmatprep.subr.bf16.mxu1 (!%p139_p2), %v1597_v0  ;;  %v1600_v3 = vld [vmem:[%s1963_s1 + $0x18] sm:$0xff] (!%p139_p2)   ;;  %v1758_v36 = vld [vmem:[%s1964_s2] ss:$0 sm:$0xff] (!%p139_p2) }
   0x7   : > { %1510 = vmatpush3.bf16.msra.mxu0 (!%p139_p2), %v1597_v0  ;;  %1585 = vmatpush3.bf16.msra.mxu1 (!%p139_p2), %v1597_v0 }
   0x8   : > { %1511 = vmatprep.subr.bf16.mxu0 (!%p139_p2), %v1598_v1  ;;  %1582 = vmatprep.subr.bf16.mxu1 (!%p139_p2), %v1598_v1 }
   0xb   : > { %1512 = vmatpush3.bf16.msra.mxu0 (!%p139_p2), %v1598_v1  ;;  %1586 = vmatpush3.bf16.msra.mxu1 (!%p139_p2), %v1598_v1 }
   0xc   : > { %1513 = vmatprep.subr.bf16.mxu0 (!%p139_p2), %v1599_v2  ;;  %1583 = vmatprep.subr.bf16.mxu1 (!%p139_p2), %v1599_v2 }
   0xd   : > { %s1967_s16 = smov (!%p163_p3, %s1270_s16), 575 }
   0xe   : > { %s1271_s21 = sshll.u32 %s1967_s16, 2 }
   0xf   : > { %s1689_s26 = scalar_lea.vmem %s1962_s0, %s1271_s21  ;;  %1514 = vmatpush3.bf16.msra.mxu0 %v1599_v2  ;;  %1587 = vmatpush3.bf16.msra.mxu1 %v1599_v2  ;;  %s1771_s4 = scalar_lea.vmem %s1965_s3, %s1271_s21 }
  0x10   : > { %v1601_v4 = vld [vmem:[%s1689_s26] sm:$0xff]   ;;  %1515 = vmatprep.subr.bf16.mxu0 %v1600_v3  ;;  %1584 = vmatprep.subr.bf16.mxu1 %v1600_v3  ;;  %v1603_v6 = vld [vmem:[%s1689_s26 + $0x8] sm:$0xff]   ;;  %v1605_v8 = vld [vmem:[%s1689_s26 + $0x10] sm:$0xff]  }
  0x11   : > { %v1602_v5 = vld [vmem:[%s1689_s26 + $0x80] sm:$0xff]   ;;  %1517 = vmatprep.mubr.msk.bf16.mxu0 %vm438_vm0, %v1601_v4  ;;  %v1604_v7 = vld [vmem:[%s1689_s26 + $0x88] sm:$0xff]   ;;  %v1606_v9 = vld [vmem:[%s1689_s26 + $0x90] sm:$0xff]  }
  0x12   : > { %1549 = vmatprep.mubr.msk.bf16.mxu1 %vm438_vm0, %v1602_v5  ;;  %v1607_v10 = vld [vmem:[%s1689_s26 + $0x18] sm:$0xff]   ;;  %v1609_v12 = vld [vmem:[%s1689_s26 + $0x20] sm:$0xff]   ;;  %v1611_v14 = vld [vmem:[%s1689_s26 + $0x28] sm:$0xff]  }
  0x13   : > { %1516 = vmatpush3.bf16.msra.mxu0 %v1600_v3  ;;  %1588 = vmatpush3.bf16.msra.mxu1 %v1600_v3  ;;  %v1608_v11 = vld [vmem:[%s1689_s26 + $0x98] sm:$0xff]   ;;  %v1610_v13 = vld [vmem:[%s1689_s26 + $0xa0] sm:$0xff]   ;;  %v1612_v15 = vld [vmem:[%s1689_s26 + $0xa8] sm:$0xff]  }
  0x14   : > { %v1613_v16 = vld [vmem:[%s1689_s26 + $0x30] sm:$0xff]   ;;  %v1615_v18 = vld [vmem:[%s1689_s26 + $0x38] sm:$0xff]   ;;  %v1617_v20 = vld [vmem:[%s1689_s26 + $0x40] sm:$0xff]  }
  0x15   : > { %v1614_v17 = vld [vmem:[%s1689_s26 + $0xb0] sm:$0xff]   ;;  %v1616_v19 = vld [vmem:[%s1689_s26 + $0xb8] sm:$0xff]   ;;  %v1618_v21 = vld [vmem:[%s1689_s26 + $0xc0] sm:$0xff]  }
  0x16   : > { %1518 = vmatmul.mubr.msk.bf16.vlgmr.msra.gmra.mrb[0].mxu0 %vm438_vm0, %v1603_v6  ;;  %1550 = vmatmul.mubr.msk.bf16.vlgmr.msra.gmra.mrb[0].mxu1 %vm438_vm0, %v1604_v7  ;;  %v1619_v22 = vld [vmem:[%s1689_s26 + $0x48] sm:$0xff]   ;;  %v1621_v24 = vld [vmem:[%s1689_s26 + $0x50] sm:$0xff]   ;;  %v1623_v26 = vld [vmem:[%s1689_s26 + $0x58] sm:$0xff]  }
  0x17   : > { %1521 = vmatprep.mubr.msk.bf16.mxu0 %vm438_vm0, %v1605_v8  ;;  %1553 = vmatprep.mubr.msk.bf16.mxu1 %vm438_vm0, %v1606_v9  ;;  %v1620_v23 = vld [vmem:[%s1689_s26 + $0xc8] sm:$0xff]   ;;  %v1622_v25 = vld [vmem:[%s1689_s26 + $0xd0] sm:$0xff]   ;;  %v1624_v27 = vld [vmem:[%s1689_s26 + $0xd8] sm:$0xff]  }
  0x18   : > { %v1625_v28 = vld [vmem:[%s1689_s26 + $0x60] sm:$0xff]   ;;  %v1627_v30 = vld [vmem:[%s1689_s26 + $0x68] sm:$0xff]   ;;  %v1629_v32 = vld [vmem:[%s1689_s26 + $0x70] sm:$0xff]  }
  0x19   : > { %v1626_v29 = vld [vmem:[%s1689_s26 + $0xe0] sm:$0xff]   ;;  %v1628_v31 = vld [vmem:[%s1689_s26 + $0xe8] sm:$0xff]   ;;  %v1630_v33 = vld [vmem:[%s1689_s26 + $0xf0] sm:$0xff]  }
  0x1a   : > { %v1631_v34 = vld [vmem:[%s1689_s26 + $0x78] sm:$0xff]  }
  0x1b   : > { %v1632_v35 = vld [vmem:[%s1689_s26 + $0xf8] sm:$0xff]  }
  0x1e   : > { %1522 = vmatmul.mubr.msk.bf16.gmra.mrb[4].mxu0 %vm438_vm0, %v1607_v10  ;;  %1554 = vmatmul.mubr.msk.bf16.gmra.mrb[4].mxu1 %vm438_vm0, %v1608_v11 }
  0x1f   : > { %1525 = vmatprep.mubr.msk.bf16.mxu0 %vm438_vm0, %v1609_v12  ;;  %1557 = vmatprep.mubr.msk.bf16.mxu1 %vm438_vm0, %v1610_v13 }
  0x26   : > { %1526 = vmatmul.mubr.msk.bf16.gmra.mrb[8].mxu0 %vm438_vm0, %v1611_v14  ;;  %1558 = vmatmul.mubr.msk.bf16.gmra.mrb[8].mxu1 %vm438_vm0, %v1612_v15 }
  0x27   : > { %1529 = vmatprep.mubr.msk.bf16.mxu0 %vm438_vm0, %v1613_v16  ;;  %1561 = vmatprep.mubr.msk.bf16.mxu1 %vm438_vm0, %v1614_v17 }
  0x2e   : > { %1530 = vmatmul.mubr.msk.bf16.gmra.mrb[12].mxu0 %vm438_vm0, %v1615_v18  ;;  %1562 = vmatmul.mubr.msk.bf16.gmra.mrb[12].mxu1 %vm438_vm0, %v1616_v19 }
  0x2f   : > { %1533 = vmatprep.mubr.msk.bf16.mxu0 %vm438_vm0, %v1617_v20  ;;  %1565 = vmatprep.mubr.msk.bf16.mxu1 %vm438_vm0, %v1618_v21 }
  0x36   : > { %1534 = vmatmul.mubr.msk.bf16.gmra.mrb[16].mxu0 %vm438_vm0, %v1619_v22  ;;  %1566 = vmatmul.mubr.msk.bf16.gmra.mrb[16].mxu1 %vm438_vm0, %v1620_v23 }
  0x37   : > { %1537 = vmatprep.mubr.msk.bf16.mxu0 %vm438_vm0, %v1621_v24  ;;  %1569 = vmatprep.mubr.msk.bf16.mxu1 %vm438_vm0, %v1622_v25 }
  0x3e   : > { %1538 = vmatmul.mubr.msk.bf16.gmra.mrb[20].mxu0 %vm438_vm0, %v1623_v26  ;;  %1570 = vmatmul.mubr.msk.bf16.gmra.mrb[20].mxu1 %vm438_vm0, %v1624_v27 }
  0x3f   : > { %1541 = vmatprep.mubr.msk.bf16.mxu0 %vm438_vm0, %v1625_v28  ;;  %1573 = vmatprep.mubr.msk.bf16.mxu1 %vm438_vm0, %v1626_v29 }
  0x46   : > { %1542 = vmatmul.mubr.msk.bf16.gmra.mrb[24].mxu0 %vm438_vm0, %v1627_v30  ;;  %1574 = vmatmul.mubr.msk.bf16.gmra.mrb[24].mxu1 %vm438_vm0, %v1628_v31 }
  0x47   : > { %1545 = vmatprep.mubr.msk.bf16.mxu0 %vm438_vm0, %v1629_v32  ;;  %1577 = vmatprep.mubr.msk.bf16.mxu1 %vm438_vm0, %v1630_v33 }
  0x4e   : > { %1546 = vmatmul.mubr.msk.bf16.gmra.mrb[28].mxu0 %vm438_vm0, %v1631_v34  ;;  %1578 = vmatmul.mubr.msk.bf16.gmra.mrb[28].mxu1 %vm438_vm0, %v1632_v35 }
  0xe9   : > { %v1519_v37 = vpop.f32.mrb[0].mxu0  ;;  %v1551_v38 = vpop.f32.mrb[0].mxu1 }
  0xea   : > { %v578_v39 = vadd.f32 %v1519_v37, %v1758_v36  ;;  %v706_v40 = vadd.f32 %v1551_v38, %v1758_v36  ;;  %v569_v41 = vpop.f32.mrb[1].mxu0  ;;  %v697_v42 = vpop.f32.mrb[1].mxu1 }
  0xeb   : > { %v570_v43 = vadd.f32 %v1758_v36, %v569_v41  ;;  %v698_v44 = vadd.f32 %v1758_v36, %v697_v42  ;;  %v1520_v45 = vpop.f32.mrb[2].mxu0  ;;  %v1552_v46 = vpop.f32.mrb[2].mxu1 }
  0xec   : > { %v826_v47 = vmax.f32 %v578_v39, 0.0  ;;  %v858_v48 = vmax.f32 %v706_v40, 0.0  ;;  %v581_v49 = vadd.f32 %v1520_v45, %v1758_v36  ;;  %v709_v50 = vadd.f32 %v1552_v46, %v1758_v36  ;;  %v572_v51 = vpop.f32.mrb[3].mxu0  ;;  %v700_v52 = vpop.f32.mrb[3].mxu1 }
  0xed   : > { %v824_v53 = vmax.f32 %v570_v43, 0.0  ;;  %v856_v54 = vmax.f32 %v698_v44, 0.0  ;;  %v573_v55 = vadd.f32 %v1758_v36, %v572_v51  ;;  %v701_v56 = vadd.f32 %v1758_v36, %v700_v52 }
  0xee   : > { %v1411_v57 = vpack.c.bf16 %v826_v47, %v826_v47  ;;  %v1443_v58 = vpack.c.bf16 %v858_v48, %v858_v48  ;;  %v827_v59 = vmax.f32 %v581_v49, 0.0  ;;  %v859_v60 = vmax.f32 %v709_v50, 0.0 }
  0xef   : > { %v1409_v61 = vpack.c.bf16 %v824_v53, %v824_v53  ;;  %v1441_v62 = vpack.c.bf16 %v856_v54, %v856_v54  ;;  %v825_v63 = vmax.f32 %v573_v55, 0.0  ;;  %v857_v0 = vmax.f32 %v701_v56, 0.0 }
  0xf0   : > { %1147 = vst.msk [vmem:[%s1771_s4 + $0x8] sm:$0xf] %vm1144_vm1, %v1411_v57  ;;  %1179 = vst.msk [vmem:[%s1771_s4 + $0x88] sm:$0xf] %vm1144_vm1, %v1443_v58  ;;  %v1412_v1 = vpack.c.bf16 %v827_v59, %v827_v59  ;;  %v1444_v2 = vpack.c.bf16 %v859_v60, %v859_v60 }
  0xf1   : > { %1145 = vst.msk [vmem:[%s1771_s4] sm:$0xf] %vm1144_vm1, %v1409_v61  ;;  %1177 = vst.msk [vmem:[%s1771_s4 + $0x80] sm:$0xf] %vm1144_vm1, %v1441_v62  ;;  %v1410_v3 = vpack.c.bf16 %v825_v63, %v825_v63  ;;  %v1442_v4 = vpack.c.bf16 %v857_v0, %v857_v0  ;;  %v1523_v5 = vpop.f32.mrb[4].mxu0  ;;  %v1555_v6 = vpop.f32.mrb[4].mxu1 }
  0xf2   : > { %1148 = vst.msk [vmem:[%s1771_s4 + $0xc] sm:$0xf] %vm1144_vm1, %v1412_v1  ;;  %1180 = vst.msk [vmem:[%s1771_s4 + $0x8c] sm:$0xf] %vm1144_vm1, %v1444_v2  ;;  %v594_v7 = vadd.f32 %v1523_v5, %v1758_v36  ;;  %v722_v8 = vadd.f32 %v1555_v6, %v1758_v36  ;;  %v585_v9 = vpop.f32.mrb[5].mxu0  ;;  %v713_v10 = vpop.f32.mrb[5].mxu1 }
  0xf3   : > { %1146 = vst.msk [vmem:[%s1771_s4 + $0x4] sm:$0xf] %vm1144_vm1, %v1410_v3  ;;  %1178 = vst.msk [vmem:[%s1771_s4 + $0x84] sm:$0xf] %vm1144_vm1, %v1442_v4  ;;  %v586_v11 = vadd.f32 %v1758_v36, %v585_v9  ;;  %v714_v12 = vadd.f32 %v1758_v36, %v713_v10  ;;  %v1524_v13 = vpop.f32.mrb[6].mxu0  ;;  %v1556_v14 = vpop.f32.mrb[6].mxu1 }
  0xf4   : > { %v830_v15 = vmax.f32 %v594_v7, 0.0  ;;  %v862_v16 = vmax.f32 %v722_v8, 0.0  ;;  %v597_v17 = vadd.f32 %v1524_v13, %v1758_v36  ;;  %v725_v18 = vadd.f32 %v1556_v14, %v1758_v36  ;;  %v588_v19 = vpop.f32.mrb[7].mxu0  ;;  %v716_v20 = vpop.f32.mrb[7].mxu1 }
  0xf5   : > { %v828_v21 = vmax.f32 %v586_v11, 0.0  ;;  %v860_v22 = vmax.f32 %v714_v12, 0.0  ;;  %v589_v23 = vadd.f32 %v1758_v36, %v588_v19  ;;  %v717_v24 = vadd.f32 %v1758_v36, %v716_v20 }
  0xf6   : > { %v1415_v25 = vpack.c.bf16 %v830_v15, %v830_v15  ;;  %v1447_v26 = vpack.c.bf16 %v862_v16, %v862_v16  ;;  %v831_v27 = vmax.f32 %v597_v17, 0.0  ;;  %v863_v28 = vmax.f32 %v725_v18, 0.0 }
  0xf7   : > { %v1413_v29 = vpack.c.bf16 %v828_v21, %v828_v21  ;;  %v1445_v30 = vpack.c.bf16 %v860_v22, %v860_v22  ;;  %v829_v31 = vmax.f32 %v589_v23, 0.0  ;;  %v861_v32 = vmax.f32 %v717_v24, 0.0 }
  0xf8   : > { %1151 = vst.msk [vmem:[%s1771_s4 + $0x18] sm:$0xf] %vm1144_vm1, %v1415_v25  ;;  %1183 = vst.msk [vmem:[%s1771_s4 + $0x98] sm:$0xf] %vm1144_vm1, %v1447_v26  ;;  %v1416_v33 = vpack.c.bf16 %v831_v27, %v831_v27  ;;  %v1448_v34 = vpack.c.bf16 %v863_v28, %v863_v28 }
  0xf9   : > { %1149 = vst.msk [vmem:[%s1771_s4 + $0x10] sm:$0xf] %vm1144_vm1, %v1413_v29  ;;  %1181 = vst.msk [vmem:[%s1771_s4 + $0x90] sm:$0xf] %vm1144_vm1, %v1445_v30  ;;  %v1414_v35 = vpack.c.bf16 %v829_v31, %v829_v31  ;;  %v1446_v37 = vpack.c.bf16 %v861_v32, %v861_v32  ;;  %v1527_v38 = vpop.f32.mrb[8].mxu0  ;;  %v1559_v39 = vpop.f32.mrb[8].mxu1 }
  0xfa   : > { %1152 = vst.msk [vmem:[%s1771_s4 + $0x1c] sm:$0xf] %vm1144_vm1, %v1416_v33  ;;  %1184 = vst.msk [vmem:[%s1771_s4 + $0x9c] sm:$0xf] %vm1144_vm1, %v1448_v34  ;;  %v610_v40 = vadd.f32 %v1527_v38, %v1758_v36  ;;  %v738_v41 = vadd.f32 %v1559_v39, %v1758_v36  ;;  %v601_v42 = vpop.f32.mrb[9].mxu0  ;;  %v729_v43 = vpop.f32.mrb[9].mxu1 }
  0xfb   : > { %1150 = vst.msk [vmem:[%s1771_s4 + $0x14] sm:$0xf] %vm1144_vm1, %v1414_v35  ;;  %1182 = vst.msk [vmem:[%s1771_s4 + $0x94] sm:$0xf] %vm1144_vm1, %v1446_v37  ;;  %v602_v44 = vadd.f32 %v1758_v36, %v601_v42  ;;  %v730_v45 = vadd.f32 %v1758_v36, %v729_v43  ;;  %v1528_v46 = vpop.f32.mrb[10].mxu0  ;;  %v1560_v47 = vpop.f32.mrb[10].mxu1 }
  0xfc   : > { %v834_v48 = vmax.f32 %v610_v40, 0.0  ;;  %v866_v49 = vmax.f32 %v738_v41, 0.0  ;;  %v613_v50 = vadd.f32 %v1528_v46, %v1758_v36  ;;  %v741_v51 = vadd.f32 %v1560_v47, %v1758_v36  ;;  %v604_v52 = vpop.f32.mrb[11].mxu0  ;;  %v732_v53 = vpop.f32.mrb[11].mxu1 }
  0xfd   : > { %v832_v54 = vmax.f32 %v602_v44, 0.0  ;;  %v864_v55 = vmax.f32 %v730_v45, 0.0  ;;  %v605_v56 = vadd.f32 %v1758_v36, %v604_v52  ;;  %v733_v57 = vadd.f32 %v1758_v36, %v732_v53 }
  0xfe   : > { %v1419_v58 = vpack.c.bf16 %v834_v48, %v834_v48  ;;  %v1451_v59 = vpack.c.bf16 %v866_v49, %v866_v49  ;;  %v835_v60 = vmax.f32 %v613_v50, 0.0  ;;  %v867_v61 = vmax.f32 %v741_v51, 0.0 }
  0xff   : > { %v1417_v62 = vpack.c.bf16 %v832_v54, %v832_v54  ;;  %v1449_v63 = vpack.c.bf16 %v864_v55, %v864_v55  ;;  %v833_v0 = vmax.f32 %v605_v56, 0.0  ;;  %v865_v1 = vmax.f32 %v733_v57, 0.0 }
 0x100   : > { %1155 = vst.msk [vmem:[%s1771_s4 + $0x28] sm:$0xf] %vm1144_vm1, %v1419_v58  ;;  %1187 = vst.msk [vmem:[%s1771_s4 + $0xa8] sm:$0xf] %vm1144_vm1, %v1451_v59  ;;  %v1420_v2 = vpack.c.bf16 %v835_v60, %v835_v60  ;;  %v1452_v3 = vpack.c.bf16 %v867_v61, %v867_v61 }
 0x101   : > { %1153 = vst.msk [vmem:[%s1771_s4 + $0x20] sm:$0xf] %vm1144_vm1, %v1417_v62  ;;  %1185 = vst.msk [vmem:[%s1771_s4 + $0xa0] sm:$0xf] %vm1144_vm1, %v1449_v63  ;;  %v1418_v4 = vpack.c.bf16 %v833_v0, %v833_v0  ;;  %v1450_v5 = vpack.c.bf16 %v865_v1, %v865_v1  ;;  %v1531_v6 = vpop.f32.mrb[12].mxu0  ;;  %v1563_v7 = vpop.f32.mrb[12].mxu1 }
 0x102   : > { %1156 = vst.msk [vmem:[%s1771_s4 + $0x2c] sm:$0xf] %vm1144_vm1, %v1420_v2  ;;  %1188 = vst.msk [vmem:[%s1771_s4 + $0xac] sm:$0xf] %vm1144_vm1, %v1452_v3  ;;  %v626_v8 = vadd.f32 %v1531_v6, %v1758_v36  ;;  %v754_v9 = vadd.f32 %v1563_v7, %v1758_v36  ;;  %v617_v10 = vpop.f32.mrb[13].mxu0  ;;  %v745_v11 = vpop.f32.mrb[13].mxu1 }
 0x103   : > { %1154 = vst.msk [vmem:[%s1771_s4 + $0x24] sm:$0xf] %vm1144_vm1, %v1418_v4  ;;  %1186 = vst.msk [vmem:[%s1771_s4 + $0xa4] sm:$0xf] %vm1144_vm1, %v1450_v5  ;;  %v618_v12 = vadd.f32 %v1758_v36, %v617_v10  ;;  %v746_v13 = vadd.f32 %v1758_v36, %v745_v11  ;;  %v1532_v14 = vpop.f32.mrb[14].mxu0  ;;  %v1564_v15 = vpop.f32.mrb[14].mxu1 }
 0x104   : > { %v838_v16 = vmax.f32 %v626_v8, 0.0  ;;  %v870_v17 = vmax.f32 %v754_v9, 0.0  ;;  %v629_v18 = vadd.f32 %v1532_v14, %v1758_v36  ;;  %v757_v19 = vadd.f32 %v1564_v15, %v1758_v36  ;;  %v620_v20 = vpop.f32.mrb[15].mxu0  ;;  %v748_v21 = vpop.f32.mrb[15].mxu1 }
 0x105   : > { %v836_v22 = vmax.f32 %v618_v12, 0.0  ;;  %v868_v23 = vmax.f32 %v746_v13, 0.0  ;;  %v621_v24 = vadd.f32 %v1758_v36, %v620_v20  ;;  %v749_v25 = vadd.f32 %v1758_v36, %v748_v21 }
 0x106   : > { %v1423_v26 = vpack.c.bf16 %v838_v16, %v838_v16  ;;  %v1455_v27 = vpack.c.bf16 %v870_v17, %v870_v17  ;;  %v839_v28 = vmax.f32 %v629_v18, 0.0  ;;  %v871_v29 = vmax.f32 %v757_v19, 0.0 }
 0x107   : > { %v1421_v30 = vpack.c.bf16 %v836_v22, %v836_v22  ;;  %v1453_v31 = vpack.c.bf16 %v868_v23, %v868_v23  ;;  %v837_v32 = vmax.f32 %v621_v24, 0.0  ;;  %v869_v33 = vmax.f32 %v749_v25, 0.0 }
 0x108   : > { %1159 = vst.msk [vmem:[%s1771_s4 + $0x38] sm:$0xf] %vm1144_vm1, %v1423_v26  ;;  %1191 = vst.msk [vmem:[%s1771_s4 + $0xb8] sm:$0xf] %vm1144_vm1, %v1455_v27  ;;  %v1424_v34 = vpack.c.bf16 %v839_v28, %v839_v28  ;;  %v1456_v35 = vpack.c.bf16 %v871_v29, %v871_v29 }
 0x109   : > { %1157 = vst.msk [vmem:[%s1771_s4 + $0x30] sm:$0xf] %vm1144_vm1, %v1421_v30  ;;  %1189 = vst.msk [vmem:[%s1771_s4 + $0xb0] sm:$0xf] %vm1144_vm1, %v1453_v31  ;;  %v1422_v37 = vpack.c.bf16 %v837_v32, %v837_v32  ;;  %v1454_v38 = vpack.c.bf16 %v869_v33, %v869_v33  ;;  %v1535_v39 = vpop.f32.mrb[16].mxu0  ;;  %v1567_v40 = vpop.f32.mrb[16].mxu1 }
 0x10a   : > { %1160 = vst.msk [vmem:[%s1771_s4 + $0x3c] sm:$0xf] %vm1144_vm1, %v1424_v34  ;;  %1192 = vst.msk [vmem:[%s1771_s4 + $0xbc] sm:$0xf] %vm1144_vm1, %v1456_v35  ;;  %v642_v41 = vadd.f32 %v1535_v39, %v1758_v36  ;;  %v770_v42 = vadd.f32 %v1567_v40, %v1758_v36  ;;  %v633_v43 = vpop.f32.mrb[17].mxu0  ;;  %v761_v44 = vpop.f32.mrb[17].mxu1 }
 0x10b   : > { %1158 = vst.msk [vmem:[%s1771_s4 + $0x34] sm:$0xf] %vm1144_vm1, %v1422_v37  ;;  %1190 = vst.msk [vmem:[%s1771_s4 + $0xb4] sm:$0xf] %vm1144_vm1, %v1454_v38  ;;  %v634_v45 = vadd.f32 %v1758_v36, %v633_v43  ;;  %v762_v46 = vadd.f32 %v1758_v36, %v761_v44  ;;  %v1536_v47 = vpop.f32.mrb[18].mxu0  ;;  %v1568_v48 = vpop.f32.mrb[18].mxu1 }
 0x10c   : > { %v842_v49 = vmax.f32 %v642_v41, 0.0  ;;  %v874_v50 = vmax.f32 %v770_v42, 0.0  ;;  %v645_v51 = vadd.f32 %v1536_v47, %v1758_v36  ;;  %v773_v52 = vadd.f32 %v1568_v48, %v1758_v36  ;;  %v636_v53 = vpop.f32.mrb[19].mxu0  ;;  %v764_v54 = vpop.f32.mrb[19].mxu1 }
 0x10d   : > { %v840_v55 = vmax.f32 %v634_v45, 0.0  ;;  %v872_v56 = vmax.f32 %v762_v46, 0.0  ;;  %v637_v57 = vadd.f32 %v1758_v36, %v636_v53  ;;  %v765_v58 = vadd.f32 %v1758_v36, %v764_v54 }
 0x10e   : > { %v1427_v59 = vpack.c.bf16 %v842_v49, %v842_v49  ;;  %v1459_v60 = vpack.c.bf16 %v874_v50, %v874_v50  ;;  %v843_v61 = vmax.f32 %v645_v51, 0.0  ;;  %v875_v62 = vmax.f32 %v773_v52, 0.0 }
 0x10f   : > { %v1425_v63 = vpack.c.bf16 %v840_v55, %v840_v55  ;;  %v1457_v0 = vpack.c.bf16 %v872_v56, %v872_v56  ;;  %v841_v1 = vmax.f32 %v637_v57, 0.0  ;;  %v873_v2 = vmax.f32 %v765_v58, 0.0 }
 0x110   : > { %1163 = vst.msk [vmem:[%s1771_s4 + $0x48] sm:$0xf] %vm1144_vm1, %v1427_v59  ;;  %1195 = vst.msk [vmem:[%s1771_s4 + $0xc8] sm:$0xf] %vm1144_vm1, %v1459_v60  ;;  %v1428_v3 = vpack.c.bf16 %v843_v61, %v843_v61  ;;  %v1460_v4 = vpack.c.bf16 %v875_v62, %v875_v62 }
 0x111   : > { %1161 = vst.msk [vmem:[%s1771_s4 + $0x40] sm:$0xf] %vm1144_vm1, %v1425_v63  ;;  %1193 = vst.msk [vmem:[%s1771_s4 + $0xc0] sm:$0xf] %vm1144_vm1, %v1457_v0  ;;  %v1426_v5 = vpack.c.bf16 %v841_v1, %v841_v1  ;;  %v1458_v6 = vpack.c.bf16 %v873_v2, %v873_v2  ;;  %v1539_v7 = vpop.f32.mrb[20].mxu0  ;;  %v1571_v8 = vpop.f32.mrb[20].mxu1 }
 0x112   : > { %1164 = vst.msk [vmem:[%s1771_s4 + $0x4c] sm:$0xf] %vm1144_vm1, %v1428_v3  ;;  %1196 = vst.msk [vmem:[%s1771_s4 + $0xcc] sm:$0xf] %vm1144_vm1, %v1460_v4  ;;  %v658_v9 = vadd.f32 %v1539_v7, %v1758_v36  ;;  %v786_v10 = vadd.f32 %v1571_v8, %v1758_v36  ;;  %v649_v11 = vpop.f32.mrb[21].mxu0  ;;  %v777_v12 = vpop.f32.mrb[21].mxu1 }
 0x113   : > { %1162 = vst.msk [vmem:[%s1771_s4 + $0x44] sm:$0xf] %vm1144_vm1, %v1426_v5  ;;  %1194 = vst.msk [vmem:[%s1771_s4 + $0xc4] sm:$0xf] %vm1144_vm1, %v1458_v6  ;;  %v650_v13 = vadd.f32 %v1758_v36, %v649_v11  ;;  %v778_v14 = vadd.f32 %v1758_v36, %v777_v12  ;;  %v1540_v15 = vpop.f32.mrb[22].mxu0  ;;  %v1572_v16 = vpop.f32.mrb[22].mxu1 }
 0x114   : > { %v846_v17 = vmax.f32 %v658_v9, 0.0  ;;  %v878_v18 = vmax.f32 %v786_v10, 0.0  ;;  %v661_v19 = vadd.f32 %v1540_v15, %v1758_v36  ;;  %v789_v20 = vadd.f32 %v1572_v16, %v1758_v36  ;;  %v652_v21 = vpop.f32.mrb[23].mxu0  ;;  %v780_v22 = vpop.f32.mrb[23].mxu1 }
 0x115   : > { %v844_v23 = vmax.f32 %v650_v13, 0.0  ;;  %v876_v24 = vmax.f32 %v778_v14, 0.0  ;;  %v653_v25 = vadd.f32 %v1758_v36, %v652_v21  ;;  %v781_v26 = vadd.f32 %v1758_v36, %v780_v22 }
 0x116   : > { %v1431_v27 = vpack.c.bf16 %v846_v17, %v846_v17  ;;  %v1463_v28 = vpack.c.bf16 %v878_v18, %v878_v18  ;;  %v847_v29 = vmax.f32 %v661_v19, 0.0  ;;  %v879_v30 = vmax.f32 %v789_v20, 0.0 }
 0x117   : > { %v1429_v31 = vpack.c.bf16 %v844_v23, %v844_v23  ;;  %v1461_v32 = vpack.c.bf16 %v876_v24, %v876_v24  ;;  %v845_v33 = vmax.f32 %v653_v25, 0.0  ;;  %v877_v34 = vmax.f32 %v781_v26, 0.0 }
 0x118   : > { %1167 = vst.msk [vmem:[%s1771_s4 + $0x58] sm:$0xf] %vm1144_vm1, %v1431_v27  ;;  %1199 = vst.msk [vmem:[%s1771_s4 + $0xd8] sm:$0xf] %vm1144_vm1, %v1463_v28  ;;  %v1432_v35 = vpack.c.bf16 %v847_v29, %v847_v29  ;;  %v1464_v37 = vpack.c.bf16 %v879_v30, %v879_v30 }
 0x119   : > { %1165 = vst.msk [vmem:[%s1771_s4 + $0x50] sm:$0xf] %vm1144_vm1, %v1429_v31  ;;  %1197 = vst.msk [vmem:[%s1771_s4 + $0xd0] sm:$0xf] %vm1144_vm1, %v1461_v32  ;;  %v1430_v38 = vpack.c.bf16 %v845_v33, %v845_v33  ;;  %v1462_v39 = vpack.c.bf16 %v877_v34, %v877_v34  ;;  %v1543_v40 = vpop.f32.mrb[24].mxu0  ;;  %v1575_v41 = vpop.f32.mrb[24].mxu1 }
 0x11a   : > { %1168 = vst.msk [vmem:[%s1771_s4 + $0x5c] sm:$0xf] %vm1144_vm1, %v1432_v35  ;;  %1200 = vst.msk [vmem:[%s1771_s4 + $0xdc] sm:$0xf] %vm1144_vm1, %v1464_v37  ;;  %v674_v42 = vadd.f32 %v1543_v40, %v1758_v36  ;;  %v802_v43 = vadd.f32 %v1575_v41, %v1758_v36  ;;  %v665_v44 = vpop.f32.mrb[25].mxu0  ;;  %v793_v45 = vpop.f32.mrb[25].mxu1 }
 0x11b   : > { %1166 = vst.msk [vmem:[%s1771_s4 + $0x54] sm:$0xf] %vm1144_vm1, %v1430_v38  ;;  %1198 = vst.msk [vmem:[%s1771_s4 + $0xd4] sm:$0xf] %vm1144_vm1, %v1462_v39  ;;  %v666_v46 = vadd.f32 %v1758_v36, %v665_v44  ;;  %v794_v47 = vadd.f32 %v1758_v36, %v793_v45  ;;  %v1544_v48 = vpop.f32.mrb[26].mxu0  ;;  %v1576_v49 = vpop.f32.mrb[26].mxu1 }
 0x11c   : > { %v850_v50 = vmax.f32 %v674_v42, 0.0  ;;  %v882_v51 = vmax.f32 %v802_v43, 0.0  ;;  %v677_v52 = vadd.f32 %v1544_v48, %v1758_v36  ;;  %v805_v53 = vadd.f32 %v1576_v49, %v1758_v36  ;;  %v668_v54 = vpop.f32.mrb[27].mxu0  ;;  %v796_v55 = vpop.f32.mrb[27].mxu1 }
 0x11d   : > { %v848_v56 = vmax.f32 %v666_v46, 0.0  ;;  %v880_v57 = vmax.f32 %v794_v47, 0.0  ;;  %v669_v58 = vadd.f32 %v1758_v36, %v668_v54  ;;  %v797_v59 = vadd.f32 %v1758_v36, %v796_v55 }
 0x11e   : > { %v1435_v60 = vpack.c.bf16 %v850_v50, %v850_v50  ;;  %v1467_v61 = vpack.c.bf16 %v882_v51, %v882_v51  ;;  %v851_v62 = vmax.f32 %v677_v52, 0.0  ;;  %v883_v63 = vmax.f32 %v805_v53, 0.0 }
 0x11f   : > { %v1433_v0 = vpack.c.bf16 %v848_v56, %v848_v56  ;;  %v1465_v1 = vpack.c.bf16 %v880_v57, %v880_v57  ;;  %v849_v2 = vmax.f32 %v669_v58, 0.0  ;;  %v881_v3 = vmax.f32 %v797_v59, 0.0 }
 0x120   : > { %1171 = vst.msk [vmem:[%s1771_s4 + $0x68] sm:$0xf] %vm1144_vm1, %v1435_v60  ;;  %1203 = vst.msk [vmem:[%s1771_s4 + $0xe8] sm:$0xf] %vm1144_vm1, %v1467_v61  ;;  %v1436_v4 = vpack.c.bf16 %v851_v62, %v851_v62  ;;  %v1468_v5 = vpack.c.bf16 %v883_v63, %v883_v63 }
 0x121   : > { %1169 = vst.msk [vmem:[%s1771_s4 + $0x60] sm:$0xf] %vm1144_vm1, %v1433_v0  ;;  %1201 = vst.msk [vmem:[%s1771_s4 + $0xe0] sm:$0xf] %vm1144_vm1, %v1465_v1  ;;  %v1434_v6 = vpack.c.bf16 %v849_v2, %v849_v2  ;;  %v1466_v7 = vpack.c.bf16 %v881_v3, %v881_v3  ;;  %v1547_v8 = vpop.f32.mrb[28].mxu0  ;;  %v1579_v9 = vpop.f32.mrb[28].mxu1 }
 0x122   : > { %1172 = vst.msk [vmem:[%s1771_s4 + $0x6c] sm:$0xf] %vm1144_vm1, %v1436_v4  ;;  %1204 = vst.msk [vmem:[%s1771_s4 + $0xec] sm:$0xf] %vm1144_vm1, %v1468_v5  ;;  %v690_v10 = vadd.f32 %v1547_v8, %v1758_v36  ;;  %v818_v11 = vadd.f32 %v1579_v9, %v1758_v36  ;;  %v681_v12 = vpop.f32.mrb[29].mxu0  ;;  %v809_v13 = vpop.f32.mrb[29].mxu1 }
 0x123   : > { %1170 = vst.msk [vmem:[%s1771_s4 + $0x64] sm:$0xf] %vm1144_vm1, %v1434_v6  ;;  %1202 = vst.msk [vmem:[%s1771_s4 + $0xe4] sm:$0xf] %vm1144_vm1, %v1466_v7  ;;  %v682_v14 = vadd.f32 %v1758_v36, %v681_v12  ;;  %v810_v15 = vadd.f32 %v1758_v36, %v809_v13  ;;  %v1548_v16 = vpop.f32.mrb[30].mxu0  ;;  %v1580_v17 = vpop.f32.mrb[30].mxu1 }
 0x124   : > { %v854_v18 = vmax.f32 %v690_v10, 0.0  ;;  %v886_v19 = vmax.f32 %v818_v11, 0.0  ;;  %v693_v20 = vadd.f32 %v1548_v16, %v1758_v36  ;;  %v821_v21 = vadd.f32 %v1580_v17, %v1758_v36  ;;  %v684_v22 = vpop.f32.mrb[31].mxu0  ;;  %v812_v23 = vpop.f32.mrb[31].mxu1 }
 0x125   : > { %v852_v24 = vmax.f32 %v682_v14, 0.0  ;;  %v884_v25 = vmax.f32 %v810_v15, 0.0  ;;  %v685_v26 = vadd.f32 %v1758_v36, %v684_v22  ;;  %v813_v27 = vadd.f32 %v1758_v36, %v812_v23 }
 0x126   : > { %v1439_v28 = vpack.c.bf16 %v854_v18, %v854_v18  ;;  %v1471_v29 = vpack.c.bf16 %v886_v19, %v886_v19  ;;  %v855_v30 = vmax.f32 %v693_v20, 0.0  ;;  %v887_v31 = vmax.f32 %v821_v21, 0.0 }
 0x127   : > { %v1437_v32 = vpack.c.bf16 %v852_v24, %v852_v24  ;;  %v1469_v33 = vpack.c.bf16 %v884_v25, %v884_v25  ;;  %v853_v34 = vmax.f32 %v685_v26, 0.0  ;;  %v885_v35 = vmax.f32 %v813_v27, 0.0 }
 0x128   : > { %1175 = vst.msk [vmem:[%s1771_s4 + $0x78] sm:$0xf] %vm1144_vm1, %v1439_v28  ;;  %1207 = vst.msk [vmem:[%s1771_s4 + $0xf8] sm:$0xf] %vm1144_vm1, %v1471_v29  ;;  %v1440_v37 = vpack.c.bf16 %v855_v30, %v855_v30  ;;  %v1472_v38 = vpack.c.bf16 %v887_v31, %v887_v31 }
 0x129   : > { %1173 = vst.msk [vmem:[%s1771_s4 + $0x70] sm:$0xf] %vm1144_vm1, %v1437_v32  ;;  %1205 = vst.msk [vmem:[%s1771_s4 + $0xf0] sm:$0xf] %vm1144_vm1, %v1469_v33  ;;  %v1438_v36 = vpack.c.bf16 %v853_v34, %v853_v34  ;;  %v1470_v39 = vpack.c.bf16 %v885_v35, %v885_v35 }
 0x12a   : > { %1176 = vst.msk [vmem:[%s1771_s4 + $0x7c] sm:$0xf] %vm1144_vm1, %v1440_v37  ;;  %1208 = vst.msk [vmem:[%s1771_s4 + $0xfc] sm:$0xf] %vm1144_vm1, %v1472_v38 }
 0x12b   : > { %1174 = vst.msk [vmem:[%s1771_s4 + $0x74] sm:$0xf] %vm1144_vm1, %v1438_v36  ;;  %1206 = vst.msk [vmem:[%s1771_s4 + $0xf4] sm:$0xf] %vm1144_vm1, %v1470_v39 }
 0x12c PF: > { %s13_s12 = sadd.s32 1, %s1639_s12  }
 0x12d   : > { %p10_p4 = scmp.ge.s32.totalorder %s13_s12, 11  }
 0x12f   :  { %12 = sbr.rel (!%p10_p4) target bundleno = 1 (0x1), region = 62 }

// kernel: net_forward.7
= control target key start
LH: loop header
LB: loop body
LE: loop exit
PB: predicated region body
PF: predicated region fallthrough
CT: control target
= control target key end

     0   :  { %s1678_s12 = smov 0   ;;  %s1982_s0 = inlined_call_operand.vmem [shape: bf16[1536,72], index: 0, kind: input, shape index: {}]   ;;  %s1983_s1 = inlined_call_operand.vmem [shape: bf16[72,16], index: 1, kind: input, shape index: {}]   ;;  %s1984_s2 = inlined_call_operand.vmem [shape: f32[1,16], index: 2, kind: input, shape index: {}]   ;;  %s1985_s3 = inlined_call_operand.vmem [shape: bf16[1536,16], index: 3, kind: output, shape index: {}]  }
   0x1 LB: > { %s1273_s13 = sadd.s32 4294967295, %s1656_s12   ;;  %p1277_p0 = scmp.ge.s32.totalorder %s1656_s12, 1  ;;  %s1656_s12 = sphi %s1678_s12, %s13_s12  }
   0x2   : > { %p138_p1 = scmp.lt.s32.totalorder %s1656_s12, 4 }
   0x4   : > { %p139_p2 = pnand %p1277_p0, %p138_p1 }
   0x5   : > { %v1613_v0 = vld [vmem:[%s1983_s1] sm:$0xff] (!%p139_p2)   ;;  %v1614_v1 = vld [vmem:[%s1983_s1 + $0x8] sm:$0xff] (!%p139_p2)   ;;  %s1278_s18 = sshll.u32 (!%p139_p2), %s1273_s13, 6  ;;  %v1615_v2 = vld [vmem:[%s1983_s1 + $0x10] sm:$0xff] (!%p139_p2)   ;;  %vm442_vm0 = vcmask (!%p139_p2), 588800   ;;  %vm539_vm1 = vcmask (!%p139_p2), 1043456  }
   0x6   : > { %142 = sbr.rel (%p139_p2) target bundleno = 304 (0x130), region = 32  ;;  %1519 = vmatprep.subr.bf16.mxu0 (!%p139_p2), %v1613_v0  ;;  %1593 = vmatprep.subr.bf16.mxu1 (!%p139_p2), %v1613_v0  ;;  %p163_p3 = scmp.lt.s32.totalorder (!%p139_p2), %s1278_s18, 191  ;;  %v1616_v3 = vld [vmem:[%s1983_s1 + $0x18] sm:$0xff] (!%p139_p2)   ;;  %v1617_v6 = vld [vmem:[%s1983_s1 + $0x20] ss:$0 sps:$4 sm:$0xff] (!%p139_p2)   ;;  %vm1152_vm2 = vcmask (!%p139_p2), 125952  }
   0x7   : > { %1520 = vmatpush3.bf16.msra.mxu0 (!%p139_p2), %v1613_v0  ;;  %1598 = vmatpush3.bf16.msra.mxu1 (!%p139_p2), %v1613_v0  ;;  %v541_v7 = vsel (!%p139_p2), %vm539_vm1, %v1617_v6, 0  ;;  %v1778_v38 = vld [vmem:[%s1984_s2] ss:$0 sm:$0xff] (!%p139_p2) }
   0x8   : > { %1521 = vmatprep.subr.bf16.mxu0 (!%p139_p2), %v1614_v1  ;;  %1594 = vmatprep.subr.bf16.mxu1 (!%p139_p2), %v1614_v1 }
   0xb   : > { %1522 = vmatpush3.bf16.msra.mxu0 (!%p139_p2), %v1614_v1  ;;  %1599 = vmatpush3.bf16.msra.mxu1 (!%p139_p2), %v1614_v1 }
   0xc   : > { %1523 = vmatprep.subr.bf16.mxu0 (!%p139_p2), %v1615_v2  ;;  %1595 = vmatprep.subr.bf16.mxu1 (!%p139_p2), %v1615_v2 }
   0xd   : > { %s1987_s18 = smov (!%p163_p3, %s1278_s18), 191 }
   0xe   : > { %s1279_s21 = sshll.u32 %s1987_s18, 2 }
   0xf   : > { %s1706_s26 = scalar_lea.vmem %s1982_s0, %s1279_s21  ;;  %1524 = vmatpush3.bf16.msra.mxu0 %v1615_v2  ;;  %1600 = vmatpush3.bf16.msra.mxu1 %v1615_v2  ;;  %s1791_s6 = scalar_lea.vmem %s1985_s3, %s1279_s21 }
  0x10   : > { %v1618_v4 = vld [vmem:[%s1706_s26] sm:$0xff]   ;;  %1525 = vmatprep.subr.bf16.mxu0 %v1616_v3  ;;  %1596 = vmatprep.subr.bf16.mxu1 %v1616_v3  ;;  %v1620_v8 = vld [vmem:[%s1706_s26 + $0x8] sm:$0xff]   ;;  %v1622_v10 = vld [vmem:[%s1706_s26 + $0x10] sm:$0xff]  }
  0x11   : > { %v1619_v5 = vld [vmem:[%s1706_s26 + $0x80] sm:$0xff]   ;;  %1529 = vmatprep.mubr.msk.bf16.mxu0 %vm442_vm0, %v1618_v4  ;;  %v1621_v9 = vld [vmem:[%s1706_s26 + $0x88] sm:$0xff]   ;;  %v1623_v11 = vld [vmem:[%s1706_s26 + $0x90] sm:$0xff]  }
  0x12   : > { %1561 = vmatprep.mubr.msk.bf16.mxu1 %vm442_vm0, %v1619_v5  ;;  %v1624_v12 = vld [vmem:[%s1706_s26 + $0x18] sm:$0xff]   ;;  %v1626_v14 = vld [vmem:[%s1706_s26 + $0x20] sm:$0xff]   ;;  %v1628_v16 = vld [vmem:[%s1706_s26 + $0x28] sm:$0xff]  }
  0x13   : > { %1526 = vmatpush3.bf16.msra.mxu0 %v1616_v3  ;;  %1601 = vmatpush3.bf16.msra.mxu1 %v1616_v3  ;;  %v1625_v13 = vld [vmem:[%s1706_s26 + $0x98] sm:$0xff]   ;;  %v1627_v15 = vld [vmem:[%s1706_s26 + $0xa0] sm:$0xff]   ;;  %v1629_v17 = vld [vmem:[%s1706_s26 + $0xa8] sm:$0xff]  }
  0x14   : > { %1603 = vmatprep.subr.msk.bf16.mxu0 %vm539_vm1, %v1617_v6  ;;  %1604 = vmatprep.subr.msk.bf16.mxu1 %vm539_vm1, %v1617_v6  ;;  %v1630_v18 = vld [vmem:[%s1706_s26 + $0x30] sm:$0xff]   ;;  %v1632_v20 = vld [vmem:[%s1706_s26 + $0x38] sm:$0xff]   ;;  %v1634_v22 = vld [vmem:[%s1706_s26 + $0x40] sm:$0xff]  }
  0x15   : > { %v1631_v19 = vld [vmem:[%s1706_s26 + $0xb0] sm:$0xff]   ;;  %v1633_v21 = vld [vmem:[%s1706_s26 + $0xb8] sm:$0xff]   ;;  %v1635_v23 = vld [vmem:[%s1706_s26 + $0xc0] sm:$0xff]  }
  0x16   : > { %v1636_v24 = vld [vmem:[%s1706_s26 + $0x48] sm:$0xff]   ;;  %v1638_v26 = vld [vmem:[%s1706_s26 + $0x50] sm:$0xff]   ;;  %v1640_v28 = vld [vmem:[%s1706_s26 + $0x58] sm:$0xff]  }
  0x17   : > { %1528 = vmatpush3.bf16.msra.mxu0 %v541_v7  ;;  %1602 = vmatpush3.bf16.msra.mxu1 %v541_v7  ;;  %v1637_v25 = vld [vmem:[%s1706_s26 + $0xc8] sm:$0xff]   ;;  %v1639_v27 = vld [vmem:[%s1706_s26 + $0xd0] sm:$0xff]   ;;  %v1641_v29 = vld [vmem:[%s1706_s26 + $0xd8] sm:$0xff]  }
  0x18   : > { %v1642_v30 = vld [vmem:[%s1706_s26 + $0x60] sm:$0xff]   ;;  %v1644_v32 = vld [vmem:[%s1706_s26 + $0x68] sm:$0xff]   ;;  %v1646_v34 = vld [vmem:[%s1706_s26 + $0x70] sm:$0xff]  }
  0x19   : > { %v1643_v31 = vld [vmem:[%s1706_s26 + $0xe0] sm:$0xff]   ;;  %v1645_v33 = vld [vmem:[%s1706_s26 + $0xe8] sm:$0xff]   ;;  %v1647_v35 = vld [vmem:[%s1706_s26 + $0xf0] sm:$0xff]  }
  0x1a   : > { %1530 = vmatmul.mubr.msk.bf16.vlgmr.msra.gmra.mrb[0].mxu0 %vm442_vm0, %v1620_v8  ;;  %1562 = vmatmul.mubr.msk.bf16.vlgmr.msra.gmra.mrb[0].mxu1 %vm442_vm0, %v1621_v9  ;;  %v1648_v36 = vld [vmem:[%s1706_s26 + $0x78] sm:$0xff]  }
  0x1b   : > { %1533 = vmatprep.mubr.msk.bf16.mxu0 %vm442_vm0, %v1622_v10  ;;  %1565 = vmatprep.mubr.msk.bf16.mxu1 %vm442_vm0, %v1623_v11  ;;  %v1649_v37 = vld [vmem:[%s1706_s26 + $0xf8] sm:$0xff]  }
  0x22   : > { %1534 = vmatmul.mubr.msk.bf16.gmra.mrb[4].mxu0 %vm442_vm0, %v1624_v12  ;;  %1566 = vmatmul.mubr.msk.bf16.gmra.mrb[4].mxu1 %vm442_vm0, %v1625_v13 }
  0x23   : > { %1537 = vmatprep.mubr.msk.bf16.mxu0 %vm442_vm0, %v1626_v14  ;;  %1569 = vmatprep.mubr.msk.bf16.mxu1 %vm442_vm0, %v1627_v15 }
  0x2a   : > { %1538 = vmatmul.mubr.msk.bf16.gmra.mrb[8].mxu0 %vm442_vm0, %v1628_v16  ;;  %1570 = vmatmul.mubr.msk.bf16.gmra.mrb[8].mxu1 %vm442_vm0, %v1629_v17 }
  0x2b   : > { %1541 = vmatprep.mubr.msk.bf16.mxu0 %vm442_vm0, %v1630_v18  ;;  %1573 = vmatprep.mubr.msk.bf16.mxu1 %vm442_vm0, %v1631_v19 }
  0x32   : > { %1542 = vmatmul.mubr.msk.bf16.gmra.mrb[12].mxu0 %vm442_vm0, %v1632_v20  ;;  %1574 = vmatmul.mubr.msk.bf16.gmra.mrb[12].mxu1 %vm442_vm0, %v1633_v21 }
  0x33   : > { %1545 = vmatprep.mubr.msk.bf16.mxu0 %vm442_vm0, %v1634_v22  ;;  %1577 = vmatprep.mubr.msk.bf16.mxu1 %vm442_vm0, %v1635_v23 }
  0x3a   : > { %1546 = vmatmul.mubr.msk.bf16.gmra.mrb[16].mxu0 %vm442_vm0, %v1636_v24  ;;  %1578 = vmatmul.mubr.msk.bf16.gmra.mrb[16].mxu1 %vm442_vm0, %v1637_v25 }
  0x3b   : > { %1549 = vmatprep.mubr.msk.bf16.mxu0 %vm442_vm0, %v1638_v26  ;;  %1581 = vmatprep.mubr.msk.bf16.mxu1 %vm442_vm0, %v1639_v27 }
  0x42   : > { %1550 = vmatmul.mubr.msk.bf16.gmra.mrb[20].mxu0 %vm442_vm0, %v1640_v28  ;;  %1582 = vmatmul.mubr.msk.bf16.gmra.mrb[20].mxu1 %vm442_vm0, %v1641_v29 }
  0x43   : > { %1553 = vmatprep.mubr.msk.bf16.mxu0 %vm442_vm0, %v1642_v30  ;;  %1585 = vmatprep.mubr.msk.bf16.mxu1 %vm442_vm0, %v1643_v31 }
  0x4a   : > { %1554 = vmatmul.mubr.msk.bf16.gmra.mrb[24].mxu0 %vm442_vm0, %v1644_v32  ;;  %1586 = vmatmul.mubr.msk.bf16.gmra.mrb[24].mxu1 %vm442_vm0, %v1645_v33 }
  0x4b   : > { %1557 = vmatprep.mubr.msk.bf16.mxu0 %vm442_vm0, %v1646_v34  ;;  %1589 = vmatprep.mubr.msk.bf16.mxu1 %vm442_vm0, %v1647_v35 }
  0x52   : > { %1558 = vmatmul.mubr.msk.bf16.gmra.mrb[28].mxu0 %vm442_vm0, %v1648_v36  ;;  %1590 = vmatmul.mubr.msk.bf16.gmra.mrb[28].mxu1 %vm442_vm0, %v1649_v37 }
  0xed   : > { %v1531_v39 = vpop.f32.mrb[0].mxu0  ;;  %v1563_v40 = vpop.f32.mrb[0].mxu1 }
  0xee   : > { %v586_v41 = vadd.f32 %v1531_v39, %v1778_v38  ;;  %v714_v42 = vadd.f32 %v1563_v40, %v1778_v38  ;;  %v577_v43 = vpop.f32.mrb[1].mxu0  ;;  %v705_v44 = vpop.f32.mrb[1].mxu1 }
  0xef   : > { %v578_v45 = vadd.f32 %v1778_v38, %v577_v43  ;;  %v706_v46 = vadd.f32 %v1778_v38, %v705_v44  ;;  %v1532_v47 = vpop.f32.mrb[2].mxu0  ;;  %v1564_v48 = vpop.f32.mrb[2].mxu1 }
  0xf0   : > { %v834_v49 = vmax.f32 %v586_v41, 0.0  ;;  %v866_v50 = vmax.f32 %v714_v42, 0.0  ;;  %v589_v51 = vadd.f32 %v1532_v47, %v1778_v38  ;;  %v717_v52 = vadd.f32 %v1564_v48, %v1778_v38  ;;  %v580_v53 = vpop.f32.mrb[3].mxu0  ;;  %v708_v54 = vpop.f32.mrb[3].mxu1 }
  0xf1   : > { %v832_v55 = vmax.f32 %v578_v45, 0.0  ;;  %v864_v56 = vmax.f32 %v706_v46, 0.0  ;;  %v581_v57 = vadd.f32 %v1778_v38, %v580_v53  ;;  %v709_v58 = vadd.f32 %v1778_v38, %v708_v54 }
  0xf2   : > { %v1420_v59 = vpack.c.bf16 %v834_v49, %v834_v49  ;;  %v1452_v60 = vpack.c.bf16 %v866_v50, %v866_v50  ;;  %v835_v61 = vmax.f32 %v589_v51, 0.0  ;;  %v867_v62 = vmax.f32 %v717_v52, 0.0 }
  0xf3   : > { %v1418_v63 = vpack.c.bf16 %v832_v55, %v832_v55  ;;  %v1450_v0 = vpack.c.bf16 %v864_v56, %v864_v56  ;;  %v833_v1 = vmax.f32 %v581_v57, 0.0  ;;  %v865_v2 = vmax.f32 %v709_v58, 0.0 }
  0xf4   : > { %1155 = vst.msk [vmem:[%s1791_s6 + $0x8] sm:$0xf] %vm1152_vm2, %v1420_v59  ;;  %1187 = vst.msk [vmem:[%s1791_s6 + $0x88] sm:$0xf] %vm1152_vm2, %v1452_v60  ;;  %v1421_v3 = vpack.c.bf16 %v835_v61, %v835_v61  ;;  %v1453_v4 = vpack.c.bf16 %v867_v62, %v867_v62 }
  0xf5   : > { %1153 = vst.msk [vmem:[%s1791_s6] sm:$0xf] %vm1152_vm2, %v1418_v63  ;;  %1185 = vst.msk [vmem:[%s1791_s6 + $0x80] sm:$0xf] %vm1152_vm2, %v1450_v0  ;;  %v1419_v5 = vpack.c.bf16 %v833_v1, %v833_v1  ;;  %v1451_v6 = vpack.c.bf16 %v865_v2, %v865_v2  ;;  %v1535_v7 = vpop.f32.mrb[4].mxu0  ;;  %v1567_v8 = vpop.f32.mrb[4].mxu1 }
  0xf6   : > { %1156 = vst.msk [vmem:[%s1791_s6 + $0xc] sm:$0xf] %vm1152_vm2, %v1421_v3  ;;  %1188 = vst.msk [vmem:[%s1791_s6 + $0x8c] sm:$0xf] %vm1152_vm2, %v1453_v4  ;;  %v602_v9 = vadd.f32 %v1535_v7, %v1778_v38  ;;  %v730_v10 = vadd.f32 %v1567_v8, %v1778_v38  ;;  %v593_v11 = vpop.f32.mrb[5].mxu0  ;;  %v721_v12 = vpop.f32.mrb[5].mxu1 }
  0xf7   : > { %1154 = vst.msk [vmem:[%s1791_s6 + $0x4] sm:$0xf] %vm1152_vm2, %v1419_v5  ;;  %1186 = vst.msk [vmem:[%s1791_s6 + $0x84] sm:$0xf] %vm1152_vm2, %v1451_v6  ;;  %v594_v13 = vadd.f32 %v1778_v38, %v593_v11  ;;  %v722_v14 = vadd.f32 %v1778_v38, %v721_v12  ;;  %v1536_v15 = vpop.f32.mrb[6].mxu0  ;;  %v1568_v16 = vpop.f32.mrb[6].mxu1 }
  0xf8   : > { %v838_v17 = vmax.f32 %v602_v9, 0.0  ;;  %v870_v18 = vmax.f32 %v730_v10, 0.0  ;;  %v605_v19 = vadd.f32 %v1536_v15, %v1778_v38  ;;  %v733_v20 = vadd.f32 %v1568_v16, %v1778_v38  ;;  %v596_v21 = vpop.f32.mrb[7].mxu0  ;;  %v724_v22 = vpop.f32.mrb[7].mxu1 }
  0xf9   : > { %v836_v23 = vmax.f32 %v594_v13, 0.0  ;;  %v868_v24 = vmax.f32 %v722_v14, 0.0  ;;  %v597_v25 = vadd.f32 %v1778_v38, %v596_v21  ;;  %v725_v26 = vadd.f32 %v1778_v38, %v724_v22 }
  0xfa   : > { %v1424_v27 = vpack.c.bf16 %v838_v17, %v838_v17  ;;  %v1456_v28 = vpack.c.bf16 %v870_v18, %v870_v18  ;;  %v839_v29 = vmax.f32 %v605_v19, 0.0  ;;  %v871_v30 = vmax.f32 %v733_v20, 0.0 }
  0xfb   : > { %v1422_v31 = vpack.c.bf16 %v836_v23, %v836_v23  ;;  %v1454_v32 = vpack.c.bf16 %v868_v24, %v868_v24  ;;  %v837_v33 = vmax.f32 %v597_v25, 0.0  ;;  %v869_v34 = vmax.f32 %v725_v26, 0.0 }
  0xfc   : > { %1159 = vst.msk [vmem:[%s1791_s6 + $0x18] sm:$0xf] %vm1152_vm2, %v1424_v27  ;;  %1191 = vst.msk [vmem:[%s1791_s6 + $0x98] sm:$0xf] %vm1152_vm2, %v1456_v28  ;;  %v1425_v35 = vpack.c.bf16 %v839_v29, %v839_v29  ;;  %v1457_v36 = vpack.c.bf16 %v871_v30, %v871_v30 }
  0xfd   : > { %1157 = vst.msk [vmem:[%s1791_s6 + $0x10] sm:$0xf] %vm1152_vm2, %v1422_v31  ;;  %1189 = vst.msk [vmem:[%s1791_s6 + $0x90] sm:$0xf] %vm1152_vm2, %v1454_v32  ;;  %v1423_v37 = vpack.c.bf16 %v837_v33, %v837_v33  ;;  %v1455_v39 = vpack.c.bf16 %v869_v34, %v869_v34  ;;  %v1539_v40 = vpop.f32.mrb[8].mxu0  ;;  %v1571_v41 = vpop.f32.mrb[8].mxu1 }
  0xfe   : > { %1160 = vst.msk [vmem:[%s1791_s6 + $0x1c] sm:$0xf] %vm1152_vm2, %v1425_v35  ;;  %1192 = vst.msk [vmem:[%s1791_s6 + $0x9c] sm:$0xf] %vm1152_vm2, %v1457_v36  ;;  %v618_v42 = vadd.f32 %v1539_v40, %v1778_v38  ;;  %v746_v43 = vadd.f32 %v1571_v41, %v1778_v38  ;;  %v609_v44 = vpop.f32.mrb[9].mxu0  ;;  %v737_v45 = vpop.f32.mrb[9].mxu1 }
  0xff   : > { %1158 = vst.msk [vmem:[%s1791_s6 + $0x14] sm:$0xf] %vm1152_vm2, %v1423_v37  ;;  %1190 = vst.msk [vmem:[%s1791_s6 + $0x94] sm:$0xf] %vm1152_vm2, %v1455_v39  ;;  %v610_v46 = vadd.f32 %v1778_v38, %v609_v44  ;;  %v738_v47 = vadd.f32 %v1778_v38, %v737_v45  ;;  %v1540_v48 = vpop.f32.mrb[10].mxu0  ;;  %v1572_v49 = vpop.f32.mrb[10].mxu1 }
 0x100   : > { %v842_v50 = vmax.f32 %v618_v42, 0.0  ;;  %v874_v51 = vmax.f32 %v746_v43, 0.0  ;;  %v621_v52 = vadd.f32 %v1540_v48, %v1778_v38  ;;  %v749_v53 = vadd.f32 %v1572_v49, %v1778_v38  ;;  %v612_v54 = vpop.f32.mrb[11].mxu0  ;;  %v740_v55 = vpop.f32.mrb[11].mxu1 }
 0x101   : > { %v840_v56 = vmax.f32 %v610_v46, 0.0  ;;  %v872_v57 = vmax.f32 %v738_v47, 0.0  ;;  %v613_v58 = vadd.f32 %v1778_v38, %v612_v54  ;;  %v741_v59 = vadd.f32 %v1778_v38, %v740_v55 }
 0x102   : > { %v1428_v60 = vpack.c.bf16 %v842_v50, %v842_v50  ;;  %v1460_v61 = vpack.c.bf16 %v874_v51, %v874_v51  ;;  %v843_v62 = vmax.f32 %v621_v52, 0.0  ;;  %v875_v63 = vmax.f32 %v749_v53, 0.0 }
 0x103   : > { %v1426_v0 = vpack.c.bf16 %v840_v56, %v840_v56  ;;  %v1458_v1 = vpack.c.bf16 %v872_v57, %v872_v57  ;;  %v841_v2 = vmax.f32 %v613_v58, 0.0  ;;  %v873_v3 = vmax.f32 %v741_v59, 0.0 }
 0x104   : > { %1163 = vst.msk [vmem:[%s1791_s6 + $0x28] sm:$0xf] %vm1152_vm2, %v1428_v60  ;;  %1195 = vst.msk [vmem:[%s1791_s6 + $0xa8] sm:$0xf] %vm1152_vm2, %v1460_v61  ;;  %v1429_v4 = vpack.c.bf16 %v843_v62, %v843_v62  ;;  %v1461_v5 = vpack.c.bf16 %v875_v63, %v875_v63 }
 0x105   : > { %1161 = vst.msk [vmem:[%s1791_s6 + $0x20] sm:$0xf] %vm1152_vm2, %v1426_v0  ;;  %1193 = vst.msk [vmem:[%s1791_s6 + $0xa0] sm:$0xf] %vm1152_vm2, %v1458_v1  ;;  %v1427_v6 = vpack.c.bf16 %v841_v2, %v841_v2  ;;  %v1459_v7 = vpack.c.bf16 %v873_v3, %v873_v3  ;;  %v1543_v8 = vpop.f32.mrb[12].mxu0  ;;  %v1575_v9 = vpop.f32.mrb[12].mxu1 }
 0x106   : > { %1164 = vst.msk [vmem:[%s1791_s6 + $0x2c] sm:$0xf] %vm1152_vm2, %v1429_v4  ;;  %1196 = vst.msk [vmem:[%s1791_s6 + $0xac] sm:$0xf] %vm1152_vm2, %v1461_v5  ;;  %v634_v10 = vadd.f32 %v1543_v8, %v1778_v38  ;;  %v762_v11 = vadd.f32 %v1575_v9, %v1778_v38  ;;  %v625_v12 = vpop.f32.mrb[13].mxu0  ;;  %v753_v13 = vpop.f32.mrb[13].mxu1 }
 0x107   : > { %1162 = vst.msk [vmem:[%s1791_s6 + $0x24] sm:$0xf] %vm1152_vm2, %v1427_v6  ;;  %1194 = vst.msk [vmem:[%s1791_s6 + $0xa4] sm:$0xf] %vm1152_vm2, %v1459_v7  ;;  %v626_v14 = vadd.f32 %v1778_v38, %v625_v12  ;;  %v754_v15 = vadd.f32 %v1778_v38, %v753_v13  ;;  %v1544_v16 = vpop.f32.mrb[14].mxu0  ;;  %v1576_v17 = vpop.f32.mrb[14].mxu1 }
 0x108   : > { %v846_v18 = vmax.f32 %v634_v10, 0.0  ;;  %v878_v19 = vmax.f32 %v762_v11, 0.0  ;;  %v637_v20 = vadd.f32 %v1544_v16, %v1778_v38  ;;  %v765_v21 = vadd.f32 %v1576_v17, %v1778_v38  ;;  %v628_v22 = vpop.f32.mrb[15].mxu0  ;;  %v756_v23 = vpop.f32.mrb[15].mxu1 }
 0x109   : > { %v844_v24 = vmax.f32 %v626_v14, 0.0  ;;  %v876_v25 = vmax.f32 %v754_v15, 0.0  ;;  %v629_v26 = vadd.f32 %v1778_v38, %v628_v22  ;;  %v757_v27 = vadd.f32 %v1778_v38, %v756_v23 }
 0x10a   : > { %v1432_v28 = vpack.c.bf16 %v846_v18, %v846_v18  ;;  %v1464_v29 = vpack.c.bf16 %v878_v19, %v878_v19  ;;  %v847_v30 = vmax.f32 %v637_v20, 0.0  ;;  %v879_v31 = vmax.f32 %v765_v21, 0.0 }
 0x10b   : > { %v1430_v32 = vpack.c.bf16 %v844_v24, %v844_v24  ;;  %v1462_v33 = vpack.c.bf16 %v876_v25, %v876_v25  ;;  %v845_v34 = vmax.f32 %v629_v26, 0.0  ;;  %v877_v35 = vmax.f32 %v757_v27, 0.0 }
 0x10c   : > { %1167 = vst.msk [vmem:[%s1791_s6 + $0x38] sm:$0xf] %vm1152_vm2, %v1432_v28  ;;  %1199 = vst.msk [vmem:[%s1791_s6 + $0xb8] sm:$0xf] %vm1152_vm2, %v1464_v29  ;;  %v1433_v36 = vpack.c.bf16 %v847_v30, %v847_v30  ;;  %v1465_v37 = vpack.c.bf16 %v879_v31, %v879_v31 }
 0x10d   : > { %1165 = vst.msk [vmem:[%s1791_s6 + $0x30] sm:$0xf] %vm1152_vm2, %v1430_v32  ;;  %1197 = vst.msk [vmem:[%s1791_s6 + $0xb0] sm:$0xf] %vm1152_vm2, %v1462_v33  ;;  %v1431_v39 = vpack.c.bf16 %v845_v34, %v845_v34  ;;  %v1463_v40 = vpack.c.bf16 %v877_v35, %v877_v35  ;;  %v1547_v41 = vpop.f32.mrb[16].mxu0  ;;  %v1579_v42 = vpop.f32.mrb[16].mxu1 }
 0x10e   : > { %1168 = vst.msk [vmem:[%s1791_s6 + $0x3c] sm:$0xf] %vm1152_vm2, %v1433_v36  ;;  %1200 = vst.msk [vmem:[%s1791_s6 + $0xbc] sm:$0xf] %vm1152_vm2, %v1465_v37  ;;  %v650_v43 = vadd.f32 %v1547_v41, %v1778_v38  ;;  %v778_v44 = vadd.f32 %v1579_v42, %v1778_v38  ;;  %v641_v45 = vpop.f32.mrb[17].mxu0  ;;  %v769_v46 = vpop.f32.mrb[17].mxu1 }
 0x10f   : > { %1166 = vst.msk [vmem:[%s1791_s6 + $0x34] sm:$0xf] %vm1152_vm2, %v1431_v39  ;;  %1198 = vst.msk [vmem:[%s1791_s6 + $0xb4] sm:$0xf] %vm1152_vm2, %v1463_v40  ;;  %v642_v47 = vadd.f32 %v1778_v38, %v641_v45  ;;  %v770_v48 = vadd.f32 %v1778_v38, %v769_v46  ;;  %v1548_v49 = vpop.f32.mrb[18].mxu0  ;;  %v1580_v50 = vpop.f32.mrb[18].mxu1 }
 0x110   : > { %v850_v51 = vmax.f32 %v650_v43, 0.0  ;;  %v882_v52 = vmax.f32 %v778_v44, 0.0  ;;  %v653_v53 = vadd.f32 %v1548_v49, %v1778_v38  ;;  %v781_v54 = vadd.f32 %v1580_v50, %v1778_v38  ;;  %v644_v55 = vpop.f32.mrb[19].mxu0  ;;  %v772_v56 = vpop.f32.mrb[19].mxu1 }
 0x111   : > { %v848_v57 = vmax.f32 %v642_v47, 0.0  ;;  %v880_v58 = vmax.f32 %v770_v48, 0.0  ;;  %v645_v59 = vadd.f32 %v1778_v38, %v644_v55  ;;  %v773_v60 = vadd.f32 %v1778_v38, %v772_v56 }
 0x112   : > { %v1436_v61 = vpack.c.bf16 %v850_v51, %v850_v51  ;;  %v1468_v62 = vpack.c.bf16 %v882_v52, %v882_v52  ;;  %v851_v63 = vmax.f32 %v653_v53, 0.0  ;;  %v883_v0 = vmax.f32 %v781_v54, 0.0 }
 0x113   : > { %v1434_v1 = vpack.c.bf16 %v848_v57, %v848_v57  ;;  %v1466_v2 = vpack.c.bf16 %v880_v58, %v880_v58  ;;  %v849_v3 = vmax.f32 %v645_v59, 0.0  ;;  %v881_v4 = vmax.f32 %v773_v60, 0.0 }
 0x114   : > { %1171 = vst.msk [vmem:[%s1791_s6 + $0x48] sm:$0xf] %vm1152_vm2, %v1436_v61  ;;  %1203 = vst.msk [vmem:[%s1791_s6 + $0xc8] sm:$0xf] %vm1152_vm2, %v1468_v62  ;;  %v1437_v5 = vpack.c.bf16 %v851_v63, %v851_v63  ;;  %v1469_v6 = vpack.c.bf16 %v883_v0, %v883_v0 }
 0x115   : > { %1169 = vst.msk [vmem:[%s1791_s6 + $0x40] sm:$0xf] %vm1152_vm2, %v1434_v1  ;;  %1201 = vst.msk [vmem:[%s1791_s6 + $0xc0] sm:$0xf] %vm1152_vm2, %v1466_v2  ;;  %v1435_v7 = vpack.c.bf16 %v849_v3, %v849_v3  ;;  %v1467_v8 = vpack.c.bf16 %v881_v4, %v881_v4  ;;  %v1551_v9 = vpop.f32.mrb[20].mxu0  ;;  %v1583_v10 = vpop.f32.mrb[20].mxu1 }
 0x116   : > { %1172 = vst.msk [vmem:[%s1791_s6 + $0x4c] sm:$0xf] %vm1152_vm2, %v1437_v5  ;;  %1204 = vst.msk [vmem:[%s1791_s6 + $0xcc] sm:$0xf] %vm1152_vm2, %v1469_v6  ;;  %v666_v11 = vadd.f32 %v1551_v9, %v1778_v38  ;;  %v794_v12 = vadd.f32 %v1583_v10, %v1778_v38  ;;  %v657_v13 = vpop.f32.mrb[21].mxu0  ;;  %v785_v14 = vpop.f32.mrb[21].mxu1 }
 0x117   : > { %1170 = vst.msk [vmem:[%s1791_s6 + $0x44] sm:$0xf] %vm1152_vm2, %v1435_v7  ;;  %1202 = vst.msk [vmem:[%s1791_s6 + $0xc4] sm:$0xf] %vm1152_vm2, %v1467_v8  ;;  %v658_v15 = vadd.f32 %v1778_v38, %v657_v13  ;;  %v786_v16 = vadd.f32 %v1778_v38, %v785_v14  ;;  %v1552_v17 = vpop.f32.mrb[22].mxu0  ;;  %v1584_v18 = vpop.f32.mrb[22].mxu1 }
 0x118   : > { %v854_v19 = vmax.f32 %v666_v11, 0.0  ;;  %v886_v20 = vmax.f32 %v794_v12, 0.0  ;;  %v669_v21 = vadd.f32 %v1552_v17, %v1778_v38  ;;  %v797_v22 = vadd.f32 %v1584_v18, %v1778_v38  ;;  %v660_v23 = vpop.f32.mrb[23].mxu0  ;;  %v788_v24 = vpop.f32.mrb[23].mxu1 }
 0x119   : > { %v852_v25 = vmax.f32 %v658_v15, 0.0  ;;  %v884_v26 = vmax.f32 %v786_v16, 0.0  ;;  %v661_v27 = vadd.f32 %v1778_v38, %v660_v23  ;;  %v789_v28 = vadd.f32 %v1778_v38, %v788_v24 }
 0x11a   : > { %v1440_v29 = vpack.c.bf16 %v854_v19, %v854_v19  ;;  %v1472_v30 = vpack.c.bf16 %v886_v20, %v886_v20  ;;  %v855_v31 = vmax.f32 %v669_v21, 0.0  ;;  %v887_v32 = vmax.f32 %v797_v22, 0.0 }
 0x11b   : > { %v1438_v33 = vpack.c.bf16 %v852_v25, %v852_v25  ;;  %v1470_v34 = vpack.c.bf16 %v884_v26, %v884_v26  ;;  %v853_v35 = vmax.f32 %v661_v27, 0.0  ;;  %v885_v36 = vmax.f32 %v789_v28, 0.0 }
 0x11c   : > { %1175 = vst.msk [vmem:[%s1791_s6 + $0x58] sm:$0xf] %vm1152_vm2, %v1440_v29  ;;  %1207 = vst.msk [vmem:[%s1791_s6 + $0xd8] sm:$0xf] %vm1152_vm2, %v1472_v30  ;;  %v1441_v37 = vpack.c.bf16 %v855_v31, %v855_v31  ;;  %v1473_v39 = vpack.c.bf16 %v887_v32, %v887_v32 }
 0x11d   : > { %1173 = vst.msk [vmem:[%s1791_s6 + $0x50] sm:$0xf] %vm1152_vm2, %v1438_v33  ;;  %1205 = vst.msk [vmem:[%s1791_s6 + $0xd0] sm:$0xf] %vm1152_vm2, %v1470_v34  ;;  %v1439_v40 = vpack.c.bf16 %v853_v35, %v853_v35  ;;  %v1471_v41 = vpack.c.bf16 %v885_v36, %v885_v36  ;;  %v1555_v42 = vpop.f32.mrb[24].mxu0  ;;  %v1587_v43 = vpop.f32.mrb[24].mxu1 }
 0x11e   : > { %1176 = vst.msk [vmem:[%s1791_s6 + $0x5c] sm:$0xf] %vm1152_vm2, %v1441_v37  ;;  %1208 = vst.msk [vmem:[%s1791_s6 + $0xdc] sm:$0xf] %vm1152_vm2, %v1473_v39  ;;  %v682_v44 = vadd.f32 %v1555_v42, %v1778_v38  ;;  %v810_v45 = vadd.f32 %v1587_v43, %v1778_v38  ;;  %v673_v46 = vpop.f32.mrb[25].mxu0  ;;  %v801_v47 = vpop.f32.mrb[25].mxu1 }
 0x11f   : > { %1174 = vst.msk [vmem:[%s1791_s6 + $0x54] sm:$0xf] %vm1152_vm2, %v1439_v40  ;;  %1206 = vst.msk [vmem:[%s1791_s6 + $0xd4] sm:$0xf] %vm1152_vm2, %v1471_v41  ;;  %v674_v48 = vadd.f32 %v1778_v38, %v673_v46  ;;  %v802_v49 = vadd.f32 %v1778_v38, %v801_v47  ;;  %v1556_v50 = vpop.f32.mrb[26].mxu0  ;;  %v1588_v51 = vpop.f32.mrb[26].mxu1 }
 0x120   : > { %v858_v52 = vmax.f32 %v682_v44, 0.0  ;;  %v890_v53 = vmax.f32 %v810_v45, 0.0  ;;  %v685_v54 = vadd.f32 %v1556_v50, %v1778_v38  ;;  %v813_v55 = vadd.f32 %v1588_v51, %v1778_v38  ;;  %v676_v56 = vpop.f32.mrb[27].mxu0  ;;  %v804_v57 = vpop.f32.mrb[27].mxu1 }
 0x121   : > { %v856_v58 = vmax.f32 %v674_v48, 0.0  ;;  %v888_v59 = vmax.f32 %v802_v49, 0.0  ;;  %v677_v60 = vadd.f32 %v1778_v38, %v676_v56  ;;  %v805_v61 = vadd.f32 %v1778_v38, %v804_v57 }
 0x122   : > { %v1444_v62 = vpack.c.bf16 %v858_v52, %v858_v52  ;;  %v1476_v63 = vpack.c.bf16 %v890_v53, %v890_v53  ;;  %v859_v0 = vmax.f32 %v685_v54, 0.0  ;;  %v891_v1 = vmax.f32 %v813_v55, 0.0 }
 0x123   : > { %v1442_v2 = vpack.c.bf16 %v856_v58, %v856_v58  ;;  %v1474_v3 = vpack.c.bf16 %v888_v59, %v888_v59  ;;  %v857_v4 = vmax.f32 %v677_v60, 0.0  ;;  %v889_v5 = vmax.f32 %v805_v61, 0.0 }
 0x124   : > { %1179 = vst.msk [vmem:[%s1791_s6 + $0x68] sm:$0xf] %vm1152_vm2, %v1444_v62  ;;  %1211 = vst.msk [vmem:[%s1791_s6 + $0xe8] sm:$0xf] %vm1152_vm2, %v1476_v63  ;;  %v1445_v6 = vpack.c.bf16 %v859_v0, %v859_v0  ;;  %v1477_v7 = vpack.c.bf16 %v891_v1, %v891_v1 }
 0x125   : > { %1177 = vst.msk [vmem:[%s1791_s6 + $0x60] sm:$0xf] %vm1152_vm2, %v1442_v2  ;;  %1209 = vst.msk [vmem:[%s1791_s6 + $0xe0] sm:$0xf] %vm1152_vm2, %v1474_v3  ;;  %v1443_v8 = vpack.c.bf16 %v857_v4, %v857_v4  ;;  %v1475_v9 = vpack.c.bf16 %v889_v5, %v889_v5  ;;  %v1559_v10 = vpop.f32.mrb[28].mxu0  ;;  %v1591_v11 = vpop.f32.mrb[28].mxu1 }
 0x126   : > { %1180 = vst.msk [vmem:[%s1791_s6 + $0x6c] sm:$0xf] %vm1152_vm2, %v1445_v6  ;;  %1212 = vst.msk [vmem:[%s1791_s6 + $0xec] sm:$0xf] %vm1152_vm2, %v1477_v7  ;;  %v698_v12 = vadd.f32 %v1559_v10, %v1778_v38  ;;  %v826_v13 = vadd.f32 %v1591_v11, %v1778_v38  ;;  %v689_v14 = vpop.f32.mrb[29].mxu0  ;;  %v817_v15 = vpop.f32.mrb[29].mxu1 }
 0x127   : > { %1178 = vst.msk [vmem:[%s1791_s6 + $0x64] sm:$0xf] %vm1152_vm2, %v1443_v8  ;;  %1210 = vst.msk [vmem:[%s1791_s6 + $0xe4] sm:$0xf] %vm1152_vm2, %v1475_v9  ;;  %v690_v16 = vadd.f32 %v1778_v38, %v689_v14  ;;  %v818_v17 = vadd.f32 %v1778_v38, %v817_v15  ;;  %v1560_v18 = vpop.f32.mrb[30].mxu0  ;;  %v1592_v19 = vpop.f32.mrb[30].mxu1 }
 0x128   : > { %v862_v20 = vmax.f32 %v698_v12, 0.0  ;;  %v894_v21 = vmax.f32 %v826_v13, 0.0  ;;  %v701_v22 = vadd.f32 %v1560_v18, %v1778_v38  ;;  %v829_v23 = vadd.f32 %v1592_v19, %v1778_v38  ;;  %v692_v24 = vpop.f32.mrb[31].mxu0  ;;  %v820_v25 = vpop.f32.mrb[31].mxu1 }
 0x129   : > { %v860_v26 = vmax.f32 %v690_v16, 0.0  ;;  %v892_v27 = vmax.f32 %v818_v17, 0.0  ;;  %v693_v28 = vadd.f32 %v1778_v38, %v692_v24  ;;  %v821_v29 = vadd.f32 %v1778_v38, %v820_v25 }
 0x12a   : > { %v1448_v30 = vpack.c.bf16 %v862_v20, %v862_v20  ;;  %v1480_v31 = vpack.c.bf16 %v894_v21, %v894_v21  ;;  %v863_v32 = vmax.f32 %v701_v22, 0.0  ;;  %v895_v33 = vmax.f32 %v829_v23, 0.0 }
 0x12b   : > { %v1446_v34 = vpack.c.bf16 %v860_v26, %v860_v26  ;;  %v1478_v35 = vpack.c.bf16 %v892_v27, %v892_v27  ;;  %v861_v36 = vmax.f32 %v693_v28, 0.0  ;;  %v893_v37 = vmax.f32 %v821_v29, 0.0 }
 0x12c   : > { %1183 = vst.msk [vmem:[%s1791_s6 + $0x78] sm:$0xf] %vm1152_vm2, %v1448_v30  ;;  %1215 = vst.msk [vmem:[%s1791_s6 + $0xf8] sm:$0xf] %vm1152_vm2, %v1480_v31  ;;  %v1449_v39 = vpack.c.bf16 %v863_v32, %v863_v32  ;;  %v1481_v40 = vpack.c.bf16 %v895_v33, %v895_v33 }
 0x12d   : > { %1181 = vst.msk [vmem:[%s1791_s6 + $0x70] sm:$0xf] %vm1152_vm2, %v1446_v34  ;;  %1213 = vst.msk [vmem:[%s1791_s6 + $0xf0] sm:$0xf] %vm1152_vm2, %v1478_v35  ;;  %v1447_v38 = vpack.c.bf16 %v861_v36, %v861_v36  ;;  %v1479_v41 = vpack.c.bf16 %v893_v37, %v893_v37 }
 0x12e   : > { %1184 = vst.msk [vmem:[%s1791_s6 + $0x7c] sm:$0xf] %vm1152_vm2, %v1449_v39  ;;  %1216 = vst.msk [vmem:[%s1791_s6 + $0xfc] sm:$0xf] %vm1152_vm2, %v1481_v40 }
 0x12f   : > { %1182 = vst.msk [vmem:[%s1791_s6 + $0x74] sm:$0xf] %vm1152_vm2, %v1447_v38  ;;  %1214 = vst.msk [vmem:[%s1791_s6 + $0xf4] sm:$0xf] %vm1152_vm2, %v1479_v41 }
 0x130 PF: > { %s13_s12 = sadd.s32 1, %s1656_s12  }
 0x131   : > { %p10_p4 = scmp.ge.s32.totalorder %s13_s12, 5  }
 0x133   :  { %12 = sbr.rel (!%p10_p4) target bundleno = 1 (0x1), region = 62 }

// kernel: net_forward.8
= control target key start
LH: loop header
LB: loop body
LE: loop exit
PB: predicated region body
PF: predicated region fallthrough
CT: control target
= control target key end

     0   :  { %v862_v0 = vmov 0   ;;  %vm266_vm0 = vcmask 130048   ;;  %vm631_vm1 = vcmask 257024   ;;  %s1179_s1 = inlined_call_operand.vmem [shape: bf16[144,32], index: 1, kind: input, shape index: {}]   ;;  %s1180_s0 = inlined_call_operand.vmem [shape: bf16[248,144], index: 0, kind: input, shape index: {}]   ;;  %s1181_s2 = inlined_call_operand.vmem [shape: f32[1,32], index: 2, kind: input, shape index: {}]   ;;  %s1182_s3 = inlined_call_operand.vmem [shape: bf16[248,32], index: 3, kind: output, shape index: {}]  }
   0x1   :  { %315 = vmatprep.subr.bf16.mxu0 %v862_v0  ;;  %787 = vmatprep.subr.bf16.mxu1 %v862_v0  ;;  %v806_v1 = vld [vmem:[%s1179_s1] sm:$0xff]   ;;  %v807_v2 = vld [vmem:[%s1179_s1 + $0x8] sm:$0xff]   ;;  %v808_v3 = vld [vmem:[%s1179_s1 + $0x10] sm:$0xff]  }
   0x2   :  { %316 = vmatpush1.bf16.msra.mxu0 %v806_v1  ;;  %796 = vmatpush1.bf16.msra.mxu1 %v806_v1  ;;  %v809_v4 = vld [vmem:[%s1179_s1 + $0x18] sm:$0xff]   ;;  %v817_v5 = vld [vmem:[%s1180_s0 + $0x4] ss:$8 sps:$4 sm:$0xff]   ;;  %v812_v9 = vld [vmem:[%s1179_s1 + $0x30] sm:$0xff]  }
   0x3   :  { %317 = vmatprep.subr.bf16.mxu0 %v862_v0  ;;  %788 = vmatprep.subr.bf16.mxu1 %v862_v0  ;;  %v820_v6 = vld [vmem:[%s1180_s0 + $0x84] ss:$8 sps:$4 sm:$0xff]   ;;  %v813_v10 = vld [vmem:[%s1179_s1 + $0x38] sm:$0xff]   ;;  %v815_v12 = vld [vmem:[%s1180_s0] ss:$8 sps:$4 sm:$0xff]  }
   0x4   :  { %709 = vmatprep.mubr.msk.bf16.mxu0 %vm266_vm0, %v817_v5  ;;  %717 = vmatprep.mubr.msk.bf16.mxu1 %vm266_vm0, %v820_v6  ;;  %v810_v7 = vld [vmem:[%s1179_s1 + $0x20] sm:$0xff]   ;;  %v811_v8 = vld [vmem:[%s1179_s1 + $0x28] sm:$0xff]   ;;  %v821_v14 = vld [vmem:[%s1180_s0 + $0x14] ss:$8 sps:$4 sm:$0xff]  }
   0x5   :  { %v814_v11 = vld [vmem:[%s1179_s1 + $0x40] sm:$0xff]   ;;  %v823_v15 = vld [vmem:[%s1180_s0 + $0x94] ss:$8 sps:$4 sm:$0xff]   ;;  %v825_v16 = vld [vmem:[%s1180_s0 + $0x10] ss:$8 sps:$4 sm:$0xff]  }
   0x6   :  { %318 = vmatpush1.bf16.msra.mxu0 %v807_v2  ;;  %797 = vmatpush1.bf16.msra.mxu1 %v807_v2  ;;  %v818_v13 = vld [vmem:[%s1180_s0 + $0x80] ss:$8 sps:$4 sm:$0xff]   ;;  %v826_v17 = vld [vmem:[%s1180_s0 + $0x90] ss:$8 sps:$4 sm:$0xff]   ;;  %v827_v18 = vld [vmem:[%s1180_s0 + $0x24] ss:$8 sps:$4 sm:$0xff]  }
   0x7   :  { %319 = vmatprep.subr.bf16.mxu0 %v862_v0  ;;  %789 = vmatprep.subr.bf16.mxu1 %v862_v0  ;;  %v829_v19 = vld [vmem:[%s1180_s0 + $0xa4] ss:$8 sps:$4 sm:$0xff]   ;;  %v831_v20 = vld [vmem:[%s1180_s0 + $0x20] ss:$8 sps:$4 sm:$0xff]   ;;  %v833_v22 = vld [vmem:[%s1180_s0 + $0x34] ss:$8 sps:$4 sm:$0xff]  }
   0x8   :  { %v832_v21 = vld [vmem:[%s1180_s0 + $0xa0] ss:$8 sps:$4 sm:$0xff]   ;;  %v835_v23 = vld [vmem:[%s1180_s0 + $0xb4] ss:$8 sps:$4 sm:$0xff]   ;;  %v837_v24 = vld [vmem:[%s1180_s0 + $0x30] ss:$8 sps:$4 sm:$0xff]  }
   0x9   :  { %v838_v25 = vld [vmem:[%s1180_s0 + $0xb0] ss:$8 sps:$4 sm:$0xff]   ;;  %v839_v26 = vld [vmem:[%s1180_s0 + $0x44] ss:$8 sps:$4 sm:$0xff]   ;;  %v843_v28 = vld [vmem:[%s1180_s0 + $0x40] ss:$8 sps:$4 sm:$0xff]  }
   0xa   :  { %320 = vmatpush1.bf16.msra.mxu0 %v808_v3  ;;  %798 = vmatpush1.bf16.msra.mxu1 %v808_v3  ;;  %v841_v27 = vld [vmem:[%s1180_s0 + $0xc4] ss:$8 sps:$4 sm:$0xff]   ;;  %v844_v29 = vld [vmem:[%s1180_s0 + $0xc0] ss:$8 sps:$4 sm:$0xff]   ;;  %v845_v30 = vld [vmem:[%s1180_s0 + $0x54] ss:$8 sps:$4 sm:$0xff]  }
   0xb   :  { %321 = vmatprep.subr.bf16.mxu0 %v862_v0  ;;  %790 = vmatprep.subr.bf16.mxu1 %v862_v0  ;;  %v847_v31 = vld [vmem:[%s1180_s0 + $0xd4] ss:$8 sps:$4 sm:$0xff]   ;;  %v849_v32 = vld [vmem:[%s1180_s0 + $0x50] ss:$8 sps:$4 sm:$0xff]   ;;  %v851_v34 = vld [vmem:[%s1180_s0 + $0x64] ss:$8 sps:$4 sm:$0xff]  }
   0xc   :  { %v850_v33 = vld [vmem:[%s1180_s0 + $0xd0] ss:$8 sps:$4 sm:$0xff]   ;;  %v853_v35 = vld [vmem:[%s1180_s0 + $0xe4] ss:$8 sps:$4 sm:$0xff]   ;;  %v855_v37 = vld [vmem:[%s1180_s0 + $0x60] ss:$8 sps:$4 sm:$0xff]  }
   0xd   :  { %v45_v36 = vld [vmem:[%s1180_s0 + $0xf0] sm:$0xff]  ;;  %v856_v38 = vld [vmem:[%s1180_s0 + $0xe0] ss:$8 sps:$4 sm:$0xff]  }
   0xe   :  { %322 = vmatpush1.bf16.msra.mxu0 %v809_v4  ;;  %799 = vmatpush1.bf16.msra.mxu1 %v809_v4  ;;  %v857_v39 = vld [vmem:[%s1180_s0 + $0x74] ss:$8 sps:$4 sm:$0xff]   ;;  %v699_v40 = vcombine.high %v45_v36, %v45_v36  ;;  %v860_v41 = vld [vmem:[%s1180_s0 + $0x70] ss:$8 sps:$4 sm:$0xff]   ;;  %v698_v42 = vcombine.low %v45_v36, %v45_v36  ;;  %v1022_v43 = vld [vmem:[%s1181_s2] ss:$0 sm:$0xff] }
   0xf   :  { %323 = vmatprep.subr.bf16.mxu0 %v862_v0  ;;  %791 = vmatprep.subr.bf16.mxu1 %v862_v0 }
  0x12   :  { %324 = vmatpush1.bf16.msra.mxu0 %v810_v7  ;;  %800 = vmatpush1.bf16.msra.mxu1 %v810_v7 }
  0x13   :  { %325 = vmatprep.subr.bf16.mxu0 %v862_v0  ;;  %792 = vmatprep.subr.bf16.mxu1 %v862_v0 }
  0x16   :  { %326 = vmatpush1.bf16.msra.mxu0 %v811_v8  ;;  %801 = vmatpush1.bf16.msra.mxu1 %v811_v8 }
  0x17   :  { %327 = vmatprep.subr.bf16.mxu0 %v862_v0  ;;  %793 = vmatprep.subr.bf16.mxu1 %v862_v0 }
  0x1a   :  { %328 = vmatpush1.bf16.msra.mxu0 %v812_v9  ;;  %802 = vmatpush1.bf16.msra.mxu1 %v812_v9 }
  0x1b   :  { %329 = vmatprep.subr.bf16.mxu0 %v862_v0  ;;  %794 = vmatprep.subr.bf16.mxu1 %v862_v0 }
  0x1e   :  { %330 = vmatpush1.bf16.msra.mxu0 %v813_v10  ;;  %803 = vmatpush1.bf16.msra.mxu1 %v813_v10 }
  0x1f   :  { %331 = vmatprep.subr.bf16.mxu0 %v862_v0  ;;  %795 = vmatprep.subr.bf16.mxu1 %v862_v0 }
  0x22   :  { %332 = vmatpush1.bf16.msra.mxu0 %v814_v11  ;;  %804 = vmatpush1.bf16.msra.mxu1 %v814_v11 }
  0x25   :  { %348 = vmatmul.mubr.bf16.vlgmr.msra.gmra.mrb[0].mxu0 %v815_v12  ;;  %412 = vmatmul.mubr.bf16.vlgmr.msra.gmra.mrb[0].mxu1 %v818_v13 }
  0x26   :  { %710 = vmatprep.mubr.msk.bf16.mxu0 %vm266_vm0, %v821_v14  ;;  %718 = vmatprep.mubr.msk.bf16.mxu1 %vm266_vm0, %v823_v15 }
  0x2d   :  { %356 = vmatmul.mubr.bf16.gmra.mrb[4].mxu0 %v825_v16  ;;  %420 = vmatmul.mubr.bf16.gmra.mrb[4].mxu1 %v826_v17 }
  0x2e   :  { %711 = vmatprep.mubr.msk.bf16.mxu0 %vm266_vm0, %v827_v18  ;;  %719 = vmatprep.mubr.msk.bf16.mxu1 %vm266_vm0, %v829_v19 }
  0x35   :  { %364 = vmatmul.mubr.bf16.gmra.mrb[8].mxu0 %v831_v20  ;;  %428 = vmatmul.mubr.bf16.gmra.mrb[8].mxu1 %v832_v21 }
  0x36   :  { %712 = vmatprep.mubr.msk.bf16.mxu0 %vm266_vm0, %v833_v22  ;;  %720 = vmatprep.mubr.msk.bf16.mxu1 %vm266_vm0, %v835_v23 }
  0x3d   :  { %372 = vmatmul.mubr.bf16.gmra.mrb[12].mxu0 %v837_v24  ;;  %436 = vmatmul.mubr.bf16.gmra.mrb[12].mxu1 %v838_v25 }
  0x3e   :  { %713 = vmatprep.mubr.msk.bf16.mxu0 %vm266_vm0, %v839_v26  ;;  %721 = vmatprep.mubr.msk.bf16.mxu1 %vm266_vm0, %v841_v27 }
  0x45   :  { %380 = vmatmul.mubr.bf16.gmra.mrb[16].mxu0 %v843_v28  ;;  %444 = vmatmul.mubr.bf16.gmra.mrb[16].mxu1 %v844_v29 }
  0x46   :  { %714 = vmatprep.mubr.msk.bf16.mxu0 %vm266_vm0, %v845_v30  ;;  %722 = vmatprep.mubr.msk.bf16.mxu1 %vm266_vm0, %v847_v31 }
  0x4d   :  { %388 = vmatmul.mubr.bf16.gmra.mrb[20].mxu0 %v849_v32  ;;  %452 = vmatmul.mubr.bf16.gmra.mrb[20].mxu1 %v850_v33 }
  0x4e   :  { %715 = vmatprep.mubr.msk.bf16.mxu0 %vm266_vm0, %v851_v34  ;;  %723 = vmatprep.mubr.msk.bf16.mxu1 %vm266_vm0, %v853_v35 }
  0x55   :  { %396 = vmatmul.mubr.bf16.gmra.mrb[24].mxu0 %v855_v37  ;;  %460 = vmatmul.mubr.bf16.gmra.mrb[24].mxu1 %v856_v38 }
  0x56   :  { %716 = vmatprep.mubr.msk.bf16.mxu0 %vm266_vm0, %v857_v39  ;;  %724 = vmatprep.mubr.msk.bf16.mxu1 %vm266_vm0, %v699_v40 }
  0x5d   :  { %404 = vmatmul.mubr.bf16.gmra.mrb[28].mxu0 %v860_v41  ;;  %468 = vmatmul.mubr.bf16.gmra.mrb[28].mxu1 %v698_v42 }
  0xf8   :  { %v349_v44 = vpop.f32.mrb[0].mxu0  ;;  %v413_v45 = vpop.f32.mrb[0].mxu1 }
  0xf9   :  { %v350_v46 = vadd.f32 %v1022_v43, %v349_v44  ;;  %v414_v47 = vadd.f32 %v1022_v43, %v413_v45  ;;  %v351_v48 = vpop.f32.mrb[1].mxu0  ;;  %v415_v49 = vpop.f32.mrb[1].mxu1 }
  0xfa   :  { %v352_v50 = vpop.f32.mrb[2].mxu0  ;;  %v416_v51 = vpop.f32.mrb[2].mxu1 }
  0xfb   :  { %v475_v52 = vmax.f32 %v350_v46, 0.0  ;;  %v491_v53 = vmax.f32 %v414_v47, 0.0  ;;  %v353_v54 = vadd.f32 %v1022_v43, %v352_v50  ;;  %v417_v55 = vadd.f32 %v1022_v43, %v416_v51  ;;  %v354_v56 = vpop.f32.mrb[3].mxu0  ;;  %v418_v57 = vpop.f32.mrb[3].mxu1 }
  0xfd   :  { %v756_v58 = vpack.c.bf16 %v475_v52, %v475_v52  ;;  %v772_v59 = vpack.c.bf16 %v491_v53, %v491_v53  ;;  %v476_v60 = vmax.f32 %v353_v54, 0.0  ;;  %v492_v61 = vmax.f32 %v417_v55, 0.0 }
  0xff   :  { %632 = vst.msk [vmem:[%s1182_s3] sm:$0xf] %vm631_vm1, %v756_v58  ;;  %648 = vst.msk [vmem:[%s1182_s3 + $0x40] sm:$0xf] %vm631_vm1, %v772_v59  ;;  %v757_v62 = vpack.c.bf16 %v476_v60, %v476_v60  ;;  %v773_v63 = vpack.c.bf16 %v492_v61, %v492_v61 }
 0x100   :  { %v357_v0 = vpop.f32.mrb[4].mxu0  ;;  %v421_v1 = vpop.f32.mrb[4].mxu1 }
 0x101   :  { %633 = vst.msk [vmem:[%s1182_s3 + $0x4] sm:$0xf] %vm631_vm1, %v757_v62  ;;  %649 = vst.msk [vmem:[%s1182_s3 + $0x44] sm:$0xf] %vm631_vm1, %v773_v63  ;;  %v358_v2 = vadd.f32 %v1022_v43, %v357_v0  ;;  %v422_v3 = vadd.f32 %v1022_v43, %v421_v1  ;;  %v359_v4 = vpop.f32.mrb[5].mxu0  ;;  %v423_v5 = vpop.f32.mrb[5].mxu1 }
 0x102   :  { %v360_v6 = vpop.f32.mrb[6].mxu0  ;;  %v424_v7 = vpop.f32.mrb[6].mxu1 }
 0x103   :  { %v477_v8 = vmax.f32 %v358_v2, 0.0  ;;  %v493_v9 = vmax.f32 %v422_v3, 0.0  ;;  %v361_v10 = vadd.f32 %v1022_v43, %v360_v6  ;;  %v425_v11 = vadd.f32 %v1022_v43, %v424_v7  ;;  %v362_v12 = vpop.f32.mrb[7].mxu0  ;;  %v426_v13 = vpop.f32.mrb[7].mxu1 }
 0x105   :  { %v758_v14 = vpack.c.bf16 %v477_v8, %v477_v8  ;;  %v774_v15 = vpack.c.bf16 %v493_v9, %v493_v9  ;;  %v478_v16 = vmax.f32 %v361_v10, 0.0  ;;  %v494_v17 = vmax.f32 %v425_v11, 0.0 }
 0x107   :  { %634 = vst.msk [vmem:[%s1182_s3 + $0x8] sm:$0xf] %vm631_vm1, %v758_v14  ;;  %650 = vst.msk [vmem:[%s1182_s3 + $0x48] sm:$0xf] %vm631_vm1, %v774_v15  ;;  %v759_v18 = vpack.c.bf16 %v478_v16, %v478_v16  ;;  %v775_v19 = vpack.c.bf16 %v494_v17, %v494_v17 }
 0x108   :  { %v365_v20 = vpop.f32.mrb[8].mxu0  ;;  %v429_v21 = vpop.f32.mrb[8].mxu1 }
 0x109   :  { %635 = vst.msk [vmem:[%s1182_s3 + $0xc] sm:$0xf] %vm631_vm1, %v759_v18  ;;  %651 = vst.msk [vmem:[%s1182_s3 + $0x4c] sm:$0xf] %vm631_vm1, %v775_v19  ;;  %v366_v22 = vadd.f32 %v1022_v43, %v365_v20  ;;  %v430_v23 = vadd.f32 %v1022_v43, %v429_v21  ;;  %v367_v24 = vpop.f32.mrb[9].mxu0  ;;  %v431_v25 = vpop.f32.mrb[9].mxu1 }
 0x10a   :  { %v368_v26 = vpop.f32.mrb[10].mxu0  ;;  %v432_v27 = vpop.f32.mrb[10].mxu1 }
 0x10b   :  { %v479_v28 = vmax.f32 %v366_v22, 0.0  ;;  %v495_v29 = vmax.f32 %v430_v23, 0.0  ;;  %v369_v30 = vadd.f32 %v1022_v43, %v368_v26  ;;  %v433_v31 = vadd.f32 %v1022_v43, %v432_v27  ;;  %v370_v32 = vpop.f32.mrb[11].mxu0  ;;  %v434_v33 = vpop.f32.mrb[11].mxu1 }
 0x10d   :  { %v760_v34 = vpack.c.bf16 %v479_v28, %v479_v28  ;;  %v776_v35 = vpack.c.bf16 %v495_v29, %v495_v29  ;;  %v480_v36 = vmax.f32 %v369_v30, 0.0  ;;  %v496_v37 = vmax.f32 %v433_v31, 0.0 }
 0x10f   :  { %636 = vst.msk [vmem:[%s1182_s3 + $0x10] sm:$0xf] %vm631_vm1, %v760_v34  ;;  %652 = vst.msk [vmem:[%s1182_s3 + $0x50] sm:$0xf] %vm631_vm1, %v776_v35  ;;  %v761_v38 = vpack.c.bf16 %v480_v36, %v480_v36  ;;  %v777_v39 = vpack.c.bf16 %v496_v37, %v496_v37 }
 0x110   :  { %v373_v40 = vpop.f32.mrb[12].mxu0  ;;  %v437_v41 = vpop.f32.mrb[12].mxu1 }
 0x111   :  { %637 = vst.msk [vmem:[%s1182_s3 + $0x14] sm:$0xf] %vm631_vm1, %v761_v38  ;;  %653 = vst.msk [vmem:[%s1182_s3 + $0x54] sm:$0xf] %vm631_vm1, %v777_v39  ;;  %v374_v42 = vadd.f32 %v1022_v43, %v373_v40  ;;  %v438_v44 = vadd.f32 %v1022_v43, %v437_v41  ;;  %v375_v45 = vpop.f32.mrb[13].mxu0  ;;  %v439_v46 = vpop.f32.mrb[13].mxu1 }
 0x112   :  { %v376_v47 = vpop.f32.mrb[14].mxu0  ;;  %v440_v48 = vpop.f32.mrb[14].mxu1 }
 0x113   :  { %v481_v49 = vmax.f32 %v374_v42, 0.0  ;;  %v497_v50 = vmax.f32 %v438_v44, 0.0  ;;  %v377_v51 = vadd.f32 %v1022_v43, %v376_v47  ;;  %v441_v52 = vadd.f32 %v1022_v43, %v440_v48  ;;  %v378_v53 = vpop.f32.mrb[15].mxu0  ;;  %v442_v54 = vpop.f32.mrb[15].mxu1 }
 0x115   :  { %v762_v55 = vpack.c.bf16 %v481_v49, %v481_v49  ;;  %v778_v56 = vpack.c.bf16 %v497_v50, %v497_v50  ;;  %v482_v57 = vmax.f32 %v377_v51, 0.0  ;;  %v498_v58 = vmax.f32 %v441_v52, 0.0 }
 0x117   :  { %638 = vst.msk [vmem:[%s1182_s3 + $0x18] sm:$0xf] %vm631_vm1, %v762_v55  ;;  %654 = vst.msk [vmem:[%s1182_s3 + $0x58] sm:$0xf] %vm631_vm1, %v778_v56  ;;  %v763_v59 = vpack.c.bf16 %v482_v57, %v482_v57  ;;  %v779_v60 = vpack.c.bf16 %v498_v58, %v498_v58 }
 0x118   :  { %v381_v61 = vpop.f32.mrb[16].mxu0  ;;  %v445_v62 = vpop.f32.mrb[16].mxu1 }
 0x119   :  { %639 = vst.msk [vmem:[%s1182_s3 + $0x1c] sm:$0xf] %vm631_vm1, %v763_v59  ;;  %655 = vst.msk [vmem:[%s1182_s3 + $0x5c] sm:$0xf] %vm631_vm1, %v779_v60  ;;  %v382_v63 = vadd.f32 %v1022_v43, %v381_v61  ;;  %v446_v0 = vadd.f32 %v1022_v43, %v445_v62  ;;  %v383_v1 = vpop.f32.mrb[17].mxu0  ;;  %v447_v2 = vpop.f32.mrb[17].mxu1 }
 0x11a   :  { %v384_v3 = vpop.f32.mrb[18].mxu0  ;;  %v448_v4 = vpop.f32.mrb[18].mxu1 }
 0x11b   :  { %v483_v5 = vmax.f32 %v382_v63, 0.0  ;;  %v499_v6 = vmax.f32 %v446_v0, 0.0  ;;  %v385_v7 = vadd.f32 %v1022_v43, %v384_v3  ;;  %v449_v8 = vadd.f32 %v1022_v43, %v448_v4  ;;  %v386_v9 = vpop.f32.mrb[19].mxu0  ;;  %v450_v10 = vpop.f32.mrb[19].mxu1 }
 0x11d   :  { %v764_v11 = vpack.c.bf16 %v483_v5, %v483_v5  ;;  %v780_v12 = vpack.c.bf16 %v499_v6, %v499_v6  ;;  %v484_v13 = vmax.f32 %v385_v7, 0.0  ;;  %v500_v14 = vmax.f32 %v449_v8, 0.0 }
 0x11f   :  { %640 = vst.msk [vmem:[%s1182_s3 + $0x20] sm:$0xf] %vm631_vm1, %v764_v11  ;;  %656 = vst.msk [vmem:[%s1182_s3 + $0x60] sm:$0xf] %vm631_vm1, %v780_v12  ;;  %v765_v15 = vpack.c.bf16 %v484_v13, %v484_v13  ;;  %v781_v16 = vpack.c.bf16 %v500_v14, %v500_v14 }
 0x120   :  { %v389_v17 = vpop.f32.mrb[20].mxu0  ;;  %v453_v18 = vpop.f32.mrb[20].mxu1 }
 0x121   :  { %641 = vst.msk [vmem:[%s1182_s3 + $0x24] sm:$0xf] %vm631_vm1, %v765_v15  ;;  %657 = vst.msk [vmem:[%s1182_s3 + $0x64] sm:$0xf] %vm631_vm1, %v781_v16  ;;  %v390_v19 = vadd.f32 %v1022_v43, %v389_v17  ;;  %v454_v20 = vadd.f32 %v1022_v43, %v453_v18  ;;  %v391_v21 = vpop.f32.mrb[21].mxu0  ;;  %v455_v22 = vpop.f32.mrb[21].mxu1 }
 0x122   :  { %v392_v23 = vpop.f32.mrb[22].mxu0  ;;  %v456_v24 = vpop.f32.mrb[22].mxu1 }
 0x123   :  { %v485_v25 = vmax.f32 %v390_v19, 0.0  ;;  %v501_v26 = vmax.f32 %v454_v20, 0.0  ;;  %v393_v27 = vadd.f32 %v1022_v43, %v392_v23  ;;  %v457_v28 = vadd.f32 %v1022_v43, %v456_v24  ;;  %v394_v29 = vpop.f32.mrb[23].mxu0  ;;  %v458_v30 = vpop.f32.mrb[23].mxu1 }
 0x125   :  { %v766_v31 = vpack.c.bf16 %v485_v25, %v485_v25  ;;  %v782_v32 = vpack.c.bf16 %v501_v26, %v501_v26  ;;  %v486_v33 = vmax.f32 %v393_v27, 0.0  ;;  %v502_v34 = vmax.f32 %v457_v28, 0.0 }
 0x127   :  { %642 = vst.msk [vmem:[%s1182_s3 + $0x28] sm:$0xf] %vm631_vm1, %v766_v31  ;;  %658 = vst.msk [vmem:[%s1182_s3 + $0x68] sm:$0xf] %vm631_vm1, %v782_v32  ;;  %v767_v35 = vpack.c.bf16 %v486_v33, %v486_v33  ;;  %v783_v36 = vpack.c.bf16 %v502_v34, %v502_v34 }
 0x128   :  { %v397_v37 = vpop.f32.mrb[24].mxu0  ;;  %v461_v38 = vpop.f32.mrb[24].mxu1 }
 0x129   :  { %643 = vst.msk [vmem:[%s1182_s3 + $0x2c] sm:$0xf] %vm631_vm1, %v767_v35  ;;  %659 = vst.msk [vmem:[%s1182_s3 + $0x6c] sm:$0xf] %vm631_vm1, %v783_v36  ;;  %v398_v39 = vadd.f32 %v1022_v43, %v397_v37  ;;  %v462_v40 = vadd.f32 %v1022_v43, %v461_v38  ;;  %v399_v41 = vpop.f32.mrb[25].mxu0  ;;  %v463_v42 = vpop.f32.mrb[25].mxu1 }
 0x12a   :  { %v400_v44 = vpop.f32.mrb[26].mxu0  ;;  %v464_v45 = vpop.f32.mrb[26].mxu1 }
 0x12b   :  { %v487_v46 = vmax.f32 %v398_v39, 0.0  ;;  %v503_v47 = vmax.f32 %v462_v40, 0.0  ;;  %v401_v48 = vadd.f32 %v1022_v43, %v400_v44  ;;  %v465_v49 = vadd.f32 %v1022_v43, %v464_v45  ;;  %v402_v50 = vpop.f32.mrb[27].mxu0  ;;  %v466_v51 = vpop.f32.mrb[27].mxu1 }
 0x12d   :  { %v768_v52 = vpack.c.bf16 %v487_v46, %v487_v46  ;;  %v784_v53 = vpack.c.bf16 %v503_v47, %v503_v47  ;;  %v488_v54 = vmax.f32 %v401_v48, 0.0  ;;  %v504_v55 = vmax.f32 %v465_v49, 0.0 }
 0x12f   :  { %644 = vst.msk [vmem:[%s1182_s3 + $0x30] sm:$0xf] %vm631_vm1, %v768_v52  ;;  %660 = vst.msk [vmem:[%s1182_s3 + $0x70] sm:$0xf] %vm631_vm1, %v784_v53  ;;  %v769_v56 = vpack.c.bf16 %v488_v54, %v488_v54  ;;  %v785_v57 = vpack.c.bf16 %v504_v55, %v504_v55 }
 0x130   :  { %v405_v58 = vpop.f32.mrb[28].mxu0  ;;  %v469_v59 = vpop.f32.mrb[28].mxu1 }
 0x131   :  { %645 = vst.msk [vmem:[%s1182_s3 + $0x34] sm:$0xf] %vm631_vm1, %v769_v56  ;;  %661 = vst.msk [vmem:[%s1182_s3 + $0x74] sm:$0xf] %vm631_vm1, %v785_v57  ;;  %v406_v60 = vadd.f32 %v1022_v43, %v405_v58  ;;  %v470_v61 = vadd.f32 %v1022_v43, %v469_v59  ;;  %v407_v62 = vpop.f32.mrb[29].mxu0  ;;  %v471_v63 = vpop.f32.mrb[29].mxu1 }
 0x132   :  { %v408_v0 = vpop.f32.mrb[30].mxu0  ;;  %v472_v1 = vpop.f32.mrb[30].mxu1 }
 0x133   :  { %v489_v2 = vmax.f32 %v406_v60, 0.0  ;;  %v505_v3 = vmax.f32 %v470_v61, 0.0  ;;  %v409_v4 = vadd.f32 %v1022_v43, %v408_v0  ;;  %v410_v5 = vpop.f32.mrb[31].mxu0  ;;  %v473_v6 = vpop.f32.mrb[31].mxu1 }
 0x135   :  { %v770_v7 = vpack.c.bf16 %v489_v2, %v489_v2  ;;  %v786_v8 = vpack.c.bf16 %v505_v3, %v505_v3  ;;  %v490_v9 = vmax.f32 %v409_v4, 0.0 }
 0x137   :  { %646 = vst.msk [vmem:[%s1182_s3 + $0x38] sm:$0xf] %vm631_vm1, %v770_v7  ;;  %662 = vst.msk [vmem:[%s1182_s3 + $0x78] sm:$0xf] %vm631_vm1, %v786_v8  ;;  %v771_v10 = vpack.c.bf16 %v490_v9, %v490_v9 }
 0x139   :  { %647 = vst.msk [vmem:[%s1182_s3 + $0x3c] sm:$0xf] %vm631_vm1, %v771_v10 }

// kernel: net_forward.9
= control target key start
LH: loop header
LB: loop body
LE: loop exit
PB: predicated region body
PF: predicated region fallthrough
CT: control target
= control target key end

     0   :  { %vm235_vm0 = vcmask 261120   ;;  %vm412_vm1 = vcmask 519168   ;;  %s722_s1 = inlined_call_operand.vmem [shape: bf16[288,64], index: 1, kind: input, shape index: {}]   ;;  %s723_s0 = inlined_call_operand.vmem [shape: bf16[56,288], index: 0, kind: input, shape index: {}]   ;;  %s724_s2 = inlined_call_operand.vmem [shape: f32[1,64], index: 2, kind: input, shape index: {}]   ;;  %s725_s3 = inlined_call_operand.vmem [shape: bf16[56,64], index: 3, kind: output, shape index: {}]  }
   0x1   :  { %v547_v0 = vld [vmem:[%s722_s1 + $0x40] sm:$0xff]   ;;  %v549_v2 = vld [vmem:[%s722_s1 + $0x48] sm:$0xff]   ;;  %v551_v4 = vld [vmem:[%s722_s1 + $0x50] sm:$0xff]  }
   0x2   :  { %v548_v1 = vld [vmem:[%s722_s1] sm:$0xff]   ;;  %473 = vmatprep.subr.bf16.mxu0 %v547_v0  ;;  %531 = vmatprep.subr.bf16.mxu1 %v547_v0  ;;  %v550_v3 = vld [vmem:[%s722_s1 + $0x8] sm:$0xff]   ;;  %v552_v5 = vld [vmem:[%s722_s1 + $0x10] sm:$0xff]  }
   0x3   :  { %474 = vmatpush3.bf16.msra.mxu0 %v548_v1  ;;  %539 = vmatpush3.bf16.msra.mxu1 %v548_v1  ;;  %v553_v6 = vld [vmem:[%s722_s1 + $0x58] sm:$0xff]   ;;  %v555_v8 = vld [vmem:[%s722_s1 + $0x60] sm:$0xff]   ;;  %v557_v10 = vld [vmem:[%s722_s1 + $0x68] sm:$0xff]  }
   0x4   :  { %475 = vmatprep.subr.bf16.mxu0 %v549_v2  ;;  %532 = vmatprep.subr.bf16.mxu1 %v549_v2  ;;  %v554_v7 = vld [vmem:[%s722_s1 + $0x18] sm:$0xff]   ;;  %v556_v9 = vld [vmem:[%s722_s1 + $0x20] sm:$0xff]   ;;  %v27_v12 = vld [vmem:[%s723_s0 + $0x48] sm:$0xff] }
   0x5   :  { %v565_v11 = vld [vmem:[%s723_s0 + $0x4] ss:$12 sps:$4 sm:$0xff]   ;;  %v435_v13 = vcombine.high %v27_v12, %v27_v12  ;;  %v558_v14 = vld [vmem:[%s722_s1 + $0x28] sm:$0xff]   ;;  %v561_v17 = vld [vmem:[%s722_s1 + $0x78] sm:$0xff]   ;;  %v434_v21 = vcombine.low %v27_v12, %v27_v12 }
   0x6   :  { %v559_v15 = vld [vmem:[%s722_s1 + $0x70] sm:$0xff]   ;;  %280 = vmatprep.mubr.bf16.mxu0 %v565_v11  ;;  %v562_v18 = vld [vmem:[%s722_s1 + $0x38] sm:$0xff]   ;;  %v568_v19 = vld [vmem:[%s722_s1 + $0x80] sm:$0xff]  }
   0x7   :  { %476 = vmatpush3.bf16.msra.mxu0 %v550_v3  ;;  %540 = vmatpush3.bf16.msra.mxu1 %v550_v3  ;;  %v560_v16 = vld [vmem:[%s722_s1 + $0x30] sm:$0xff]   ;;  %v563_v20 = vld [vmem:[%s723_s0] ss:$12 sps:$4 sm:$0xff]   ;;  %v570_v22 = vld [vmem:[%s723_s0 + $0x1c] ss:$12 sps:$4 sm:$0xff]  }
   0x8   :  { %477 = vmatprep.subr.bf16.mxu0 %v551_v4  ;;  %533 = vmatprep.subr.bf16.mxu1 %v551_v4  ;;  %v569_v23 = vld [vmem:[%s722_s1 + $0x88] sm:$0xff]   ;;  %v573_v25 = vld [vmem:[%s723_s0 + $0x18] ss:$12 sps:$4 sm:$0xff]   ;;  %v575_v27 = vld [vmem:[%s723_s0 + $0x34] ss:$12 sps:$4 sm:$0xff]  }
   0x9   :  { %304 = vmatprep.mubr.bf16.mxu1 %v435_v13  ;;  %v572_v24 = vld [vmem:[%s723_s0 + $0x8] ss:$12 sps:$4 sm:$0xff]   ;;  %v574_v26 = vld [vmem:[%s723_s0 + $0x20] ss:$12 sps:$4 sm:$0xff]   ;;  %v577_v28 = vld [vmem:[%s723_s0 + $0x38] ss:$12 sps:$4 sm:$0xff]  }
   0xa   :  { %v578_v29 = vld [vmem:[%s723_s0 + $0x30] ss:$12 sps:$4 sm:$0xff]   ;;  %v424_v42 = vld [vmem:[%s724_s2] ss:$0 sm:$0xff] }
   0xb   :  { %478 = vmatpush3.bf16.msra.mxu0 %v552_v5  ;;  %541 = vmatpush3.bf16.msra.mxu1 %v552_v5  ;;  %v579_v30 = vld [vmem:[%s723_s0 + $0x50] ss:$0 sps:$4 sm:$0xff]  }
   0xc   :  { %479 = vmatprep.subr.bf16.mxu0 %v553_v6  ;;  %534 = vmatprep.subr.bf16.mxu1 %v553_v6 }
   0xf   :  { %480 = vmatpush3.bf16.msra.mxu0 %v554_v7  ;;  %542 = vmatpush3.bf16.msra.mxu1 %v554_v7 }
  0x10   :  { %481 = vmatprep.subr.bf16.mxu0 %v555_v8  ;;  %535 = vmatprep.subr.bf16.mxu1 %v555_v8 }
  0x13   :  { %482 = vmatpush3.bf16.msra.mxu0 %v556_v9  ;;  %543 = vmatpush3.bf16.msra.mxu1 %v556_v9 }
  0x14   :  { %483 = vmatprep.subr.bf16.mxu0 %v557_v10  ;;  %536 = vmatprep.subr.bf16.mxu1 %v557_v10 }
  0x17   :  { %484 = vmatpush3.bf16.msra.mxu0 %v558_v14  ;;  %544 = vmatpush3.bf16.msra.mxu1 %v558_v14 }
  0x18   :  { %485 = vmatprep.subr.bf16.mxu0 %v559_v15  ;;  %537 = vmatprep.subr.bf16.mxu1 %v559_v15 }
  0x1b   :  { %486 = vmatpush3.bf16.msra.mxu0 %v560_v16  ;;  %545 = vmatpush3.bf16.msra.mxu1 %v560_v16 }
  0x1c   :  { %487 = vmatprep.subr.bf16.mxu0 %v561_v17  ;;  %538 = vmatprep.subr.bf16.mxu1 %v561_v17 }
  0x1f   :  { %488 = vmatpush3.bf16.msra.mxu0 %v562_v18  ;;  %546 = vmatpush3.bf16.msra.mxu1 %v562_v18 }
  0x20   :  { %519 = vmatprep.subr.bf16.mxu1 %v568_v19 }
  0x22   :  { %281 = vmatmul.mubr.bf16.vlgmr.msra.gmra.mrb[0].mxu0 %v563_v20  ;;  %305 = vmatmul.mubr.bf16.vlgmr.msra.gmra.mrb[0].mxu1 %v434_v21 }
  0x23   :  { %520 = vmatpush3.bf16.msra.mxu1 %v568_v19  ;;  %288 = vmatprep.mubr.bf16.mxu0 %v570_v22 }
  0x24   :  { %521 = vmatprep.subr.bf16.mxu1 %v569_v23  ;;  %523 = vmatprep.mubr.msk.bf16.mxu1 %vm235_vm0, %v572_v24 }
  0x27   :  { %522 = vmatpush3.bf16.msra.mxu1 %v569_v23 }
  0x2a   :  { %289 = vmatmul.mubr.bf16.gmra.mrb[4].mxu0 %v573_v25  ;;  %524 = vmatmul.mubr.msk.bf16.vlgmr.msra.gmra.mrb[4].mxu1 %vm235_vm0, %v574_v26 }
  0x2b   :  { %296 = vmatprep.mubr.bf16.mxu0 %v575_v27  ;;  %527 = vmatprep.mubr.msk.bf16.mxu1 %vm235_vm0, %v577_v28 }
  0x32   :  { %297 = vmatmul.mubr.bf16.gmra.mrb[8].mxu0 %v578_v29  ;;  %528 = vmatmul.mubr.msk.bf16.gmra.mrb[8].mxu1 %vm235_vm0, %v579_v30 }
  0xf5   :  { %v489_v31 = vpop.f32.mrb[0].mxu0  ;;  %v507_v32 = vpop.f32.mrb[0].mxu1 }
  0xf6   :  { %v490_v33 = vpop.f32.mrb[1].mxu0  ;;  %v508_v34 = vpop.f32.mrb[1].mxu1 }
  0xf7   :  { %v491_v35 = vadd.f32 %v490_v33, %v489_v31  ;;  %v492_v36 = vpop.f32.mrb[2].mxu0  ;;  %v509_v37 = vadd.f32 %v508_v34, %v507_v32  ;;  %v510_v38 = vpop.f32.mrb[2].mxu1 }
  0xf8   :  { %v493_v39 = vpop.f32.mrb[3].mxu0  ;;  %v511_v40 = vpop.f32.mrb[3].mxu1 }
  0xf9   :  { %v494_v41 = vadd.f32 %v493_v39, %v492_v36  ;;  %v283_v45 = vadd.f32 %v491_v35, %v424_v42  ;;  %v307_v63 = vadd.f32 %v509_v37, %v424_v42 }
  0xfb   :  { %v286_v52 = vadd.f32 %v494_v41, %v424_v42 }
  0xfd   :  { %v495_v43 = vpop.f32.mrb[4].mxu0  ;;  %v525_v44 = vpop.f32.mrb[4].mxu1 }
  0xfe   :  { %v496_v46 = vpop.f32.mrb[5].mxu0  ;;  %v346_v47 = vpop.f32.mrb[5].mxu1 }
  0xff   :  { %v497_v48 = vadd.f32 %v496_v46, %v495_v43  ;;  %v347_v49 = vadd.f32 %v346_v47, %v283_v45  ;;  %v498_v50 = vpop.f32.mrb[6].mxu0  ;;  %v526_v51 = vpop.f32.mrb[6].mxu1 }
 0x100   :  { %v499_v53 = vpop.f32.mrb[7].mxu0  ;;  %v349_v54 = vpop.f32.mrb[7].mxu1 }
 0x101   :  { %v291_v55 = vadd.f32 %v497_v48, %v424_v42  ;;  %v376_v56 = vmax.f32 %v347_v49, 0.0  ;;  %v500_v57 = vadd.f32 %v499_v53, %v498_v50  ;;  %v350_v58 = vadd.f32 %v349_v54, %v286_v52 }
 0x103   :  { %v355_v59 = vadd.f32 %v525_v44, %v291_v55  ;;  %v466_v60 = vpack.c.bf16 %v376_v56, %v376_v56  ;;  %v294_v61 = vadd.f32 %v500_v57, %v424_v42  ;;  %v377_v62 = vmax.f32 %v350_v58, 0.0 }
 0x105   :  { %v378_v0 = vmax.f32 %v355_v59, 0.0  ;;  %413 = vst.msk [vmem:[%s725_s3] sm:$0xf] %vm412_vm1, %v466_v60  ;;  %v358_v1 = vadd.f32 %v526_v51, %v294_v61  ;;  %v467_v2 = vpack.c.bf16 %v377_v62, %v377_v62  ;;  %v501_v3 = vpop.f32.mrb[8].mxu0  ;;  %v529_v4 = vpop.f32.mrb[8].mxu1 }
 0x106   :  { %v371_v5 = vadd.f32 %v529_v4, %v307_v63  ;;  %v502_v6 = vpop.f32.mrb[9].mxu0  ;;  %v362_v7 = vpop.f32.mrb[9].mxu1 }
 0x107   :  { %v468_v8 = vpack.c.bf16 %v378_v0, %v378_v0  ;;  %v379_v9 = vmax.f32 %v358_v1, 0.0  ;;  %414 = vst.msk [vmem:[%s725_s3 + $0x4] sm:$0xf] %vm412_vm1, %v467_v2  ;;  %v503_v10 = vadd.f32 %v502_v6, %v501_v3  ;;  %v504_v11 = vpop.f32.mrb[10].mxu0  ;;  %v530_v12 = vpop.f32.mrb[10].mxu1 }
 0x108   :  { %v382_v13 = vmax.f32 %v371_v5, 0.0  ;;  %v505_v14 = vpop.f32.mrb[11].mxu0  ;;  %v365_v15 = vpop.f32.mrb[11].mxu1 }
 0x109   :  { %415 = vst.msk [vmem:[%s725_s3 + $0x8] sm:$0xf] %vm412_vm1, %v468_v8  ;;  %v469_v16 = vpack.c.bf16 %v379_v9, %v379_v9  ;;  %v299_v17 = vadd.f32 %v503_v10, %v424_v42  ;;  %v506_v18 = vadd.f32 %v505_v14, %v504_v11 }
 0x10a   :  { %v472_v19 = vpack.c.bf16 %v382_v13, %v382_v13 }
 0x10b   :  { %416 = vst.msk [vmem:[%s725_s3 + $0xc] sm:$0xf] %vm412_vm1, %v469_v16  ;;  %v363_v20 = vadd.f32 %v362_v7, %v299_v17  ;;  %v302_v21 = vadd.f32 %v506_v18, %v424_v42 }
 0x10c   :  { %419 = vst.msk [vmem:[%s725_s3 + $0x18] sm:$0xf] %vm412_vm1, %v472_v19 }
 0x10d   :  { %v380_v22 = vmax.f32 %v363_v20, 0.0  ;;  %v366_v23 = vadd.f32 %v365_v15, %v302_v21 }
 0x10f   :  { %v470_v24 = vpack.c.bf16 %v380_v22, %v380_v22  ;;  %v381_v25 = vmax.f32 %v366_v23, 0.0 }
 0x111   :  { %417 = vst.msk [vmem:[%s725_s3 + $0x10] sm:$0xf] %vm412_vm1, %v470_v24  ;;  %v471_v26 = vpack.c.bf16 %v381_v25, %v381_v25 }
 0x113   :  { %418 = vst.msk [vmem:[%s725_s3 + $0x14] sm:$0xf] %vm412_vm1, %v471_v26 }

// kernel: net_forward.10
= control target key start
LH: loop header
LB: loop body
LE: loop exit
PB: predicated region body
PF: predicated region fallthrough
CT: control target
= control target key end

     0   :  { %vm361_vm0 = vcmask 523264   ;;  %s878_s1 = inlined_call_operand.vmem [shape: bf16[576,128], index: 1, kind: input, shape index: {}]   ;;  %s879_s0 = inlined_call_operand.vmem [shape: bf16[24,576], index: 0, kind: input, shape index: {}]   ;;  %s880_s2 = inlined_call_operand.vmem [shape: f32[1,128], index: 2, kind: input, shape index: {}]   ;;  %s881_s3 = inlined_call_operand.vmem [shape: bf16[24,128], index: 3, kind: output, shape index: {}]  }
   0x1   :  { %v669_v0 = vld [vmem:[%s878_s1 + $0x40] sm:$0xff]   ;;  %v673_v4 = vld [vmem:[%s878_s1 + $0x48] sm:$0xff]   ;;  %v677_v8 = vld [vmem:[%s878_s1 + $0x50] sm:$0xff]  }
   0x2   :  { %v670_v1 = vld [vmem:[%s878_s1] sm:$0xff]   ;;  %595 = vmatprep.subr.bf16.mxu0 %v669_v0  ;;  %v674_v5 = vld [vmem:[%s878_s1 + $0x8] sm:$0xff]   ;;  %v678_v9 = vld [vmem:[%s878_s1 + $0x10] sm:$0xff]  }
   0x3   :  { %v671_v2 = vld [vmem:[%s878_s1 + $0xc0] sm:$0xff]   ;;  %596 = vmatpush3.bf16.msra.mxu0 %v670_v1  ;;  %v675_v6 = vld [vmem:[%s878_s1 + $0xc8] sm:$0xff]   ;;  %v679_v10 = vld [vmem:[%s878_s1 + $0xd0] sm:$0xff]  }
   0x4   :  { %v672_v3 = vld [vmem:[%s878_s1 + $0x80] sm:$0xff]   ;;  %623 = vmatprep.subr.bf16.mxu1 %v671_v2  ;;  %597 = vmatprep.subr.bf16.mxu0 %v673_v4  ;;  %v676_v7 = vld [vmem:[%s878_s1 + $0x88] sm:$0xff]   ;;  %v680_v11 = vld [vmem:[%s878_s1 + $0x90] sm:$0xff]  }
   0x5   :  { %624 = vmatpush3.bf16.msra.mxu1 %v672_v3  ;;  %v681_v12 = vld [vmem:[%s878_s1 + $0x58] sm:$0xff]   ;;  %v685_v16 = vld [vmem:[%s878_s1 + $0x60] sm:$0xff]   ;;  %v689_v20 = vld [vmem:[%s878_s1 + $0x68] sm:$0xff]  }
   0x6   :  { %625 = vmatprep.subr.bf16.mxu1 %v675_v6  ;;  %v682_v13 = vld [vmem:[%s878_s1 + $0x18] sm:$0xff]   ;;  %v686_v17 = vld [vmem:[%s878_s1 + $0x20] sm:$0xff]   ;;  %v690_v21 = vld [vmem:[%s878_s1 + $0x28] sm:$0xff]  }
   0x7   :  { %598 = vmatpush3.bf16.msra.mxu0 %v674_v5  ;;  %v683_v14 = vld [vmem:[%s878_s1 + $0xd8] sm:$0xff]   ;;  %v687_v18 = vld [vmem:[%s878_s1 + $0xe0] sm:$0xff]   ;;  %v691_v22 = vld [vmem:[%s878_s1 + $0xe8] sm:$0xff]  }
   0x8   :  { %599 = vmatprep.subr.bf16.mxu0 %v677_v8  ;;  %v684_v15 = vld [vmem:[%s878_s1 + $0x98] sm:$0xff]   ;;  %v688_v19 = vld [vmem:[%s878_s1 + $0xa0] sm:$0xff]   ;;  %v692_v23 = vld [vmem:[%s878_s1 + $0xa8] sm:$0xff]  }
   0x9   :  { %626 = vmatpush3.bf16.msra.mxu1 %v676_v7  ;;  %v693_v24 = vld [vmem:[%s878_s1 + $0x70] sm:$0xff]   ;;  %v697_v28 = vld [vmem:[%s878_s1 + $0x78] sm:$0xff]   ;;  %v704_v34 = vld [vmem:[%s878_s1 + $0x100] sm:$0xff]  }
   0xa   :  { %627 = vmatprep.subr.bf16.mxu1 %v679_v10  ;;  %v694_v25 = vld [vmem:[%s878_s1 + $0x30] sm:$0xff]   ;;  %v698_v29 = vld [vmem:[%s878_s1 + $0x38] sm:$0xff]   ;;  %v707_v36 = vld [vmem:[%s879_s0 + $0xc] ss:$20 sps:$4 sm:$0xff]  }
   0xb   :  { %600 = vmatpush3.bf16.msra.mxu0 %v678_v9  ;;  %v695_v26 = vld [vmem:[%s878_s1 + $0xf0] sm:$0xff]   ;;  %v699_v30 = vld [vmem:[%s878_s1 + $0xf8] sm:$0xff]   ;;  %v708_v37 = vld [vmem:[%s878_s1 + $0x108] sm:$0xff]   ;;  %448 = vmatprep.mubr.bf16.mxu1 %v707_v36 }
   0xc   :  { %601 = vmatprep.subr.bf16.mxu0 %v681_v12  ;;  %v696_v27 = vld [vmem:[%s878_s1 + $0xb0] sm:$0xff]   ;;  %v702_v32 = vld [vmem:[%s879_s0 + $0x4] ss:$20 sps:$4 sm:$0xff]   ;;  %v705_v35 = vld [vmem:[%s879_s0 + $0x8] ss:$20 sps:$4 sm:$0xff]  }
   0xd   :  { %628 = vmatpush3.bf16.msra.mxu1 %v680_v11  ;;  %v700_v31 = vld [vmem:[%s879_s0] ss:$20 sps:$4 sm:$0xff]   ;;  %v703_v33 = vld [vmem:[%s878_s1 + $0xb8] sm:$0xff]   ;;  %400 = vmatprep.mubr.bf16.mxu0 %v702_v32  ;;  %v21_v38 = vld [vmem:[%s879_s0 + $0x28] sm:$0xff] }
   0xe   :  { %629 = vmatprep.subr.bf16.mxu1 %v683_v14  ;;  %v542_v39 = vcombine.high %v21_v38, %v21_v38  ;;  %v711_v40 = vld [vmem:[%s878_s1 + $0x110] sm:$0xff]   ;;  %v541_v42 = vcombine.low %v21_v38, %v21_v38  ;;  %v714_v46 = vld [vmem:[%s878_s1 + $0x118] sm:$0xff]   ;;  %v535_v49 = vld [vmem:[%s880_s2] ss:$0 sm:$0xff] }
   0xf   :  { %602 = vmatpush3.bf16.msra.mxu0 %v682_v13  ;;  %v22_v41 = vld [vmem:[%s879_s0 + $0x30] sm:$0xff]  ;;  %v716_v47 = vld [vmem:[%s879_s0 + $0x38] ss:$0 sps:$4 sm:$0xff]  }
  0x10   :  { %603 = vmatprep.subr.bf16.mxu0 %v685_v16  ;;  %v544_v43 = vcombine.high %v22_v41, %v22_v41  ;;  %v715_v44 = vld [vmem:[%s879_s0 + $0x10] ss:$20 sps:$4 sm:$0xff]   ;;  %v543_v45 = vcombine.low %v22_v41, %v22_v41 }
  0x11   :  { %630 = vmatpush3.bf16.msra.mxu1 %v684_v15 }
  0x12   :  { %631 = vmatprep.subr.bf16.mxu1 %v687_v18 }
  0x13   :  { %604 = vmatpush3.bf16.msra.mxu0 %v686_v17 }
  0x14   :  { %605 = vmatprep.subr.bf16.mxu0 %v689_v20 }
  0x15   :  { %632 = vmatpush3.bf16.msra.mxu1 %v688_v19 }
  0x16   :  { %633 = vmatprep.subr.bf16.mxu1 %v691_v22 }
  0x17   :  { %606 = vmatpush3.bf16.msra.mxu0 %v690_v21 }
  0x18   :  { %607 = vmatprep.subr.bf16.mxu0 %v693_v24 }
  0x19   :  { %634 = vmatpush3.bf16.msra.mxu1 %v692_v23 }
  0x1a   :  { %635 = vmatprep.subr.bf16.mxu1 %v695_v26 }
  0x1b   :  { %608 = vmatpush3.bf16.msra.mxu0 %v694_v25 }
  0x1c   :  { %609 = vmatprep.subr.bf16.mxu0 %v697_v28 }
  0x1d   :  { %636 = vmatpush3.bf16.msra.mxu1 %v696_v27 }
  0x1e   :  { %637 = vmatprep.subr.bf16.mxu1 %v699_v30 }
  0x1f   :  { %610 = vmatpush3.bf16.msra.mxu0 %v698_v29 }
  0x20   :  { %657 = vmatprep.subr.bf16.mxu0 %v704_v34 }
  0x21   :  { %638 = vmatpush3.bf16.msra.mxu1 %v703_v33 }
  0x22   :  { %401 = vmatmul.mubr.bf16.vlgmr.msra.gmra.mrb[0].mxu0 %v700_v31 }
  0x23   :  { %658 = vmatpush3.bf16.msra.mxu0 %v704_v34  ;;  %408 = vmatprep.mubr.bf16.mxu0 %v542_v39 }
  0x24   :  { %449 = vmatmul.mubr.bf16.vlgmr.msra.gmra.mrb[0].mxu1 %v705_v35  ;;  %659 = vmatprep.subr.bf16.mxu0 %v708_v37 }
  0x25   :  { %456 = vmatprep.mubr.bf16.mxu1 %v544_v43 }
  0x27   :  { %660 = vmatpush3.bf16.msra.mxu0 %v708_v37 }
  0x28   :  { %661 = vmatprep.subr.bf16.mxu0 %v711_v40 }
  0x2a   :  { %409 = vmatmul.mubr.bf16.gmra.mrb[4].mxu0 %v541_v42 }
  0x2b   :  { %665 = vmatprep.mubr.msk.bf16.mxu0 %vm361_vm0, %v715_v44  ;;  %662 = vmatpush3.bf16.msra.mxu0 %v711_v40 }
  0x2c   :  { %457 = vmatmul.mubr.bf16.gmra.mrb[4].mxu1 %v543_v45  ;;  %663 = vmatprep.subr.bf16.mxu0 %v714_v46 }
  0x2f   :  { %664 = vmatpush3.bf16.msra.mxu0 %v714_v46 }
  0x32   :  { %666 = vmatmul.mubr.msk.bf16.vlgmr.msra.gmra.mrb[8].mxu0 %vm361_vm0, %v716_v47 }
  0xf5   :  { %v611_v48 = vpop.f32.mrb[0].mxu0 }
  0xf6   :  { %v612_v50 = vpop.f32.mrb[1].mxu0 }
  0xf7   :  { %v613_v51 = vadd.f32 %v612_v50, %v611_v48  ;;  %v614_v52 = vpop.f32.mrb[2].mxu0  ;;  %v639_v53 = vpop.f32.mrb[0].mxu1 }
  0xf8   :  { %v615_v54 = vpop.f32.mrb[3].mxu0  ;;  %v640_v57 = vpop.f32.mrb[1].mxu1 }
  0xf9   :  { %v403_v55 = vadd.f32 %v613_v51, %v535_v49  ;;  %v616_v56 = vadd.f32 %v615_v54, %v614_v52  ;;  %v641_v58 = vadd.f32 %v640_v57, %v639_v53  ;;  %v642_v59 = vpop.f32.mrb[2].mxu1 }
  0xfa   :  { %v643_v61 = vpop.f32.mrb[3].mxu1 }
  0xfb   :  { %v406_v60 = vadd.f32 %v616_v56, %v535_v49  ;;  %v644_v62 = vadd.f32 %v643_v61, %v642_v59  ;;  %v451_v63 = vadd.f32 %v641_v58, %v403_v55 }
  0xfd   :  { %v617_v0 = vpop.f32.mrb[4].mxu0  ;;  %v454_v2 = vadd.f32 %v644_v62, %v406_v60 }
  0xfe   :  { %v618_v1 = vpop.f32.mrb[5].mxu0 }
  0xff   :  { %v619_v3 = vadd.f32 %v618_v1, %v617_v0  ;;  %v620_v4 = vpop.f32.mrb[6].mxu0  ;;  %v645_v5 = vpop.f32.mrb[4].mxu1 }
 0x100   :  { %v621_v6 = vpop.f32.mrb[7].mxu0  ;;  %v646_v8 = vpop.f32.mrb[5].mxu1 }
 0x101   :  { %v411_v7 = vadd.f32 %v619_v3, %v535_v49  ;;  %v647_v9 = vadd.f32 %v646_v8, %v645_v5  ;;  %v648_v10 = vpop.f32.mrb[6].mxu1 }
 0x102   :  { %v649_v11 = vpop.f32.mrb[7].mxu1 }
 0x103   :  { %v459_v12 = vadd.f32 %v647_v9, %v411_v7 }
 0x105   :  { %v667_v13 = vpop.f32.mrb[8].mxu0 }
 0x106   :  { %v507_v14 = vadd.f32 %v667_v13, %v459_v12  ;;  %v498_v15 = vpop.f32.mrb[9].mxu0 }
 0x107   :  { %v499_v16 = vadd.f32 %v498_v15, %v451_v63  ;;  %v668_v17 = vpop.f32.mrb[10].mxu0 }
 0x108   :  { %v514_v18 = vmax.f32 %v507_v14, 0.0  ;;  %v501_v19 = vpop.f32.mrb[11].mxu0 }
 0x109   :  { %v502_v20 = vadd.f32 %v501_v19, %v454_v2  ;;  %v512_v22 = vmax.f32 %v499_v16, 0.0 }
 0x10a   :  { %v589_v21 = vpack.c.bf16 %v514_v18, %v514_v18 }
 0x10b   :  { %v513_v23 = vmax.f32 %v502_v20, 0.0 }
 0x10c   :  { %530 = vst [vmem:[%s881_s3 + $0x8] sm:$0xf] %v589_v21 }
 0x10d   :  { %v593_v24 = vpack.c.bf16 %v513_v23, %v512_v22 }
 0x10f   :  { %594 = vst [vmem:[%s881_s3] sm:$0xff] %v593_v24  }

// kernel: net_forward.11
= control target key start
LH: loop header
LB: loop body
LE: loop exit
PB: predicated region body
PF: predicated region fallthrough
CT: control target
= control target key end

     0   :  { %s3079_s0 = inlined_call_operand.vmem [shape: bf16[2,1152], index: 0, kind: input, shape index: {}]   ;;  %s3080_s1 = inlined_call_operand.vmem [shape: bf16[1152,256], index: 1, kind: input, shape index: {}]   ;;  %s3081_s2 = inlined_call_operand.vmem [shape: f32[1,256], index: 2, kind: input, shape index: {}]   ;;  %s3082_s3 = inlined_call_operand.vmem [shape: f32[256,200], index: 3, kind: input, shape index: {}]   ;;  %s3083_s4 = inlined_call_operand.vmem [shape: f32[1,200], index: 4, kind: input, shape index: {}]   ;;  %s3084_s5 = inlined_call_operand.vmem [shape: f32[200,3], index: 5, kind: input, shape index: {}]   ;;  %s3085_s6 = inlined_call_operand.vmem [shape: f32[1,3], index: 6, kind: input, shape index: {}]   ;;  %s3086_s7 = inlined_call_operand.vmem [shape: f32[200,1], index: 7, kind: input, shape index: {}]   ;;  %s3087_s8 = inlined_call_operand.<no memory space> [shape: f32[1,1], index: 8, kind: input, shape index: {}]   ;;  %s3088_s9 = inlined_call_operand.hbm [shape: f32[2,3], index: 9, kind: output, shape index: {0}]   ;;  %s3089_s10 = inlined_call_operand.vmem [shape: f32[2,1], index: 10, kind: output, shape index: {1}]  }
   0x1   :  { %v16_v0 = vstv %s3087_s8 }
   0x2   :  { %17 = vst [vmem:[#allocation2] sm:$0x1] %v16_v0 }
   0x3   :  { %v1893_v1 = vld [vmem:[%s3080_s1 + $0x104] ss:$8 sps:$4 sm:$0xff]   ;;  %v1895_v2 = vld [vmem:[%s3080_s1 + $0x100] ss:$8 sps:$4 sm:$0xff]   ;;  %v1896_v3 = vld [vmem:[%s3080_s1 + $0x114] ss:$8 sps:$4 sm:$0xff]   ;;  %v186_v8 = vlaneseq }
   0x4   :  { %1031 = vmatprep.subr.bf16.mxu0 %v1893_v1  ;;  %v1898_v4 = vld [vmem:[%s3080_s1 + $0x110] ss:$8 sps:$4 sm:$0xff]   ;;  %v1899_v5 = vld [vmem:[%s3080_s1 + $0x124] ss:$8 sps:$4 sm:$0xff]   ;;  %v1901_v6 = vld [vmem:[%s3080_s1 + $0x120] ss:$8 sps:$4 sm:$0xff]  }
   0x5   :  { %1032 = vmatpush1.bf16.msra.mxu0 %v1895_v2  ;;  %v1902_v7 = vld [vmem:[%s3080_s1 + $0x134] ss:$8 sps:$4 sm:$0xff]   ;;  %v2138_v9 = vmov 1966171168   ;;  %v1904_v11 = vld [vmem:[%s3080_s1 + $0x130] ss:$8 sps:$4 sm:$0xff]  }
   0x6   :  { %1033 = vmatprep.subr.bf16.mxu0 %v1896_v3  ;;  %v200_v10 = vunpack.c.l.s4 %v2138_v9  ;;  %v1905_v12 = vld [vmem:[%s3080_s1 + $0x144] ss:$8 sps:$4 sm:$0xff]   ;;  %v2228_v13 = vshrl.u32 %v186_v8, 7  ;;  %v1907_v15 = vld [vmem:[%s3080_s1 + $0x140] ss:$8 sps:$4 sm:$0xff]  }
   0x7   :  { %v1908_v16 = vld [vmem:[%s3080_s1 + $0x154] ss:$8 sps:$4 sm:$0xff]   ;;  %v1910_v18 = vld [vmem:[%s3080_s1 + $0x150] ss:$8 sps:$4 sm:$0xff]   ;;  %v1911_v19 = vld [vmem:[%s3080_s1 + $0x164] ss:$8 sps:$4 sm:$0xff]  }
   0x8   :  { %v201_v14 = vunpack.c.0.s8 %v200_v10  ;;  %v38_v20 = vld [vmem:[%s3079_s0] sm:$0xff]  ;;  %v1914_v23 = vld [vmem:[%s3080_s1 + $0x174] ss:$8 sps:$4 sm:$0xff]   ;;  %v1916_v26 = vld [vmem:[%s3080_s1 + $0x170] ss:$8 sps:$4 sm:$0xff]  }
   0x9   :  { %1034 = vmatpush1.bf16.msra.mxu0 %v1898_v4  ;;  %v1913_v22 = vld [vmem:[%s3080_s1 + $0x160] ss:$8 sps:$4 sm:$0xff]   ;;  %v1917_v27 = vld [vmem:[%s3080_s1 + $0x184] ss:$8 sps:$4 sm:$0xff]   ;;  %v1920_v30 = vld [vmem:[%s3080_s1 + $0x194] ss:$8 sps:$4 sm:$0xff]   ;;  %v198_v40 = vcombine.high %v38_v20, %v38_v20 }
   0xa   :  { %1035 = vmatprep.subr.bf16.mxu0 %v1899_v5  ;;  %v2237_v17 = vsub.s32 %v201_v14, %v2228_v13  ;;  %v1919_v29 = vld [vmem:[%s3080_s1 + $0x180] ss:$8 sps:$4 sm:$0xff]   ;;  %v1922_v31 = vld [vmem:[%s3080_s1 + $0x190] ss:$8 sps:$4 sm:$0xff]   ;;  %v1923_v32 = vld [vmem:[%s3080_s1 + $0x1a4] ss:$8 sps:$4 sm:$0xff]  }
   0xb   :  { %v1925_v33 = vld [vmem:[%s3080_s1 + $0x1a0] ss:$8 sps:$4 sm:$0xff]   ;;  %v1926_v34 = vld [vmem:[%s3080_s1 + $0x1b4] ss:$8 sps:$4 sm:$0xff]   ;;  %v1928_v35 = vld [vmem:[%s3080_s1 + $0x1b0] ss:$8 sps:$4 sm:$0xff]  }
   0xc   :  { %v205_v21 = vrot.slane %v38_v20, %v2237_v17  ;;  %v1929_v36 = vld [vmem:[%s3080_s1 + $0x1c4] ss:$8 sps:$4 sm:$0xff]   ;;  %v1931_v37 = vld [vmem:[%s3080_s1 + $0x1c0] ss:$8 sps:$4 sm:$0xff]   ;;  %v1932_v38 = vld [vmem:[%s3080_s1 + $0x1d4] ss:$8 sps:$4 sm:$0xff]   ;;  %v2311_v46 = vrot.slane %v198_v40, %v2237_v17 }
   0xd   :  { %1036 = vmatpush1.bf16.msra.mxu0 %v1901_v6  ;;  %v1934_v39 = vld [vmem:[%s3080_s1 + $0x1d0] ss:$8 sps:$4 sm:$0xff]   ;;  %v1935_v41 = vld [vmem:[%s3080_s1 + $0x1e4] ss:$8 sps:$4 sm:$0xff]   ;;  %v2013_v43 = vld [vmem:[%s3080_s1] ss:$8 sps:$4 sm:$0xff]  }
   0xe   :  { %1037 = vmatprep.subr.bf16.mxu0 %v1902_v7  ;;  %v213_v24 = vcombine.high %v205_v21, %v205_v21  ;;  %v2011_v42 = vld [vmem:[%s3080_s1 + $0x4] ss:$8 sps:$4 sm:$0xff]   ;;  %v1937_v44 = vld [vmem:[%s3080_s1 + $0x1e0] ss:$8 sps:$4 sm:$0xff]   ;;  %v1938_v45 = vld [vmem:[%s3080_s1 + $0x1f4] ss:$8 sps:$4 sm:$0xff]   ;;  %v2323_v50 = vrot.slane %v205_v21, %v2237_v17  ;;  %v214_v53 = vcombine.high %v2311_v46, %v2311_v46 }
   0xf   :  { %990 = vmatprep.subr.bf16.mxu1 %v2011_v42  ;;  %v2017_v47 = vld [vmem:[%s3080_s1 + $0x14] ss:$8 sps:$4 sm:$0xff]   ;;  %v2019_v48 = vld [vmem:[%s3080_s1 + $0x10] ss:$8 sps:$4 sm:$0xff]   ;;  %v2023_v51 = vld [vmem:[%s3080_s1 + $0x24] ss:$8 sps:$4 sm:$0xff]  }
  0x10   :  { %v235_v25 = vrot.slane %v213_v24, %v2237_v17  ;;  %991 = vmatpush1.bf16.msra.mxu1 %v2013_v43  ;;  %v1940_v49 = vld [vmem:[%s3080_s1 + $0x1f0] ss:$8 sps:$4 sm:$0xff]   ;;  %v1944_v52 = vld [vmem:[%s3080_s1 + $0x204] ss:$8 sps:$4 sm:$0xff]   ;;  %v2025_v54 = vld [vmem:[%s3080_s1 + $0x20] ss:$8 sps:$4 sm:$0xff]   ;;  %v243_v57 = vcombine.high %v2323_v50, %v2323_v50  ;;  %v2348_v59 = vrot.slane %v214_v53, %v2237_v17 }
  0x11   :  { %1038 = vmatpush1.bf16.msra.mxu0 %v1904_v11  ;;  %992 = vmatprep.subr.bf16.mxu1 %v2017_v47  ;;  %v2029_v55 = vld [vmem:[%s3080_s1 + $0x34] ss:$8 sps:$4 sm:$0xff]   ;;  %v1942_v56 = vld [vmem:[%s3080_s1 + $0x200] ss:$8 sps:$4 sm:$0xff]   ;;  %v2031_v60 = vld [vmem:[%s3080_s1 + $0x30] ss:$8 sps:$4 sm:$0xff]  }
  0x12   :  { %1039 = vmatprep.subr.bf16.mxu0 %v1905_v12  ;;  %v245_v28 = vcombine.high %v235_v25, %v235_v25  ;;  %1022 = vmatprep.mubr.bf16.mxu1 %v235_v25  ;;  %v1947_v58 = vld [vmem:[%s3080_s1 + $0x214] ss:$8 sps:$4 sm:$0xff]   ;;  %v2035_v61 = vld [vmem:[%s3080_s1 + $0x44] ss:$8 sps:$4 sm:$0xff]   ;;  %v1945_v62 = vld [vmem:[%s3080_s1 + $0x210] ss:$8 sps:$4 sm:$0xff]  }
  0x13   :  { %v1950_v63 = vld [vmem:[%s3080_s1 + $0x224] ss:$8 sps:$4 sm:$0xff]   ;;  %v2037_v0 = vld [vmem:[%s3080_s1 + $0x40] ss:$8 sps:$4 sm:$0xff]   ;;  %v2041_v1 = vld [vmem:[%s3080_s1 + $0x54] ss:$8 sps:$4 sm:$0xff]  }
  0x14   :  { %1063 = vmatprep.mubr.bf16.mxu0 %v245_v28  ;;  %993 = vmatpush1.bf16.msra.mxu1 %v2019_v48  ;;  %v1948_v2 = vld [vmem:[%s3080_s1 + $0x220] ss:$8 sps:$4 sm:$0xff]   ;;  %v1953_v3 = vld [vmem:[%s3080_s1 + $0x234] ss:$8 sps:$4 sm:$0xff]   ;;  %v2043_v4 = vld [vmem:[%s3080_s1 + $0x50] ss:$8 sps:$4 sm:$0xff]  }
  0x15   :  { %1040 = vmatpush1.bf16.msra.mxu0 %v1907_v15  ;;  %994 = vmatprep.subr.bf16.mxu1 %v2023_v51  ;;  %v2047_v5 = vld [vmem:[%s3080_s1 + $0x64] ss:$8 sps:$4 sm:$0xff]   ;;  %v1951_v6 = vld [vmem:[%s3080_s1 + $0x230] ss:$8 sps:$4 sm:$0xff]   ;;  %v2049_v8 = vld [vmem:[%s3080_s1 + $0x60] ss:$8 sps:$4 sm:$0xff]  }
  0x16   :  { %1041 = vmatprep.subr.bf16.mxu0 %v1908_v16  ;;  %v1956_v7 = vld [vmem:[%s3080_s1 + $0x244] ss:$8 sps:$4 sm:$0xff]   ;;  %v2053_v9 = vld [vmem:[%s3080_s1 + $0x74] ss:$8 sps:$4 sm:$0xff]   ;;  %v1954_v10 = vld [vmem:[%s3080_s1 + $0x240] ss:$8 sps:$4 sm:$0xff]  }
  0x17   :  { %v1959_v11 = vld [vmem:[%s3080_s1 + $0x254] ss:$8 sps:$4 sm:$0xff]   ;;  %v2055_v12 = vld [vmem:[%s3080_s1 + $0x70] ss:$8 sps:$4 sm:$0xff]   ;;  %v2059_v14 = vld [vmem:[%s3080_s1 + $0x84] ss:$8 sps:$4 sm:$0xff]  }
  0x18   :  { %995 = vmatpush1.bf16.msra.mxu1 %v2025_v54  ;;  %v1957_v15 = vld [vmem:[%s3080_s1 + $0x250] ss:$8 sps:$4 sm:$0xff]   ;;  %v1962_v16 = vld [vmem:[%s3080_s1 + $0x264] ss:$8 sps:$4 sm:$0xff]   ;;  %v1960_v20 = vld [vmem:[%s3080_s1 + $0x260] ss:$8 sps:$4 sm:$0xff]  }
  0x19   :  { %1042 = vmatpush1.bf16.msra.mxu0 %v1910_v18  ;;  %996 = vmatprep.subr.bf16.mxu1 %v2029_v55  ;;  %v2061_v18 = vld [vmem:[%s3080_s1 + $0x80] ss:$8 sps:$4 sm:$0xff]   ;;  %v1965_v21 = vld [vmem:[%s3080_s1 + $0x274] ss:$8 sps:$4 sm:$0xff]   ;;  %v1963_v24 = vld [vmem:[%s3080_s1 + $0x270] ss:$8 sps:$4 sm:$0xff]  }
  0x1a   :  { %1043 = vmatprep.subr.bf16.mxu0 %v1911_v19  ;;  %v2065_v19 = vld [vmem:[%s3080_s1 + $0x94] ss:$8 sps:$4 sm:$0xff]   ;;  %v1968_v25 = vld [vmem:[%s3080_s1 + $0x284] ss:$8 sps:$4 sm:$0xff]   ;;  %v1966_v28 = vld [vmem:[%s3080_s1 + $0x280] ss:$8 sps:$4 sm:$0xff]  }
  0x1c   :  { %997 = vmatpush1.bf16.msra.mxu1 %v2031_v60 }
  0x1d   :  { %1044 = vmatpush1.bf16.msra.mxu0 %v1913_v22  ;;  %998 = vmatprep.subr.bf16.mxu1 %v2035_v61  ;;  %v2067_v22 = vld [vmem:[%s3080_s1 + $0x90] ss:$8 sps:$4 sm:$0xff]  }
  0x1e   :  { %1045 = vmatprep.subr.bf16.mxu0 %v1914_v23  ;;  %v2071_v23 = vld [vmem:[%s3080_s1 + $0xa4] ss:$8 sps:$4 sm:$0xff]  }
  0x20   :  { %999 = vmatpush1.bf16.msra.mxu1 %v2037_v0 }
  0x21   :  { %1046 = vmatpush1.bf16.msra.mxu0 %v1916_v26  ;;  %1000 = vmatprep.subr.bf16.mxu1 %v2041_v1  ;;  %v2073_v26 = vld [vmem:[%s3080_s1 + $0xa0] ss:$8 sps:$4 sm:$0xff]  }
  0x22   :  { %1047 = vmatprep.subr.bf16.mxu0 %v1917_v27  ;;  %v2077_v27 = vld [vmem:[%s3080_s1 + $0xb4] ss:$8 sps:$4 sm:$0xff]  }
  0x24   :  { %1001 = vmatpush1.bf16.msra.mxu1 %v2043_v4 }
  0x25   :  { %1048 = vmatpush1.bf16.msra.mxu0 %v1919_v29  ;;  %1002 = vmatprep.subr.bf16.mxu1 %v2047_v5  ;;  %v1971_v29 = vld [vmem:[%s3080_s1 + $0x294] ss:$8 sps:$4 sm:$0xff]  }
  0x26   :  { %1049 = vmatprep.subr.bf16.mxu0 %v1920_v30  ;;  %v2079_v30 = vld [vmem:[%s3080_s1 + $0xb0] ss:$8 sps:$4 sm:$0xff]  }
  0x28   :  { %1003 = vmatpush1.bf16.msra.mxu1 %v2049_v8 }
  0x29   :  { %1050 = vmatpush1.bf16.msra.mxu0 %v1922_v31  ;;  %1004 = vmatprep.subr.bf16.mxu1 %v2053_v9  ;;  %v2083_v31 = vld [vmem:[%s3080_s1 + $0xc4] ss:$8 sps:$4 sm:$0xff]  }
  0x2a   :  { %1051 = vmatprep.subr.bf16.mxu0 %v1923_v32 }
  0x2c   :  { %1005 = vmatpush1.bf16.msra.mxu1 %v2055_v12 }
  0x2d   :  { %1052 = vmatpush1.bf16.msra.mxu0 %v1925_v33  ;;  %1006 = vmatprep.subr.bf16.mxu1 %v2059_v14 }
  0x2e   :  { %1053 = vmatprep.subr.bf16.mxu0 %v1926_v34 }
  0x30   :  { %1007 = vmatpush1.bf16.msra.mxu1 %v2061_v18 }
  0x31   :  { %1054 = vmatpush1.bf16.msra.mxu0 %v1928_v35  ;;  %1008 = vmatprep.subr.bf16.mxu1 %v2065_v19 }
  0x32   :  { %1055 = vmatprep.subr.bf16.mxu0 %v1929_v36 }
  0x34   :  { %1009 = vmatpush1.bf16.msra.mxu1 %v2067_v22 }
  0x35   :  { %1056 = vmatpush1.bf16.msra.mxu0 %v1931_v37  ;;  %1010 = vmatprep.subr.bf16.mxu1 %v2071_v23 }
  0x36   :  { %1057 = vmatprep.subr.bf16.mxu0 %v1932_v38 }
  0x38   :  { %1011 = vmatpush1.bf16.msra.mxu1 %v2073_v26 }
  0x39   :  { %1058 = vmatpush1.bf16.msra.mxu0 %v1934_v39  ;;  %1012 = vmatprep.subr.bf16.mxu1 %v2077_v27 }
  0x3a   :  { %1059 = vmatprep.subr.bf16.mxu0 %v1935_v41 }
  0x3d   :  { %1060 = vmatpush1.bf16.msra.mxu0 %v1937_v44 }
  0x3e   :  { %1061 = vmatprep.subr.bf16.mxu0 %v1938_v45 }
  0x41   :  { %1062 = vmatpush1.bf16.msra.mxu0 %v1940_v49 }
  0x42   :  { %1072 = vmatprep.subr.bf16.mxu0 %v1944_v52 }
  0x44   :  { %1064 = vmatmul.mubr.bf16.vlgmr.msra.gmra.mrb[0].mxu0 %v243_v57 }
  0x45   :  { %1073 = vmatpush1.bf16.msra.mxu0 %v1942_v56  ;;  %1104 = vmatprep.mubr.bf16.mxu0 %v2348_v59 }
  0x46   :  { %1074 = vmatprep.subr.bf16.mxu0 %v1947_v58 }
  0x49   :  { %1075 = vmatpush1.bf16.msra.mxu0 %v1945_v62 }
  0x4a   :  { %1076 = vmatprep.subr.bf16.mxu0 %v1950_v63 }
  0x4d   :  { %1077 = vmatpush1.bf16.msra.mxu0 %v1948_v2 }
  0x4e   :  { %1078 = vmatprep.subr.bf16.mxu0 %v1953_v3 }
  0x51   :  { %1079 = vmatpush1.bf16.msra.mxu0 %v1951_v6 }
  0x52   :  { %1080 = vmatprep.subr.bf16.mxu0 %v1956_v7 }
  0x55   :  { %1081 = vmatpush1.bf16.msra.mxu0 %v1954_v10 }
  0x56   :  { %1082 = vmatprep.subr.bf16.mxu0 %v1959_v11 }
  0x59   :  { %1083 = vmatpush1.bf16.msra.mxu0 %v1957_v15 }
  0x5a   :  { %1084 = vmatprep.subr.bf16.mxu0 %v1962_v16 }
  0x5d   :  { %1085 = vmatpush1.bf16.msra.mxu0 %v1960_v20 }
  0x5e   :  { %1086 = vmatprep.subr.bf16.mxu0 %v1965_v21 }
  0x61   :  { %1087 = vmatpush1.bf16.msra.mxu0 %v1963_v24 }
  0x62   :  { %1088 = vmatprep.subr.bf16.mxu0 %v1968_v25 }
  0x63   :  { %18 = vsyncpa [#allocation4], 0  ;;  %v1969_v32 = vld [vmem:[%s3080_s1 + $0x290] ss:$8 sps:$4 sm:$0xff]   ;;  %v1974_v33 = vld [vmem:[%s3080_s1 + $0x2a4] ss:$8 sps:$4 sm:$0xff]   ;;  %1013 = vmatpush1.bf16.msra.mxu1 %v2079_v30  ;;  %v2567_v15 = vrot.slane %v2311_v46, %v2237_v17  ;;  %v246_v20 = vcombine.high %v2348_v59, %v2348_v59 }
  0x64   :  { %v2085_v34 = vld [vmem:[%s3080_s1 + $0xc0] ss:$8 sps:$4 sm:$0xff]   ;;  %1014 = vmatprep.subr.bf16.mxu1 %v2083_v31  ;;  %v2089_v35 = vld [vmem:[%s3080_s1 + $0xd4] ss:$8 sps:$4 sm:$0xff]   ;;  %v2091_v38 = vld [vmem:[%s3080_s1 + $0xd0] ss:$8 sps:$4 sm:$0xff]  }
  0x65   :  { %1089 = vmatpush1.bf16.msra.mxu0 %v1966_v28  ;;  %v1972_v36 = vld [vmem:[%s3080_s1 + $0x2a0] ss:$8 sps:$4 sm:$0xff]   ;;  %v1977_v37 = vld [vmem:[%s3080_s1 + $0x2b4] ss:$8 sps:$4 sm:$0xff]   ;;  %v2095_v39 = vld [vmem:[%s3080_s1 + $0xe4] ss:$8 sps:$4 sm:$0xff]  }
  0x66   :  { %1090 = vmatprep.subr.bf16.mxu0 %v1971_v29  ;;  %v1975_v40 = vld [vmem:[%s3080_s1 + $0x2b0] ss:$8 sps:$4 sm:$0xff]   ;;  %v1980_v41 = vld [vmem:[%s3080_s1 + $0x2c4] ss:$8 sps:$4 sm:$0xff]   ;;  %v2097_v42 = vld [vmem:[%s3080_s1 + $0xe0] ss:$8 sps:$4 sm:$0xff]  }
  0x67   :  { %1015 = vmatpush1.bf16.msra.mxu1 %v2085_v34  ;;  %v2101_v43 = vld [vmem:[%s3080_s1 + $0xf4] ss:$8 sps:$4 sm:$0xff]   ;;  %v1198_v44 = vld [vmem:[%s3082_s3 + $0x8] sm:$0xff]  ;;  %v2103_v49 = vld [vmem:[%s3080_s1 + $0xf0] ss:$8 sps:$4 sm:$0xff]   ;;  %vm1378_vm0 = vcmask 588800  }
  0x68   :  { %1016 = vmatprep.subr.bf16.mxu1 %v2089_v35  ;;  %v1200_v45 = vld [vmem:[%s3082_s3 + $0x18] sm:$0xff]  ;;  %v1978_v47 = vld [vmem:[%s3080_s1 + $0x2c0] ss:$8 sps:$4 sm:$0xff]   ;;  %v1199_v53 = vld [vmem:[%s3082_s3 + $0x10] sm:$0xff]  ;;  %vm1554_vm1 = vcmask 17408   ;;  %vm1567_vm2 = vcmask 1024  }
  0x69   :  { %1091 = vmatpush1.bf16.msra.mxu0 %v1969_v32  ;;  %v1983_v48 = vld [vmem:[%s3080_s1 + $0x2d4] ss:$8 sps:$4 sm:$0xff]   ;;  %v1736_v51 = vpack.c.bf16 %v1200_v45, %v1198_v44  ;;  %v1197_v52 = vld [vmem:[%s3082_s3] sm:$0xff]  ;;  %v1202_v54 = vld [vmem:[%s3082_s3 + $0x28] sm:$0xff] }
  0x6a   :  { %1092 = vmatprep.subr.bf16.mxu0 %v1974_v33  ;;  %v1204_v55 = vld [vmem:[%s3082_s3 + $0x38] sm:$0xff]  ;;  %v1986_v57 = vld [vmem:[%s3080_s1 + $0x2e4] ss:$8 sps:$4 sm:$0xff]   ;;  %v1738_v58 = vpack.c.bf16 %v1199_v53, %v1197_v52  ;;  %v1203_v62 = vld [vmem:[%s3082_s3 + $0x30] sm:$0xff] }
  0x6b   :  { %1017 = vmatpush1.bf16.msra.mxu1 %v2091_v38  ;;  %v1981_v56 = vld [vmem:[%s3080_s1 + $0x2d0] ss:$8 sps:$4 sm:$0xff]   ;;  %v1740_v60 = vpack.c.bf16 %v1204_v55, %v1202_v54  ;;  %v1201_v61 = vld [vmem:[%s3082_s3 + $0x20] sm:$0xff]  ;;  %v1206_v63 = vld [vmem:[%s3082_s3 + $0x48] sm:$0xff] }
  0x6c   :  { %1018 = vmatprep.subr.bf16.mxu1 %v2095_v39  ;;  %v1208_v0 = vld [vmem:[%s3082_s3 + $0x58] sm:$0xff]  ;;  %v1984_v1 = vld [vmem:[%s3080_s1 + $0x2e0] ss:$8 sps:$4 sm:$0xff]   ;;  %v1742_v3 = vpack.c.bf16 %v1203_v62, %v1201_v61  ;;  %v1207_v6 = vld [vmem:[%s3082_s3 + $0x50] sm:$0xff] }
  0x6d   :  { %1093 = vmatpush1.bf16.msra.mxu0 %v1972_v36  ;;  %v1989_v2 = vld [vmem:[%s3080_s1 + $0x2f4] ss:$8 sps:$4 sm:$0xff]   ;;  %v1744_v4 = vpack.c.bf16 %v1208_v0, %v1206_v63  ;;  %v1205_v5 = vld [vmem:[%s3082_s3 + $0x40] sm:$0xff]  ;;  %v1987_v8 = vld [vmem:[%s3080_s1 + $0x2f0] ss:$8 sps:$4 sm:$0xff]  }
  0x6e   :  { %1094 = vmatprep.subr.bf16.mxu0 %v1977_v37  ;;  %v1212_v7 = vld [vmem:[%s3082_s3 + $0x78] sm:$0xff]  ;;  %v1992_v9 = vld [vmem:[%s3080_s1 + $0x304] ss:$8 sps:$4 sm:$0xff]   ;;  %v1746_v10 = vpack.c.bf16 %v1207_v6, %v1205_v5  ;;  %v1211_v14 = vld [vmem:[%s3082_s3 + $0x70] sm:$0xff] }
  0x6f   :  { %1019 = vmatpush1.bf16.msra.mxu1 %v2097_v42  ;;  %v1209_v12 = vld [vmem:[%s3082_s3 + $0x60] sm:$0xff]  ;;  %v1214_v16 = vld [vmem:[%s3082_s3 + $0x88] sm:$0xff]  ;;  %v1216_v18 = vld [vmem:[%s3082_s3 + $0x98] sm:$0xff] }
  0x70   :  { %1020 = vmatprep.subr.bf16.mxu1 %v2101_v43  ;;  %v1990_v19 = vld [vmem:[%s3080_s1 + $0x300] ss:$8 sps:$4 sm:$0xff]   ;;  %v1995_v46 = vld [vmem:[%s3080_s1 + $0x314] ss:$8 sps:$4 sm:$0xff]   ;;  %v1750_v21 = vpack.c.bf16 %v1211_v14, %v1209_v12  ;;  %v1752_v22 = vpack.c.bf16 %v1216_v18, %v1214_v16  ;;  %v1993_v26 = vld [vmem:[%s3080_s1 + $0x310] ss:$8 sps:$4 sm:$0xff]  }
  0x71   :  { %1095 = vmatpush1.bf16.msra.mxu0 %v1975_v40  ;;  %v1213_v23 = vld [vmem:[%s3082_s3 + $0x80] sm:$0xff]  ;;  %v1215_v24 = vld [vmem:[%s3082_s3 + $0x90] sm:$0xff]  ;;  %v1218_v59 = vld [vmem:[%s3082_s3 + $0xa8] sm:$0xff] }
  0x72   :  { %1096 = vmatprep.subr.bf16.mxu0 %v1980_v41  ;;  %v1220_v25 = vld [vmem:[%s3082_s3 + $0xb8] sm:$0xff]  ;;  %v1998_v27 = vld [vmem:[%s3080_s1 + $0x324] ss:$8 sps:$4 sm:$0xff]   ;;  %v1754_v28 = vpack.c.bf16 %v1215_v24, %v1213_v23  ;;  %v1219_v31 = vld [vmem:[%s3082_s3 + $0xb0] sm:$0xff] }
  0x73   :  { %1021 = vmatpush1.bf16.msra.mxu1 %v2103_v49  ;;  %v1756_v29 = vpack.c.bf16 %v1220_v25, %v1218_v59  ;;  %v1217_v30 = vld [vmem:[%s3082_s3 + $0xa0] sm:$0xff]  ;;  %v1222_v32 = vld [vmem:[%s3082_s3 + $0xc8] sm:$0xff]  ;;  %v1224_v33 = vld [vmem:[%s3082_s3 + $0xd8] sm:$0xff] }
  0x74   :  { %1737 = vmatprep.subr.bf16.mxu1 %v1736_v51  ;;  %v1996_v34 = vld [vmem:[%s3080_s1 + $0x320] ss:$8 sps:$4 sm:$0xff]   ;;  %v2001_v35 = vld [vmem:[%s3080_s1 + $0x334] ss:$8 sps:$4 sm:$0xff]   ;;  %v1758_v36 = vpack.c.bf16 %v1219_v31, %v1217_v30  ;;  %v1760_v37 = vpack.c.bf16 %v1224_v33, %v1222_v32  ;;  %v1999_v42 = vld [vmem:[%s3080_s1 + $0x330] ss:$8 sps:$4 sm:$0xff]  }
  0x75   :  { %1097 = vmatpush1.bf16.msra.mxu0 %v1978_v47  ;;  %v1221_v38 = vld [vmem:[%s3082_s3 + $0xc0] sm:$0xff]  ;;  %v1223_v39 = vld [vmem:[%s3082_s3 + $0xd0] sm:$0xff]  ;;  %v1226_v40 = vld [vmem:[%s3082_s3 + $0xe8] sm:$0xff] }
  0x76   :  { %1098 = vmatprep.subr.bf16.mxu0 %v1983_v48  ;;  %1023 = vmatmul.mubr.bf16.vlgmr.msra.gmra.mrb[0].mxu1 %v2323_v50  ;;  %v1210_v50 = vld [vmem:[%s3082_s3 + $0x68] sm:$0xff]  ;;  %v1228_v41 = vld [vmem:[%s3082_s3 + $0xf8] sm:$0xff]  ;;  %v1762_v44 = vpack.c.bf16 %v1223_v39, %v1221_v38  ;;  %v1225_v47 = vld [vmem:[%s3082_s3 + $0xe0] sm:$0xff] }
  0x77   :  { %1739 = vmatpush1.bf16.msra.mxu1 %v1738_v58  ;;  %v1748_v11 = vpack.c.bf16 %v1212_v7, %v1210_v50  ;;  %v2004_v43 = vld [vmem:[%s3080_s1 + $0x344] ss:$8 sps:$4 sm:$0xff]   ;;  %v1764_v45 = vpack.c.bf16 %v1228_v41, %v1226_v40  ;;  %v1227_v48 = vld [vmem:[%s3082_s3 + $0xf0] sm:$0xff]  ;;  %v1232_v51 = vld [vmem:[%s3082_s3 + $0x118] sm:$0xff] }
  0x78   :  { %1741 = vmatprep.subr.bf16.mxu1 %v1740_v60  ;;  %v1230_v49 = vld [vmem:[%s3082_s3 + $0x108] sm:$0xff]  ;;  %v2007_v53 = vld [vmem:[%s3080_s1 + $0x354] ss:$8 sps:$4 sm:$0xff]   ;;  %v1766_v54 = vpack.c.bf16 %v1227_v48, %v1225_v47  ;;  %v2005_v61 = vld [vmem:[%s3080_s1 + $0x350] ss:$8 sps:$4 sm:$0xff]   ;;  %v2139_v47 = vmov 0  }
  0x79   :  { %1099 = vmatpush1.bf16.msra.mxu0 %v1981_v56  ;;  %v2002_v52 = vld [vmem:[%s3080_s1 + $0x340] ss:$8 sps:$4 sm:$0xff]   ;;  %v1768_v55 = vpack.c.bf16 %v1232_v51, %v1230_v49  ;;  %v1236_v60 = vld [vmem:[%s3082_s3 + $0x138] sm:$0xff]  ;;  %v2010_v62 = vld [vmem:[%s3080_s1 + $0x364] ss:$8 sps:$4 sm:$0xff]  }
  0x7a   :  { %1100 = vmatprep.subr.bf16.mxu0 %v1986_v57  ;;  %v1229_v56 = vld [vmem:[%s3082_s3 + $0x100] sm:$0xff]  ;;  %v1231_v57 = vld [vmem:[%s3082_s3 + $0x110] sm:$0xff]  ;;  %v1234_v58 = vld [vmem:[%s3082_s3 + $0x128] sm:$0xff] }
  0x7b   :  { %1743 = vmatpush1.bf16.msra.mxu1 %v1742_v3  ;;  %v1770_v63 = vpack.c.bf16 %v1231_v57, %v1229_v56  ;;  %v1772_v0 = vpack.c.bf16 %v1236_v60, %v1234_v58  ;;  %v1238_v3 = vld [vmem:[%s3082_s3 + $0x148] sm:$0xff]  ;;  %v2016_v6 = vld [vmem:[%s3080_s1 + $0x374] ss:$8 sps:$4 sm:$0xff]   ;;  %v2014_v12 = vld [vmem:[%s3080_s1 + $0x370] ss:$8 sps:$4 sm:$0xff]  }
  0x7c   :  { %1745 = vmatprep.subr.bf16.mxu1 %v1744_v4  ;;  %v1240_v4 = vld [vmem:[%s3082_s3 + $0x158] sm:$0xff]  ;;  %v2008_v5 = vld [vmem:[%s3080_s1 + $0x360] ss:$8 sps:$4 sm:$0xff]   ;;  %v2022_v14 = vld [vmem:[%s3080_s1 + $0x384] ss:$8 sps:$4 sm:$0xff]  }
  0x7d   :  { %1101 = vmatpush1.bf16.msra.mxu0 %v1984_v1  ;;  %v1233_v1 = vld [vmem:[%s3082_s3 + $0x120] sm:$0xff]  ;;  %v1776_v7 = vpack.c.bf16 %v1240_v4, %v1238_v3  ;;  %v2028_v23 = vld [vmem:[%s3080_s1 + $0x394] ss:$8 sps:$4 sm:$0xff]   ;;  %v2038_v32 = vld [vmem:[%s3080_s1 + $0x3b0] ss:$8 sps:$4 sm:$0xff]  }
  0x7e   :  { %1102 = vmatprep.subr.bf16.mxu0 %v1989_v2  ;;  %v1235_v2 = vld [vmem:[%s3082_s3 + $0x130] sm:$0xff]  ;;  %v1245_v25 = vld [vmem:[%s3082_s3 + $0x180] sm:$0xff]  ;;  %v1254_v60 = vld [vmem:[%s3082_s3 + $0x1c8] sm:$0xff] }
  0x7f   :  { %1747 = vmatpush1.bf16.msra.mxu1 %v1746_v10  ;;  %v1774_v50 = vpack.c.bf16 %v1235_v2, %v1233_v1  ;;  %v1242_v10 = vld [vmem:[%s3082_s3 + $0x168] sm:$0xff]  ;;  %v2040_v31 = vld [vmem:[%s3080_s1 + $0x3b4] ss:$8 sps:$4 sm:$0xff]   ;;  %v2062_v40 = vld [vmem:[%s3080_s1 + $0x3f0] ss:$8 sps:$4 sm:$0xff]  }
  0x80   :  { %1749 = vmatprep.subr.bf16.mxu1 %v1748_v11  ;;  %v1244_v11 = vld [vmem:[%s3082_s3 + $0x178] sm:$0xff]  ;;  %v2032_v30 = vld [vmem:[%s3080_s1 + $0x3a0] ss:$8 sps:$4 sm:$0xff]   ;;  %v2046_v33 = vld [vmem:[%s3080_s1 + $0x3c4] ss:$8 sps:$4 sm:$0xff]  }
  0x81   :  { %1103 = vmatpush1.bf16.msra.mxu0 %v1987_v8  ;;  %v1237_v8 = vld [vmem:[%s3082_s3 + $0x140] sm:$0xff]  ;;  %v1780_v18 = vpack.c.bf16 %v1244_v11, %v1242_v10  ;;  %v2064_v39 = vld [vmem:[%s3080_s1 + $0x3f4] ss:$8 sps:$4 sm:$0xff]   ;;  %v2086_v51 = vld [vmem:[%s3080_s1 + $0x430] ss:$8 sps:$4 sm:$0xff]  }
  0x82   :  { %1113 = vmatprep.subr.bf16.mxu0 %v1992_v9  ;;  %v1239_v9 = vld [vmem:[%s3082_s3 + $0x150] sm:$0xff]  ;;  %v2056_v38 = vld [vmem:[%s3080_s1 + $0x3e0] ss:$8 sps:$4 sm:$0xff]   ;;  %v2070_v41 = vld [vmem:[%s3080_s1 + $0x404] ss:$8 sps:$4 sm:$0xff]  }
  0x83   :  { %1751 = vmatpush1.bf16.msra.mxu1 %v1750_v21  ;;  %v1778_v16 = vpack.c.bf16 %v1239_v9, %v1237_v8  ;;  %v1248_v21 = vld [vmem:[%s3082_s3 + $0x198] sm:$0xff]  ;;  %v2080_v48 = vld [vmem:[%s3080_s1 + $0x420] ss:$8 sps:$4 sm:$0xff]   ;;  %v1251_v57 = vld [vmem:[%s3082_s3 + $0x1b0] sm:$0xff] }
  0x84   :  { %1105 = vmatmul.mubr.bf16.vlgmr.msra.gmra.mrb[0].mxu0 %v2567_v15  ;;  %1753 = vmatprep.subr.bf16.mxu1 %v1752_v22  ;;  %v2020_v22 = vld [vmem:[%s3080_s1 + $0x380] ss:$8 sps:$4 sm:$0xff]   ;;  %v2088_v49 = vld [vmem:[%s3080_s1 + $0x434] ss:$8 sps:$4 sm:$0xff]   ;;  %v2098_v1 = vld [vmem:[%s3080_s1 + $0x450] ss:$8 sps:$4 sm:$0xff]  }
  0x85   :  { %1114 = vmatpush1.bf16.msra.mxu0 %v1990_v19  ;;  %1145 = vmatprep.mubr.bf16.mxu0 %v246_v20  ;;  %v1241_v19 = vld [vmem:[%s3082_s3 + $0x160] sm:$0xff]  ;;  %v1243_v20 = vld [vmem:[%s3082_s3 + $0x170] sm:$0xff]  ;;  %v1258_v10 = vld [vmem:[%s3082_s3 + $0x1e8] sm:$0xff] }
  0x86   :  { %1115 = vmatprep.subr.bf16.mxu0 %v1995_v46  ;;  %v1246_v46 = vld [vmem:[%s3082_s3 + $0x188] sm:$0xff]  ;;  %v1782_v24 = vpack.c.bf16 %v1243_v20, %v1241_v19  ;;  %v1249_v56 = vld [vmem:[%s3082_s3 + $0x1a0] sm:$0xff]  ;;  %v2109_v4 = vld [vmem:[%s3080_s1 + $0x474] ss:$8 sps:$4 sm:$0xff]  }
  0x87   :  { %1755 = vmatpush1.bf16.msra.mxu1 %v1754_v28  ;;  %v1784_v59 = vpack.c.bf16 %v1248_v21, %v1246_v46  ;;  %v2034_v28 = vld [vmem:[%s3080_s1 + $0x3a4] ss:$8 sps:$4 sm:$0xff]   ;;  %v1790_v58 = vpack.c.bf16 %v1251_v57, %v1249_v56  ;;  %v2104_v3 = vld [vmem:[%s3080_s1 + $0x460] ss:$8 sps:$4 sm:$0xff]   ;;  %v1255_v8 = vld [vmem:[%s3082_s3 + $0x1d0] sm:$0xff] }
  0x88   :  { %1757 = vmatprep.subr.bf16.mxu1 %v1756_v29  ;;  %v2106_v2 = vld [vmem:[%s3080_s1 + $0x464] ss:$8 sps:$4 sm:$0xff]  }
  0x89   :  { %1116 = vmatpush1.bf16.msra.mxu0 %v1993_v26  ;;  %v1247_v26 = vld [vmem:[%s3082_s3 + $0x190] sm:$0xff]  ;;  %v1359_v56 = vld [vmem:[%s3084_s5 + $0x68] sm:$0xff] }
  0x8a   :  { %1117 = vmatprep.subr.bf16.mxu0 %v1998_v27  ;;  %v2026_v27 = vld [vmem:[%s3080_s1 + $0x390] ss:$8 sps:$4 sm:$0xff]   ;;  %v1786_v29 = vpack.c.bf16 %v1247_v26, %v1245_v25 }
  0x8b   :  { %1759 = vmatpush1.bf16.msra.mxu1 %v1758_v36  ;;  %v2050_v36 = vld [vmem:[%s3080_s1 + $0x3d0] ss:$8 sps:$4 sm:$0xff]  }
  0x8c   :  { %1761 = vmatprep.subr.bf16.mxu1 %v1760_v37  ;;  %v2058_v37 = vld [vmem:[%s3080_s1 + $0x3e4] ss:$8 sps:$4 sm:$0xff]  }
  0x8d   :  { %1118 = vmatpush1.bf16.msra.mxu0 %v1996_v34  ;;  %v2044_v34 = vld [vmem:[%s3080_s1 + $0x3c0] ss:$8 sps:$4 sm:$0xff]  }
  0x8e   :  { %1119 = vmatprep.subr.bf16.mxu0 %v2001_v35  ;;  %v2052_v35 = vld [vmem:[%s3080_s1 + $0x3d4] ss:$8 sps:$4 sm:$0xff]  }
  0x8f   :  { %1763 = vmatpush1.bf16.msra.mxu1 %v1762_v44  ;;  %v2076_v44 = vld [vmem:[%s3080_s1 + $0x414] ss:$8 sps:$4 sm:$0xff]  }
  0x90   :  { %1765 = vmatprep.subr.bf16.mxu1 %v1764_v45  ;;  %v2074_v45 = vld [vmem:[%s3080_s1 + $0x410] ss:$8 sps:$4 sm:$0xff]  }
  0x91   :  { %1120 = vmatpush1.bf16.msra.mxu0 %v1999_v42  ;;  %v244_v42 = vcombine.high %v2567_v15, %v2567_v15  ;;  %v2082_v15 = vld [vmem:[%s3080_s1 + $0x424] ss:$8 sps:$4 sm:$0xff]  }
  0x92   :  { %1121 = vmatprep.subr.bf16.mxu0 %v2004_v43  ;;  %v2068_v43 = vld [vmem:[%s3080_s1 + $0x400] ss:$8 sps:$4 sm:$0xff]  }
  0x93   :  { %1767 = vmatpush1.bf16.msra.mxu1 %v1766_v54  ;;  %v2094_v54 = vld [vmem:[%s3080_s1 + $0x444] ss:$8 sps:$4 sm:$0xff]  }
  0x94   :  { %1769 = vmatprep.subr.bf16.mxu1 %v1768_v55 }
  0x95   :  { %1122 = vmatpush1.bf16.msra.mxu0 %v2002_v52  ;;  %v1250_v52 = vld [vmem:[%s3082_s3 + $0x1a8] sm:$0xff] }
  0x96   :  { %1123 = vmatprep.subr.bf16.mxu0 %v2007_v53  ;;  %v1252_v53 = vld [vmem:[%s3082_s3 + $0x1b8] sm:$0xff] }
  0x97   :  { %1771 = vmatpush1.bf16.msra.mxu1 %v1770_v63  ;;  %v1788_v55 = vpack.c.bf16 %v1252_v53, %v1250_v52  ;;  %v2092_v63 = vld [vmem:[%s3080_s1 + $0x440] ss:$8 sps:$4 sm:$0xff]   ;;  %v1356_v52 = vld [vmem:[%s3084_s5 + $0x50] sm:$0xff]  ;;  %v1357_v53 = vld [vmem:[%s3084_s5 + $0x58] sm:$0xff] }
  0x98   :  { %1773 = vmatprep.subr.bf16.mxu1 %v1772_v0  ;;  %v2100_v0 = vld [vmem:[%s3080_s1 + $0x454] ss:$8 sps:$4 sm:$0xff]  }
  0x99   :  { %1124 = vmatpush1.bf16.msra.mxu0 %v2005_v61  ;;  %v1256_v61 = vld [vmem:[%s3082_s3 + $0x1d8] sm:$0xff] }
  0x9a   :  { %1125 = vmatprep.subr.bf16.mxu0 %v2010_v62  ;;  %v1792_v62 = vpack.c.bf16 %v1256_v61, %v1254_v60  ;;  %v1361_v60 = vld [vmem:[%s3084_s5 + $0x78] sm:$0xff] }
  0x9b   :  { %1775 = vmatpush1.bf16.msra.mxu1 %v1774_v50 }
  0x9c   :  { %1777 = vmatprep.subr.bf16.mxu1 %v1776_v7  ;;  %v1253_v7 = vld [vmem:[%s3082_s3 + $0x1c0] sm:$0xff] }
  0x9d   :  { %1126 = vmatpush1.bf16.msra.mxu0 %v2008_v5  ;;  %v2107_v5 = vld [vmem:[%s3080_s1 + $0x470] ss:$8 sps:$4 sm:$0xff]   ;;  %v1794_v9 = vpack.c.bf16 %v1255_v8, %v1253_v7 }
  0x9e   :  { %1127 = vmatprep.subr.bf16.mxu0 %v2016_v6  ;;  %v1587_v6 = vld.sshfl [vmem:[%s3079_s0 + $0x8] sm:$0x1 pattern:$0x75316420]  ;;  %v1369_v7 = vld [vmem:[%s3084_s5 + $0xb8] sm:$0xff] }
  0x9f   :  { %1779 = vmatpush1.bf16.msra.mxu1 %v1778_v16  ;;  %v260_v50 = vrot.slane %v1587_v6, %v2237_v17  ;;  %v1260_v17 = vld [vmem:[%s3082_s3 + $0x1f8] sm:$0xff] }
  0xa0   :  { %1781 = vmatprep.subr.bf16.mxu1 %v1780_v18  ;;  %v1796_v11 = vpack.c.bf16 %v1260_v17, %v1258_v10  ;;  %v2140_v18 = vmov 0.0|0.0   ;;  %v1370_v10 = vld [vmem:[%s3084_s5 + $0xc0] sm:$0xff] }
  0xa1   :  { %1128 = vmatpush1.bf16.msra.mxu0 %v2014_v12  ;;  %v1257_v12 = vld [vmem:[%s3082_s3 + $0x1e0] sm:$0xff] }
  0xa2   :  { %1129 = vmatprep.subr.bf16.mxu0 %v2022_v14  ;;  %v1259_v14 = vld [vmem:[%s3082_s3 + $0x1f0] sm:$0xff]  ;;  %v1261_v17 = vld [vmem:[%s3083_s4] sm:$0x3] }
  0xa3   :  { %1783 = vmatpush1.bf16.msra.mxu1 %v1782_v24  ;;  %v1798_v16 = vpack.c.bf16 %v1259_v14, %v1257_v12  ;;  %v192_v24 = vsub.s32 1, %v2228_v13 }
  0xa4   :  { %1785 = vmatprep.subr.bf16.mxu1 %v1784_v59 }
  0xa5   :  { %1130 = vmatpush1.bf16.msra.mxu0 %v2020_v22  ;;  %v188_v22 = vsub.s32 0, %v2228_v13  ;;  %v1270_v12 = vrot.slane %v1261_v17, %v192_v24  ;;  %v1454_v13 = vld [vmem:[%s3086_s7 + $0x10] sm:$0xff] }
  0xa6   :  { %1131 = vmatprep.subr.bf16.mxu0 %v2028_v23  ;;  %v184_v23 = vld [vmem:[%s3081_s2] sm:$0x3] }
  0xa7   :  { %1787 = vmatpush1.bf16.msra.mxu1 %v1786_v29  ;;  %v189_v59 = vrot.slane %v184_v23, %v188_v22  ;;  %v193_v25 = vrot.slane %v184_v23, %v192_v24  ;;  %v1455_v24 = vld [vmem:[%s3086_s7 + $0x18] sm:$0xff] }
  0xa8   :  { %1789 = vmatprep.subr.bf16.mxu1 %v1788_v55  ;;  %v1358_v55 = vld [vmem:[%s3084_s5 + $0x60] sm:$0xff] }
  0xa9   :  { %1132 = vmatpush1.bf16.msra.mxu0 %v2026_v27  ;;  %v1819_v57 = vpack.c.bf16 %v1359_v56, %v1358_v55  ;;  %v1475_v55 = vld [vmem:[%s3086_s7 + $0xb8] sm:$0xff] }
  0xaa   :  { %1133 = vmatprep.subr.bf16.mxu0 %v2034_v28 }
  0xab   :  { %1791 = vmatpush1.bf16.msra.mxu1 %v1790_v58  ;;  %v1360_v58 = vld [vmem:[%s3084_s5 + $0x70] sm:$0xff] }
  0xac   :  { %1793 = vmatprep.subr.bf16.mxu1 %v1792_v62  ;;  %v1822_v61 = vpack.c.bf16 %v1361_v60, %v1360_v58  ;;  %v1362_v62 = vld [vmem:[%s3084_s5 + $0x80] sm:$0xff] }
  0xad   :  { %1134 = vmatpush1.bf16.msra.mxu0 %v2032_v30  ;;  %v1732_v58 = vld [vmem:[%s3085_s6] ss:$0 sm:$0xff]  ;;  %s2142_s6 = smov [#allocation3]  }
  0xae   :  { %1135 = vmatprep.subr.bf16.mxu0 %v2040_v31  ;;  %v1346_v31 = vld [vmem:[%s3084_s5] sm:$0xff]  ;;  %s1575_s15 = sshll.u32 %s2142_s6, 4  ;;  %s1576_s15 = int_to_ptr.vmem [resolvable:$true] %s1575_s15 }
  0xaf   :  { %1795 = vmatpush1.bf16.msra.mxu1 %v1794_v9  ;;  %v2141_v9 = vmov 0.0   ;;  %s2114_s16 = scalar_lea.vmem %s1576_s15, 32  ;;  %p2119_p1 = scmp.lt.s32.totalorder %s1576_s15, %s1576_s15 }
  0xb0   :  { %1797 = vmatprep.subr.bf16.mxu1 %v1796_v11  ;;  %v1266_v11 = vrot.slane %v1261_v17, %v188_v22  ;;  %p2115_p0 = scmp.ne.s32.totalorder %s1576_s15, %s2114_s16  ;;  %p2120_p2 = scmp.lt.s32.totalorder %s2114_s16, %s2114_s16 }
  0xb1   :  { %1136 = vmatpush1.bf16.msra.mxu0 %v2038_v32  ;;  %v1347_v32 = vld [vmem:[%s3084_s5 + $0x8] sm:$0xff] }
  0xb2   :  { %1137 = vmatprep.subr.bf16.mxu0 %v2046_v33  ;;  %p2121_p3 = por %p2120_p2, %p2119_p1 }
  0xb3   :  { %1799 = vmatpush1.bf16.msra.mxu1 %v1798_v16 }
  0xb4   :  { %1800 = vmatprep.subr.bf16.mxu1 %v2140_v18  ;;  %p2122_p4 = pnand %p2121_p3, %p2115_p0 }
  0xb5   :  { %1138 = vmatpush1.bf16.msra.mxu0 %v2044_v34 }
  0xb6   :  { %1139 = vmatprep.subr.bf16.mxu0 %v2052_v35 }
  0xb9   :  { %1140 = vmatpush1.bf16.msra.mxu0 %v2050_v36 }
  0xba   :  { %1141 = vmatprep.subr.bf16.mxu0 %v2058_v37  ;;  %v1801_v37 = vpack.c.bf16 %v1347_v32, %v1346_v31  ;;  %v1460_v32 = vld [vmem:[%s3086_s7 + $0x40] sm:$0xff] }
  0xbd   :  { %1142 = vmatpush1.bf16.msra.mxu0 %v2056_v38 }
  0xbe   :  { %1143 = vmatprep.subr.bf16.mxu0 %v2064_v39  ;;  %v1348_v39 = vld [vmem:[%s3084_s5 + $0x10] sm:$0xff] }
  0xc1   :  { %1144 = vmatpush1.bf16.msra.mxu0 %v2062_v40  ;;  %v1349_v40 = vld [vmem:[%s3084_s5 + $0x18] sm:$0xff] }
  0xc2   :  { %1154 = vmatprep.subr.bf16.mxu0 %v2070_v41  ;;  %v1804_v41 = vpack.c.bf16 %v1349_v40, %v1348_v39  ;;  %v1465_v39 = vld [vmem:[%s3086_s7 + $0x68] sm:$0xff] }
  0xc4   :  { %1146 = vmatmul.mubr.bf16.vlgmr.msra.gmra.mrb[0].mxu0 %v244_v42  ;;  %v1350_v42 = vld [vmem:[%s3084_s5 + $0x20] sm:$0xff] }
  0xc5   :  { %1155 = vmatpush1.bf16.msra.mxu0 %v2068_v43  ;;  %1186 = vmatprep.mubr.bf16.mxu0 %v2139_v47  ;;  %v1351_v43 = vld [vmem:[%s3084_s5 + $0x28] sm:$0xff]  ;;  %v1353_v47 = vld [vmem:[%s3084_s5 + $0x38] sm:$0xff] }
  0xc6   :  { %1156 = vmatprep.subr.bf16.mxu0 %v2076_v44  ;;  %v1807_v44 = vpack.c.bf16 %v1351_v43, %v1350_v42  ;;  %v1467_v42 = vld [vmem:[%s3086_s7 + $0x78] sm:$0xff] }
  0xc9   :  { %1157 = vmatpush1.bf16.msra.mxu0 %v2074_v45  ;;  %v1352_v45 = vld [vmem:[%s3084_s5 + $0x30] sm:$0xff] }
  0xca   :  { %1158 = vmatprep.subr.bf16.mxu0 %v2082_v15  ;;  %v1810_v15 = vpack.c.bf16 %v1353_v47, %v1352_v45  ;;  %v1469_v45 = vld [vmem:[%s3086_s7 + $0x88] sm:$0xff] }
  0xcd   :  { %1159 = vmatpush1.bf16.msra.mxu0 %v2080_v48  ;;  %v1354_v48 = vld [vmem:[%s3084_s5 + $0x40] sm:$0xff] }
  0xce   :  { %1160 = vmatprep.subr.bf16.mxu0 %v2088_v49  ;;  %v1355_v49 = vld [vmem:[%s3084_s5 + $0x48] sm:$0xff] }
  0xd1   :  { %1161 = vmatpush1.bf16.msra.mxu0 %v2086_v51  ;;  %v1813_v51 = vpack.c.bf16 %v1355_v49, %v1354_v48  ;;  %v1471_v48 = vld [vmem:[%s3086_s7 + $0x98] sm:$0xff] }
  0xd2   :  { %1162 = vmatprep.subr.bf16.mxu0 %v2094_v54  ;;  %v1816_v54 = vpack.c.bf16 %v1357_v53, %v1356_v52  ;;  %v1473_v52 = vld [vmem:[%s3086_s7 + $0xa8] sm:$0xff] }
  0xd5   :  { %1163 = vmatpush1.bf16.msra.mxu0 %v2092_v63  ;;  %v1363_v63 = vld [vmem:[%s3084_s5 + $0x88] sm:$0xff] }
  0xd6   :  { %1164 = vmatprep.subr.bf16.mxu0 %v2100_v0  ;;  %v1825_v0 = vpack.c.bf16 %v1363_v63, %v1362_v62 }
  0xd9   :  { %1165 = vmatpush1.bf16.msra.mxu0 %v2098_v1  ;;  %v1364_v1 = vld [vmem:[%s3084_s5 + $0x90] sm:$0xff] }
  0xda   :  { %1166 = vmatprep.subr.bf16.mxu0 %v2106_v2  ;;  %v1365_v2 = vld [vmem:[%s3084_s5 + $0x98] sm:$0xff] }
  0xdd   :  { %1167 = vmatpush1.bf16.msra.mxu0 %v2104_v3  ;;  %v1828_v3 = vpack.c.bf16 %v1365_v2, %v1364_v1 }
  0xde   :  { %1168 = vmatprep.subr.bf16.mxu0 %v2109_v4  ;;  %v1366_v4 = vld [vmem:[%s3084_s5 + $0xa0] sm:$0xff] }
  0xe1   :  { %1169 = vmatpush1.bf16.msra.mxu0 %v2107_v5  ;;  %v1367_v5 = vld [vmem:[%s3084_s5 + $0xa8] sm:$0xff] }
  0xe2   :  { %v1831_v6 = vpack.c.bf16 %v1367_v5, %v1366_v4 }
  0xe4   :  { %1187 = vmatmul.mubr.bf16.vlgmr.msra.gmra.mrb[0].mxu0 %v260_v50  ;;  %v1368_v50 = vld [vmem:[%s3084_s5 + $0xb0] sm:$0xff] }
  0xe5   :  { %v1834_v8 = vpack.c.bf16 %v1369_v7, %v1368_v50 }
 0x149   :  { %v1024_v19 = vpop.f32.mrb[0].mxu1 }
 0x14a   :  { %v1026_v20 = vpop.f32.mrb[1].mxu1  ;;  %v1025_v26 = vadd.f32 %v1024_v19, %v189_v59 }
 0x14b   :  { %v1028_v46 = vpop.f32.mrb[2].mxu1  ;;  %v1027_v27 = vadd.f32 %v1026_v20, %v193_v25  ;;  %v1452_v20 = vld [vmem:[%s3086_s7] sm:$0xff]  ;;  %v1840_v25 = vpack.c.bf16 %v1455_v24, %v1454_v13 }
 0x14c   :  { %v1029_v21 = vpop.f32.mrb[3].mxu1  ;;  %v1453_v46 = vld [vmem:[%s3086_s7 + $0x8] sm:$0xff] }
 0x14d   :  { %v1837_v59 = vpack.c.bf16 %v1453_v46, %v1452_v20 }
 0x1b7   :  { %v1188_v28 = vpop.f32.mrb[0].mxu0 }
 0x1b8   :  { %v1873_v29 = vadd.f32 %v1188_v28, %v1025_v26  ;;  %v1190_v30 = vpop.f32.mrb[1].mxu0  ;;  %v1456_v26 = vld [vmem:[%s3086_s7 + $0x20] sm:$0xff] }
 0x1b9   :  { %v1875_v33 = vadd.f32 %v1190_v30, %v1027_v27  ;;  %v1192_v34 = vpop.f32.mrb[2].mxu0  ;;  %v1457_v27 = vld [vmem:[%s3086_s7 + $0x28] sm:$0xff]  ;;  %v1459_v30 = vld [vmem:[%s3086_s7 + $0x38] sm:$0xff] }
 0x1ba   :  { %v1193_v35 = vpop.f32.mrb[3].mxu0  ;;  %v1195_v38 = vmax.f32 %v1873_v29, 0.0  ;;  %v1843_v28 = vpack.c.bf16 %v1457_v27, %v1456_v26  ;;  %v1458_v29 = vld [vmem:[%s3086_s7 + $0x30] sm:$0xff] }
 0x1bb   :  { %v1196_v36 = vmax.f32 %v1875_v33, 0.0  ;;  %v1846_v31 = vpack.c.bf16 %v1459_v30, %v1458_v29  ;;  %v1461_v33 = vld [vmem:[%s3086_s7 + $0x48] sm:$0xff]  ;;  %v1462_v35 = vld [vmem:[%s3086_s7 + $0x50] sm:$0xff] }
 0x1bc   :  { %v1849_v34 = vpack.c.bf16 %v1461_v33, %v1460_v32 }
 0x1bd   :  { %1337 = vmatprep.mubr.f32.mxu1 %v1196_v36  ;;  %v1463_v36 = vld [vmem:[%s3086_s7 + $0x58] sm:$0xff] }
 0x1be   :  { %1338 = vmatmul.mubr.f32.vlgmr.msra.gmra.mrb[4].mxu1 %v1195_v38  ;;  %v1464_v38 = vld [vmem:[%s3086_s7 + $0x60] sm:$0xff] }
 0x1bf   :  { %1802 = vmatpush1.bf16.msra.mxu1 %v1801_v37  ;;  %v1852_v37 = vpack.c.bf16 %v1463_v36, %v1462_v35  ;;  %v1855_v40 = vpack.c.bf16 %v1465_v39, %v1464_v38 }
 0x1c0   :  { %1803 = vmatprep.subr.bf16.mxu1 %v2140_v18 }
 0x1c3   :  { %1805 = vmatpush1.bf16.msra.mxu1 %v1804_v41  ;;  %v1466_v41 = vld [vmem:[%s3086_s7 + $0x70] sm:$0xff] }
 0x1c4   :  { %1806 = vmatprep.subr.bf16.mxu1 %v2140_v18  ;;  %v1858_v43 = vpack.c.bf16 %v1467_v42, %v1466_v41 }
 0x1c7   :  { %1808 = vmatpush1.bf16.msra.mxu1 %v1807_v44  ;;  %v1468_v44 = vld [vmem:[%s3086_s7 + $0x80] sm:$0xff] }
 0x1c8   :  { %1809 = vmatprep.subr.bf16.mxu1 %v2140_v18  ;;  %v1861_v47 = vpack.c.bf16 %v1469_v45, %v1468_v44 }
 0x1cb   :  { %1811 = vmatpush1.bf16.msra.mxu1 %v1810_v15  ;;  %v1470_v15 = vld [vmem:[%s3086_s7 + $0x90] sm:$0xff] }
 0x1cc   :  { %1812 = vmatprep.subr.bf16.mxu1 %v2140_v18  ;;  %v1864_v49 = vpack.c.bf16 %v1471_v48, %v1470_v15 }
 0x1cf   :  { %1814 = vmatpush1.bf16.msra.mxu1 %v1813_v51  ;;  %v1472_v51 = vld [vmem:[%s3086_s7 + $0xa0] sm:$0xff] }
 0x1d0   :  { %1815 = vmatprep.subr.bf16.mxu1 %v2140_v18  ;;  %v1867_v53 = vpack.c.bf16 %v1473_v52, %v1472_v51 }
 0x1d3   :  { %1817 = vmatpush1.bf16.msra.mxu1 %v1816_v54  ;;  %v1474_v54 = vld [vmem:[%s3086_s7 + $0xb0] sm:$0xff] }
 0x1d4   :  { %1818 = vmatprep.subr.bf16.mxu1 %v2140_v18  ;;  %v1870_v56 = vpack.c.bf16 %v1475_v55, %v1474_v54 }
 0x1d7   :  { %1820 = vmatpush1.bf16.msra.mxu1 %v1819_v57  ;;  %v1476_v57 = vld [vmem:[%s3086_s7 + $0xc0] sm:$0xff] }
 0x1d8   :  { %1821 = vmatprep.subr.bf16.mxu1 %v2140_v18 }
 0x1db   :  { %1823 = vmatpush1.bf16.msra.mxu1 %v1822_v61 }
 0x1dc   :  { %1824 = vmatprep.subr.bf16.mxu1 %v2140_v18 }
 0x1df   :  { %1826 = vmatpush1.bf16.msra.mxu1 %v1825_v0 }
 0x1e0   :  { %1827 = vmatprep.subr.bf16.mxu1 %v2140_v18 }
 0x1e3   :  { %1829 = vmatpush1.bf16.msra.mxu1 %v1828_v3 }
 0x1e4   :  { %1830 = vmatprep.subr.bf16.mxu1 %v2140_v18 }
 0x1e7   :  { %1832 = vmatpush1.bf16.msra.mxu1 %v1831_v6 }
 0x1e8   :  { %1833 = vmatprep.subr.bf16.mxu1 %v2140_v18 }
 0x1eb   :  { %1835 = vmatpush1.bf16.msra.mxu1 %v1834_v8 }
 0x1ec   :  { %1430 = vmatprep.subr.mxu1 %v2141_v9 }
 0x1ef   :  { %1431 = vmatpush1.msra.mxu1 %v1370_v10 }
 0x1f0   :  { %1836 = vmatprep.subr.bf16.mxu1 %v2140_v18 }
 0x291   :  { %v1339_v14 = vpop.f32.mrb[4].mxu1 }
 0x292   :  { %v2968_v16 = vadd.f32 %v1339_v14, %v1266_v11  ;;  %v1341_v19 = vpop.f32.mrb[5].mxu1 }
 0x293   :  { %v1342_v21 = vadd.f32 %v1341_v19, %v1270_v12 }
 0x294   :  { %v1344_v22 = vmax.f32 %v2968_v16, 0.0 }
 0x295   :  { %v1345_v23 = vmax.f32 %v1342_v21, 0.0 }
 0x297   :  { %1733 = vmatprep.mubr.msk.f32.mxu1 %vm1378_vm0, %v1345_v23 }
 0x298   :  { %1447 = vmatmul.mubr.f32.vlgmr.msra.gmra.mrb[6].mxu1 %v1344_v22 }
 0x299   :  { %1838 = vmatpush1.bf16.msra.mxu1 %v1837_v59  ;;  %1735 = vmatprep.mubr.msk.f32.mxu1 %vm1378_vm0, %v1345_v23 }
 0x29a   :  { %1839 = vmatprep.subr.bf16.mxu1 %v2140_v18 }
 0x29d   :  { %1841 = vmatpush1.bf16.msra.mxu1 %v1840_v25 }
 0x29e   :  { %1842 = vmatprep.subr.bf16.mxu1 %v2140_v18 }
 0x2a1   :  { %1844 = vmatpush1.bf16.msra.mxu1 %v1843_v28 }
 0x2a2   :  { %1845 = vmatprep.subr.bf16.mxu1 %v2140_v18 }
 0x2a5   :  { %1847 = vmatpush1.bf16.msra.mxu1 %v1846_v31 }
 0x2a6   :  { %1848 = vmatprep.subr.bf16.mxu1 %v2140_v18 }
 0x2a9   :  { %1850 = vmatpush1.bf16.msra.mxu1 %v1849_v34 }
 0x2aa   :  { %1851 = vmatprep.subr.bf16.mxu1 %v2140_v18 }
 0x2ad   :  { %1853 = vmatpush1.bf16.msra.mxu1 %v1852_v37 }
 0x2ae   :  { %1854 = vmatprep.subr.bf16.mxu1 %v2140_v18 }
 0x2b1   :  { %1856 = vmatpush1.bf16.msra.mxu1 %v1855_v40 }
 0x2b2   :  { %1857 = vmatprep.subr.bf16.mxu1 %v2140_v18 }
 0x2b5   :  { %1859 = vmatpush1.bf16.msra.mxu1 %v1858_v43 }
 0x2b6   :  { %1860 = vmatprep.subr.bf16.mxu1 %v2140_v18 }
 0x2b9   :  { %1862 = vmatpush1.bf16.msra.mxu1 %v1861_v47 }
 0x2ba   :  { %1863 = vmatprep.subr.bf16.mxu1 %v2140_v18 }
 0x2bd   :  { %1865 = vmatpush1.bf16.msra.mxu1 %v1864_v49 }
 0x2be   :  { %1866 = vmatprep.subr.bf16.mxu1 %v2140_v18 }
 0x2c1   :  { %1868 = vmatpush1.bf16.msra.mxu1 %v1867_v53 }
 0x2c2   :  { %1869 = vmatprep.subr.bf16.mxu1 %v2140_v18  ;;  %v1734_v18 = vld [vmem:[#allocation2] ss:$0 sm:$0xff] }
 0x2c5   :  { %1871 = vmatpush1.bf16.msra.mxu1 %v1870_v56 }
 0x2c6   :  { %1532 = vmatprep.subr.mxu1 %v2141_v9 }
 0x2c9   :  { %1533 = vmatpush1.msra.mxu1 %v1476_v57 }
 0x2ca   :  { %1549 = vmatmul.mubr.f32.vlgmr.msra.gmra.mrb[8].mxu1 %v1344_v22 }
 0x36b   :  { %v1448_v60 = vpop.f32.mrb[6].mxu1 }
 0x36c   :  { %v1449_v61 = vadd.f32 %v1732_v58, %v1448_v60  ;;  %v1450_v62 = vpop.f32.mrb[7].mxu1 }
 0x36e   :  { %v1555_v63 = vsel %vm1554_vm1, %v1449_v61, -inf }
 0x36f   :  { %1556 = vmax.xlane.f32.xlu0 %v1555_v63 }
 0x39d   :  { %v1550_v0 = vpop.f32.mrb[8].mxu1 }
 0x39e   :  { %v1551_v1 = vadd.f32 %v1734_v18, %v1550_v0  ;;  %v1552_v2 = vpop.f32.mrb[9].mxu1 }
 0x3a0   :  { %1568 = vst.msk [vmem:[%s3089_s10] sm:$0x3] %vm1567_vm2, %v1551_v1 }
 0x3fc   :  { %v1557_v3 = vpop.xlane.xlu0 %1556 }
 0x3fd   :  { %v1558_v4 = vsub.f32 %v1449_v61, %v1557_v3 }
 0x3ff   :  { %v1559_v5 = vmul.f32 1.442695, %v1558_v4 }
 0x401   :  { %2110 = vpow2.f32 %v1559_v5 }
 0x40b   :  { %v2111_v6 = vpop.eup %2110 }
 0x40c   :  { %v1561_v50 = vsel %vm1554_vm1, %v2111_v6, 0.0 }
 0x40d   :  { %1562 = vadd.xlane.f32.xlu0 %v1561_v50 }
 0x49a   :  { %v1563_v7 = vpop.xlane.xlu0 %1562 }
 0x49b   :  { %2112 = vrcp.f32 %v1563_v7 }
 0x4a5   :  { %v2113_v8 = vpop.eup %2112 }
 0x4a6   :  { %v1565_v9 = vmul.f32 %v2113_v8, %v2111_v6 }
 0x4a8   :  { %1566 = vst.msk [vmem:[#allocation3] sm:$0x3] %vm1554_vm1, %v1565_v9 }
 0x4a9   :  { %2125 = shalt.err (!%p2122_p4)
}
 0x4aa   :  { %s2126_s5 = scalar_lea.hbm %s3088_s9, 32 }
 0x4ab   :  { %p2127_p5 = scmp.ne.s32.totalorder %s3088_s9, %s2126_s5  ;;  %p2130_p6 = scmp.lt.u32.totalorder %s2126_s5, %s3088_s9 }
 0x4ad   :  { %p2132_p7 = pnand %p2130_p6, %p2127_p5 }
 0x4af   :  { %2135 = shalt.err (!%p2132_p7)
}
 0x4b0   :  { %1578 = dma.vmem_to_hbm [thread:$0]  %s1576_s15, 32, %s3088_s9, [#allocation4]  }
 0x4b1   :  { %2136 = dma.done.wait [#allocation4], 32  }
 0x4b2   :  { %2137 = vsyncadd [#allocation4], 4294967264 }
 0x4b3   :  { %1586 = vsyncpa [#allocation4], 1 }

</bundles_post_ra>
